<compile_context>
chip_gen: v7x
topology: tpu7x:2x2x1
jax: 0.10.0
libtpu: 0.0.40
codegen_flags: <defaults>
</compile_context>

<pallas_src>
import functools

import jax
import jax.numpy as jnp
from jax.experimental import pallas as pl
from jax.experimental.pallas import tpu as pltpu

# ----------------------------- model constants ------------------------------
D_MODEL = 32
NUM_HEADS = 2
HEAD_DIM = D_MODEL // NUM_HEADS
FFN_DIM = 64
VOCAB = 128
MAX_POS = 64          # config.max_position_embeddings
PAD_TOKEN_ID = 1
MAX_NUM_REFS = 4      # args.max_num_refs
MAX_LENGTH = 16       # args.max_length
N_ENC_LAYERS = 1
N_DEC_LAYERS = 1

# -------------------- in-kernel math helpers (trace-time) -------------------


def _mm(a, b):
    """Matmul with bf16 MXU inputs and f32 accumulation."""
    return jnp.dot(a.astype(jnp.bfloat16), b.astype(jnp.bfloat16),
                   preferred_element_type=jnp.float32)


def _mm_t(a, b):
    """a @ b.T without materializing a transpose (contract last dims)."""
    return jax.lax.dot_general(a.astype(jnp.bfloat16), b.astype(jnp.bfloat16),
                               (((1,), (1,)), ((), ())),
                               preferred_element_type=jnp.float32)


def _linear(x, w, b):
    return _mm(x, w) + b


def _layernorm(x, ln, eps=1e-5):
    g = ln["g"][...]
    b = ln["b"][...]
    mu = jnp.mean(x, axis=-1, keepdims=True)
    var = jnp.mean(jnp.square(x - mu), axis=-1, keepdims=True)
    return (x - mu) * jax.lax.rsqrt(var + eps) * g + b


def _softmax(s):
    # s is f32; normalization reciprocal goes to the EUP slot.
    s = s - jnp.max(s, axis=-1, keepdims=True)
    p = jnp.exp(s)
    return p * pl.reciprocal(jnp.sum(p, axis=-1, keepdims=True), approx=True)


def _gelu_exact(x):
    # Exact (erf-based) GELU to match PyTorch BART (approximate=False).
    # erf via Abramowitz-Stegun 7.1.26 (max abs err ~1.5e-7): exp + polynomial
    # only, so it lowers cleanly on v5e/v6e/v7x.
    z = x * 0.7071067811865476
    a = jnp.abs(z)
    t = 1.0 / (1.0 + 0.3275911 * a)
    poly = t * (0.254829592 + t * (-0.284496736 + t * (1.421413741
            + t * (-1.453152027 + t * 1.061405429))))
    erf_abs = 1.0 - poly * jnp.exp(-a * a)
    erf_z = jnp.where(z >= 0.0, erf_abs, -erf_abs)
    return 0.5 * x * (1.0 + erf_z)


def _embed(ids, shared, pos, ln):
    """ids: [n, 1] int32, shared: [V, D], pos: [n, D].  One-hot gather on MXU."""
    n = ids.shape[0]
    onehot = (jax.lax.broadcasted_iota(jnp.int32, (n, VOCAB), 1) == ids)
    tok = _mm(onehot.astype(jnp.float32), shared)
    return _layernorm(tok + pos, ln)


def _mha(xq, xkv, p, mask, num_heads):
    """Fused-QKV multi-head attention on 2-D [tokens, D] tiles (VMEM-resident)."""
    D = D_MODEL
    wqkv = p["wqkv"][...]
    bqkv = p["bqkv"][...]
    wo = p["wo"][...]
    bo = p["bo"][...]
    if xq is xkv:                                   # self-attn: single [D, 3D] matmul
        qkv = _linear(xq, wqkv, bqkv)
        q, k, v = qkv[:, :D], qkv[:, D:2 * D], qkv[:, 2 * D:]
    else:                                           # cross-attn: q and fused kv
        q = _linear(xq, wqkv[:, :D], bqkv[:, :D])
        kv = _linear(xkv, wqkv[:, D:], bqkv[:, D:])
        k, v = kv[:, :D], kv[:, D:]
    hd = D // num_heads
    scale = hd ** -0.5
    out = None
    for h in range(num_heads):                      # static unroll (<= 2 heads)
        qh = q[:, h * hd:(h + 1) * hd] * scale
        kh = k[:, h * hd:(h + 1) * hd]
        vh = v[:, h * hd:(h + 1) * hd]
        s = _mm_t(qh, kh)                           # [Lq, Lk] f32 scores
        if mask is not None:
            s = s + mask                            # additive mask stays f32
        pr = _softmax(s)
        oh = _mm(pr, vh)                            # [Lq, hd]
        # accumulate per-head out-projection instead of concatenating heads
        contrib = _mm(oh, wo[h * hd:(h + 1) * hd, :])
        out = contrib if out is None else out + contrib
    return out + bo


def _enc_layer(x, lp, mask):
    h = _mha(x, x, lp["attn"], mask, NUM_HEADS)
    x = _layernorm(x + h, lp["ln1"])
    h = _gelu_exact(_linear(x, lp["fc1_w"][...], lp["fc1_b"][...]))
    h = _linear(h, lp["fc2_w"][...], lp["fc2_b"][...])
    return _layernorm(x + h, lp["ln2"])


def _dec_layer(x, enc_mem, lp, causal_mask):
    h = _mha(x, x, lp["self_attn"], causal_mask, NUM_HEADS)
    x = _layernorm(x + h, lp["ln1"])
    # TODO(synk): mask padded encoder-memory positions once genuinely padded
    # references are used (torch.masked_select already removed them upstream).
    h = _mha(x, enc_mem, lp["cross_attn"], None, NUM_HEADS)
    x = _layernorm(x + h, lp["ln_cross"])
    h = _gelu_exact(_linear(x, lp["fc1_w"][...], lp["fc1_b"][...]))
    h = _linear(h, lp["fc2_w"][...], lp["fc2_b"][...])
    return _layernorm(x + h, lp["ln2"])


# ----------------------------- fused forward kernel -------------------------


def _fused_forward_kernel(*refs, treedef, n_params, R, Lenc, T):
    P = jax.tree_util.tree_unflatten(treedef, refs[:n_params])
    enc_ids_ref, dec_ids_ref, labels_ref = refs[n_params:n_params + 3]
    logits_ref, loss_ref = refs[n_params + 3], refs[n_params + 4]

    shared = P["shared"][...]                                    # [V, D]
    N = R * Lenc

    # ---------- encoder: all references as one [R*Lenc, D] sequence ----------
    x = _embed(enc_ids_ref[...], shared, P["pos_enc"][...], P["ln_emb_enc"])

    # block-diagonal additive mask == independent per-reference self-attention
    i_idx = jax.lax.broadcasted_iota(jnp.int32, (N, R), 0)
    r_idx = jax.lax.broadcasted_iota(jnp.int32, (N, R), 1)
    rep = jnp.logical_and(i_idx >= r_idx * Lenc,
                          i_idx < r_idx * Lenc + Lenc).astype(jnp.float32)  # [N, R]
    same = jax.lax.dot_general(rep, rep, (((1,), (1,)), ((), ())),
                               preferred_element_type=jnp.float32)          # [N, N]
    enc_mask = (same - 1.0) * 1e9

    for lp in P["enc_layers"]:
        x = _enc_layer(x, lp, enc_mask)

    # ---------- reference-interacting CLS attention + sigmoid gate -----------
    r2 = jax.lax.broadcasted_iota(jnp.int32, (R, N), 0)
    i2 = jax.lax.broadcasted_iota(jnp.int32, (R, N), 1)
    sel = (i2 == r2 * Lenc).astype(jnp.float32)                             # [R, N]
    cls_feature = jnp.dot(sel, x, preferred_element_type=jnp.float32)       # [R, D]
    a = _mha(cls_feature, cls_feature, P["cls_attn"], None, 1)              # 1-head attn
    cls_logit = jnp.sum(a * P["fc_w"][...], axis=-1, keepdims=True) + P["fc_b"][...]
    cls_weight = jax.nn.sigmoid(cls_logit)                                  # [R, 1]
    row_scale = jnp.dot(rep, cls_weight, preferred_element_type=jnp.float32)  # [N, 1]
    enc_mem = x * row_scale          # cls_weight * encoded, flat [R*L, D] memory

    # ---------- decoder -------------------------------------------------------
    xd = _embed(dec_ids_ref[...], shared, P["pos_dec"][...], P["ln_emb_dec"])
    rows = jax.lax.broadcasted_iota(jnp.int32, (T, T), 0)
    cols = jax.lax.broadcasted_iota(jnp.int32, (T, T), 1)
    causal_mask = jnp.where(cols > rows, -1e9, 0.0).astype(jnp.float32)
    for lp in P["dec_layers"]:
        xd = _dec_layer(xd, enc_mem, lp, causal_mask)

    # ---------- tied LM head + cross entropy (fused, lane-dense V=128) -------
    logits = _mm_t(xd, shared) + P["final_logits_bias"][...]                # [T, V]
    logits_ref[...] = logits

    labels = labels_ref[...]                                                # [T, 1]
    m = jnp.max(logits, axis=-1, keepdims=True)
    lse = jnp.log(jnp.sum(jnp.exp(logits - m), axis=-1, keepdims=True)) + m
    vcols = jax.lax.broadcasted_iota(jnp.int32, (T, VOCAB), 1)
    picked = jnp.sum(jnp.where(vcols == labels, logits, 0.0),
                     axis=-1, keepdims=True)
    # TODO(synk): reference CE uses no ignore_index; pad labels are not excluded.
    nll = lse - picked                                                      # [T, 1]
    loss_ref[...] = jnp.sum(nll, axis=0, keepdims=True) * (1.0 / T)


# ------------------------------- wrapper glue --------------------------------


def _prepare_kernel_params(params, R, Lenc, T):
    """Re-layout weights for the fused kernel: QKV concat, [1,N] biases,
    pre-sliced/tiled positional rows.  Pure-JAX, tiny, done once per call."""
    def attn(p):
        return dict(
            wqkv=jnp.concatenate([p["wq"], p["wk"], p["wv"]], axis=1),
            bqkv=jnp.concatenate([p["bq"], p["bk"], p["bv"]]).reshape(1, -1),
            wo=p["wo"], bo=p["bo"].reshape(1, -1))

    def ln(p):
        return dict(g=p["g"].reshape(1, -1), b=p["b"].reshape(1, -1))

    def ffn(lp):
        return dict(fc1_w=lp["fc1_w"], fc1_b=lp["fc1_b"].reshape(1, -1),
                    fc2_w=lp["fc2_w"], fc2_b=lp["fc2_b"].reshape(1, -1))

    enc_layers = [dict(attn=attn(lp["self_attn"]), ln1=ln(lp["ln1"]),
                       ln2=ln(lp["ln2"]), **ffn(lp))
                  for lp in params["enc_layers"]]
    dec_layers = [dict(self_attn=attn(lp["self_attn"]), ln1=ln(lp["ln1"]),
                       cross_attn=attn(lp["cross_attn"]),
                       ln_cross=ln(lp["ln_cross"]), ln2=ln(lp["ln2"]), **ffn(lp))
                  for lp in params["dec_layers"]]
    pos = params["pos_emb"]
    return dict(
        shared=params["shared"],
        pos_enc=jnp.tile(pos[2:2 + Lenc], (R, 1)),     # BART learned-pos offset 2
        pos_dec=pos[2:2 + T],
        ln_emb_enc=ln(params["ln_emb_enc"]),
        ln_emb_dec=ln(params["ln_emb_dec"]),
        enc_layers=enc_layers,
        dec_layers=dec_layers,
        cls_attn=attn(params["cls_self_attn"]),        # Attention(d_model, 1)
        fc_w=params["fc_w"].reshape(1, D_MODEL),       # nn.Linear(d_model, 1)
        fc_b=params["fc_b"].reshape(1, 1),
        final_logits_bias=params["final_logits_bias"].reshape(1, -1),
    )


def forward(params, inputs, preambles, targets):
    """Mirrors ReferenceInteractingBartSummarizer.forward.  Returns (loss, lm_logits)."""
    # ---------------- _encode_multiple glue (truncate / repeat / concat) -----
    inputs = inputs[:MAX_NUM_REFS]
    R = inputs.shape[0]
    preamble = jnp.tile(preambles, (R, 1))
    encoder_input = jnp.concatenate([preamble, inputs], axis=1)[:, :MAX_POS]
    Lenc = encoder_input.shape[1]
    # selection_mask = encoder_input != PAD_TOKEN_ID ; demo inputs contain no
    # pad tokens, so torch.masked_select collapses to a static reshape.
    # TODO(synk): dynamic-shape masked_select for genuinely padded references.

    targets = targets[:, :MAX_LENGTH]
    decoder_input_ids = targets[:, :-1]
    lm_labels = targets[:, 1:]
    T = decoder_input_ids.shape[1]

    kp = _prepare_kernel_params(params, R, Lenc, T)
    leaves, treedef = jax.tree_util.tree_flatten(kp)

    enc_ids = encoder_input.reshape(R * Lenc, 1).astype(jnp.int32)
    dec_ids = decoder_input_ids.reshape(T, 1).astype(jnp.int32)
    labels = lm_labels.reshape(T, 1).astype(jnp.int32)

    kernel = functools.partial(_fused_forward_kernel, treedef=treedef,
                               n_params=len(leaves), R=R, Lenc=Lenc, T=T)
    # Single invocation (no grid): every weight / activation stays VMEM-resident.
    logits, loss = pl.pallas_call(
        kernel,
        out_shape=(jax.ShapeDtypeStruct((T, VOCAB), jnp.float32),
                   jax.ShapeDtypeStruct((1, 1), jnp.float32)),
        compiler_params=pltpu.CompilerParams(vmem_limit_bytes=32 * 1024 * 1024),
    )(*leaves, enc_ids, dec_ids, labels)
    return loss[0, 0], logits.reshape(1, T, VOCAB)


# ------------------------------ parameter init -------------------------------


def init_params(key):
    keys = iter(jax.random.split(key, 256))
    nrm = lambda shape: 0.02 * jax.random.normal(next(keys), shape, jnp.float32)
    zeros = lambda n: jnp.zeros((n,), jnp.float32)

    def mha_p():
        return dict(wq=nrm((D_MODEL, D_MODEL)), bq=zeros(D_MODEL),
                    wk=nrm((D_MODEL, D_MODEL)), bk=zeros(D_MODEL),
                    wv=nrm((D_MODEL, D_MODEL)), bv=zeros(D_MODEL),
                    wo=nrm((D_MODEL, D_MODEL)), bo=zeros(D_MODEL))

    def ln_p():
        return dict(g=jnp.ones((D_MODEL,), jnp.float32), b=zeros(D_MODEL))

    def enc_layer_p():
        return dict(self_attn=mha_p(), ln1=ln_p(),
                    fc1_w=nrm((D_MODEL, FFN_DIM)), fc1_b=zeros(FFN_DIM),
                    fc2_w=nrm((FFN_DIM, D_MODEL)), fc2_b=zeros(D_MODEL),
                    ln2=ln_p())

    def dec_layer_p():
        return dict(self_attn=mha_p(), ln1=ln_p(),
                    cross_attn=mha_p(), ln_cross=ln_p(),
                    fc1_w=nrm((D_MODEL, FFN_DIM)), fc1_b=zeros(FFN_DIM),
                    fc2_w=nrm((FFN_DIM, D_MODEL)), fc2_b=zeros(D_MODEL),
                    ln2=ln_p())

    return dict(
        shared=nrm((VOCAB, D_MODEL)),                  # tied embedding / LM head
        pos_emb=nrm((MAX_POS + 2, D_MODEL)),           # learned positions, offset 2
        ln_emb_enc=ln_p(), ln_emb_dec=ln_p(),
        enc_layers=[enc_layer_p() for _ in range(N_ENC_LAYERS)],
        dec_layers=[dec_layer_p() for _ in range(N_DEC_LAYERS)],
        # module-specific extras from __init__:
        cls_self_attn=mha_p(),                         # Attention(d_model, 1)
        fc_w=nrm((D_MODEL, 1)), fc_b=zeros(1),         # nn.Linear(d_model, 1)
        final_logits_bias=zeros(VOCAB),
    )


# ----------------------------------- main ------------------------------------

if __name__ == "__main__":
    key = jax.random.PRNGKey(0)
    pkey, k1, k2, k3 = jax.random.split(key, 4)
    params = init_params(pkey)

    NUM_REFS, REF_LEN, PRE_LEN, TGT_LEN = 2, 8, 4, 10
    # token ids in [2, VOCAB) so none equal PAD_TOKEN_ID (keeps masked_select static)
    inputs = jax.random.randint(k1, (NUM_REFS, REF_LEN), 2, VOCAB, dtype=jnp.int32)
    preambles = jax.random.randint(k2, (1, PRE_LEN), 2, VOCAB, dtype=jnp.int32)
    targets = jax.random.randint(k3, (1, TGT_LEN), 2, VOCAB, dtype=jnp.int32)

    loss, lm_logits = jax.jit(forward)(params, inputs, preambles, targets)
    loss, lm_logits = jax.block_until_ready((loss, lm_logits))

    assert lm_logits.shape == (1, TGT_LEN - 1, VOCAB), lm_logits.shape
    assert bool(jnp.isfinite(loss)), "Invalid loss!"
    print("KERNEL_OK")
</pallas_src>

<mosaic_0001>
module attributes {stable_mosaic.version = 11 : i64} {
  func.func @_fused_forward_kernel(%arg0: memref<1x32xf32, #tpu.memory_space<vmem>>, %arg1: memref<1x96xf32, #tpu.memory_space<vmem>>, %arg2: memref<32x32xf32, #tpu.memory_space<vmem>>, %arg3: memref<32x96xf32, #tpu.memory_space<vmem>>, %arg4: memref<1x32xf32, #tpu.memory_space<vmem>>, %arg5: memref<1x96xf32, #tpu.memory_space<vmem>>, %arg6: memref<32x32xf32, #tpu.memory_space<vmem>>, %arg7: memref<32x96xf32, #tpu.memory_space<vmem>>, %arg8: memref<1x64xf32, #tpu.memory_space<vmem>>, %arg9: memref<32x64xf32, #tpu.memory_space<vmem>>, %arg10: memref<1x32xf32, #tpu.memory_space<vmem>>, %arg11: memref<64x32xf32, #tpu.memory_space<vmem>>, %arg12: memref<1x32xf32, #tpu.memory_space<vmem>>, %arg13: memref<1x32xf32, #tpu.memory_space<vmem>>, %arg14: memref<1x32xf32, #tpu.memory_space<vmem>>, %arg15: memref<1x32xf32, #tpu.memory_space<vmem>>, %arg16: memref<1x32xf32, #tpu.memory_space<vmem>>, %arg17: memref<1x32xf32, #tpu.memory_space<vmem>>, %arg18: memref<1x32xf32, #tpu.memory_space<vmem>>, %arg19: memref<1x96xf32, #tpu.memory_space<vmem>>, %arg20: memref<32x32xf32, #tpu.memory_space<vmem>>, %arg21: memref<32x96xf32, #tpu.memory_space<vmem>>, %arg22: memref<1x32xf32, #tpu.memory_space<vmem>>, %arg23: memref<1x96xf32, #tpu.memory_space<vmem>>, %arg24: memref<32x32xf32, #tpu.memory_space<vmem>>, %arg25: memref<32x96xf32, #tpu.memory_space<vmem>>, %arg26: memref<1x64xf32, #tpu.memory_space<vmem>>, %arg27: memref<32x64xf32, #tpu.memory_space<vmem>>, %arg28: memref<1x32xf32, #tpu.memory_space<vmem>>, %arg29: memref<64x32xf32, #tpu.memory_space<vmem>>, %arg30: memref<1x32xf32, #tpu.memory_space<vmem>>, %arg31: memref<1x32xf32, #tpu.memory_space<vmem>>, %arg32: memref<1x32xf32, #tpu.memory_space<vmem>>, %arg33: memref<1x32xf32, #tpu.memory_space<vmem>>, %arg34: memref<1x1xf32, #tpu.memory_space<vmem>>, %arg35: memref<1x32xf32, #tpu.memory_space<vmem>>, %arg36: memref<1x128xf32, #tpu.memory_space<vmem>>, %arg37: memref<1x32xf32, #tpu.memory_space<vmem>>, %arg38: memref<1x32xf32, #tpu.memory_space<vmem>>, %arg39: memref<1x32xf32, #tpu.memory_space<vmem>>, %arg40: memref<1x32xf32, #tpu.memory_space<vmem>>, %arg41: memref<9x32xf32, #tpu.memory_space<vmem>>, %arg42: memref<24x32xf32, #tpu.memory_space<vmem>>, %arg43: memref<128x32xf32, #tpu.memory_space<vmem>>, %arg44: memref<24x1xi32, #tpu.memory_space<vmem>>, %arg45: memref<9x1xi32, #tpu.memory_space<vmem>>, %arg46: memref<9x1xi32, #tpu.memory_space<vmem>>, %arg47: memref<9x128xf32, #tpu.memory_space<vmem>>, %arg48: memref<1x1xf32, #tpu.memory_space<vmem>>) attributes {dimension_semantics = [], scalar_prefetch = 0 : i64, scratch_operands = 0 : i64, tpu.core_type = #tpu.core_type<tc>} {
    %c0 = arith.constant 0 : index
    %c0_0 = arith.constant 0 : index
    %0 = vector.load %arg43[%c0, %c0_0] : memref<128x32xf32, #tpu.memory_space<vmem>>, vector<128x32xf32>
    %c0_1 = arith.constant 0 : index
    %c0_2 = arith.constant 0 : index
    %1 = vector.load %arg44[%c0_1, %c0_2] : memref<24x1xi32, #tpu.memory_space<vmem>>, vector<24x1xi32>
    %c0_3 = arith.constant 0 : index
    %c0_4 = arith.constant 0 : index
    %2 = vector.load %arg42[%c0_3, %c0_4] : memref<24x32xf32, #tpu.memory_space<vmem>>, vector<24x32xf32>
    %3 = tpu.iota {dimensions = array<i32: 1>} : vector<24x128xi32>
    %4 = vector.broadcast %1 : vector<24x1xi32> to vector<24x128xi32>
    %5 = arith.cmpi eq, %3, %4 : vector<24x128xi32>
    %6 = arith.extui %5 : vector<24x128xi1> to vector<24x128xi32>
    %7 = arith.sitofp %6 : vector<24x128xi32> to vector<24x128xf32>
    %8 = arith.truncf %7 : vector<24x128xf32> to vector<24x128xbf16>
    %9 = arith.truncf %0 : vector<128x32xf32> to vector<128x32xbf16>
    %cst = arith.constant dense<0.000000e+00> : vector<24x32xf32>
    %10 = tpu.matmul %8, %9, %cst {dimension_numbers = #tpu.dot_dimension_numbers<[1], [0], [0], [1], [0, 0, 1, 1], [], []>} : vector<24x128xbf16>, vector<128x32xbf16>, vector<24x32xf32> -> vector<24x32xf32>
    %11 = arith.addf %10, %2 : vector<24x32xf32>
    %c0_5 = arith.constant 0 : index
    %c0_6 = arith.constant 0 : index
    %12 = vector.load %arg40[%c0_5, %c0_6] : memref<1x32xf32, #tpu.memory_space<vmem>>, vector<1x32xf32>
    %c0_7 = arith.constant 0 : index
    %c0_8 = arith.constant 0 : index
    %13 = vector.load %arg39[%c0_7, %c0_8] : memref<1x32xf32, #tpu.memory_space<vmem>>, vector<1x32xf32>
    %cst_9 = arith.constant dense<0.000000e+00> : vector<24xf32>
    %14 = vector.multi_reduction <add>, %11, %cst_9 [1] : vector<24x32xf32> to vector<24xf32>
    %15 = vector.shape_cast %14 : vector<24xf32> to vector<24x1xf32>
    %cst_10 = arith.constant 3.200000e+01 : f32
    %16 = vector.broadcast %cst_10 : f32 to vector<24x1xf32>
    %17 = arith.divf %15, %16 : vector<24x1xf32>
    %18 = vector.broadcast %17 : vector<24x1xf32> to vector<24x32xf32>
    %19 = arith.subf %11, %18 : vector<24x32xf32>
    %20 = arith.mulf %19, %19 : vector<24x32xf32>
    %cst_11 = arith.constant dense<0.000000e+00> : vector<24xf32>
    %21 = vector.multi_reduction <add>, %20, %cst_11 [1] : vector<24x32xf32> to vector<24xf32>
    %22 = vector.shape_cast %21 : vector<24xf32> to vector<24x1xf32>
    %cst_12 = arith.constant 3.200000e+01 : f32
    %23 = vector.broadcast %cst_12 : f32 to vector<24x1xf32>
    %24 = arith.divf %22, %23 : vector<24x1xf32>
    %25 = vector.broadcast %17 : vector<24x1xf32> to vector<24x32xf32>
    %26 = arith.subf %11, %25 : vector<24x32xf32>
    %cst_13 = arith.constant 9.99999974E-6 : f32
    %27 = vector.broadcast %cst_13 : f32 to vector<24x1xf32>
    %28 = arith.addf %24, %27 : vector<24x1xf32>
    %29 = math.rsqrt %28 : vector<24x1xf32>
    %30 = vector.broadcast %29 : vector<24x1xf32> to vector<24x32xf32>
    %31 = arith.mulf %26, %30 : vector<24x32xf32>
    %32 = vector.broadcast %12 : vector<1x32xf32> to vector<24x32xf32>
    %33 = arith.mulf %31, %32 : vector<24x32xf32>
    %34 = vector.broadcast %13 : vector<1x32xf32> to vector<24x32xf32>
    %35 = arith.addf %33, %34 : vector<24x32xf32>
    %36 = tpu.iota {dimensions = array<i32: 0>} : vector<24x2xi32>
    %37 = tpu.iota {dimensions = array<i32: 1>} : vector<24x2xi32>
    %c12_i32 = arith.constant 12 : i32
    %38 = vector.broadcast %c12_i32 : i32 to vector<24x2xi32>
    %39 = arith.muli %37, %38 : vector<24x2xi32>
    %40 = arith.cmpi sge, %36, %39 : vector<24x2xi32>
    %c12_i32_14 = arith.constant 12 : i32
    %41 = vector.broadcast %c12_i32_14 : i32 to vector<24x2xi32>
    %42 = arith.muli %37, %41 : vector<24x2xi32>
    %c12_i32_15 = arith.constant 12 : i32
    %43 = vector.broadcast %c12_i32_15 : i32 to vector<24x2xi32>
    %44 = arith.addi %42, %43 : vector<24x2xi32>
    %45 = arith.cmpi slt, %36, %44 : vector<24x2xi32>
    %46 = arith.andi %40, %45 : vector<24x2xi1>
    %47 = arith.extui %46 : vector<24x2xi1> to vector<24x2xi32>
    %48 = arith.sitofp %47 : vector<24x2xi32> to vector<24x2xf32>
    %cst_16 = arith.constant dense<0.000000e+00> : vector<24x24xf32>
    %49 = tpu.matmul %48, %48, %cst_16 {dimension_numbers = #tpu.dot_dimension_numbers<[1], [1], [0], [0], [0, 0, 1, 0], [], []>} : vector<24x2xf32>, vector<24x2xf32>, vector<24x24xf32> -> vector<24x24xf32>
    %cst_17 = arith.constant 1.000000e+00 : f32
    %50 = vector.broadcast %cst_17 : f32 to vector<24x24xf32>
    %51 = arith.subf %49, %50 : vector<24x24xf32>
    %cst_18 = arith.constant 1.000000e+09 : f32
    %52 = vector.broadcast %cst_18 : f32 to vector<24x24xf32>
    %53 = arith.mulf %51, %52 : vector<24x24xf32>
    %c0_19 = arith.constant 0 : index
    %c0_20 = arith.constant 0 : index
    %54 = vector.load %arg25[%c0_19, %c0_20] : memref<32x96xf32, #tpu.memory_space<vmem>>, vector<32x96xf32>
    %c0_21 = arith.constant 0 : index
    %c0_22 = arith.constant 0 : index
    %55 = vector.load %arg23[%c0_21, %c0_22] : memref<1x96xf32, #tpu.memory_space<vmem>>, vector<1x96xf32>
    %c0_23 = arith.constant 0 : index
    %c0_24 = arith.constant 0 : index
    %56 = vector.load %arg24[%c0_23, %c0_24] : memref<32x32xf32, #tpu.memory_space<vmem>>, vector<32x32xf32>
    %c0_25 = arith.constant 0 : index
    %c0_26 = arith.constant 0 : index
    %57 = vector.load %arg22[%c0_25, %c0_26] : memref<1x32xf32, #tpu.memory_space<vmem>>, vector<1x32xf32>
    %58 = arith.truncf %35 : vector<24x32xf32> to vector<24x32xbf16>
    %59 = arith.truncf %54 : vector<32x96xf32> to vector<32x96xbf16>
    %cst_27 = arith.constant dense<0.000000e+00> : vector<24x96xf32>
    %60 = tpu.matmul %58, %59, %cst_27 {dimension_numbers = #tpu.dot_dimension_numbers<[1], [0], [0], [1], [0, 0, 1, 1], [], []>} : vector<24x32xbf16>, vector<32x96xbf16>, vector<24x96xf32> -> vector<24x96xf32>
    %61 = vector.broadcast %55 : vector<1x96xf32> to vector<24x96xf32>
    %62 = arith.addf %60, %61 : vector<24x96xf32>
    %63 = vector.extract_strided_slice %62 {offsets = [0, 0], sizes = [24, 32], strides = [1, 1]} : vector<24x96xf32> to vector<24x32xf32>
    %64 = vector.extract_strided_slice %62 {offsets = [0, 32], sizes = [24, 32], strides = [1, 1]} : vector<24x96xf32> to vector<24x32xf32>
    %65 = vector.extract_strided_slice %62 {offsets = [0, 64], sizes = [24, 32], strides = [1, 1]} : vector<24x96xf32> to vector<24x32xf32>
    %66 = vector.extract_strided_slice %63 {offsets = [0, 0], sizes = [24, 16], strides = [1, 1]} : vector<24x32xf32> to vector<24x16xf32>
    %cst_28 = arith.constant 2.500000e-01 : f32
    %67 = vector.broadcast %cst_28 : f32 to vector<24x16xf32>
    %68 = arith.mulf %66, %67 : vector<24x16xf32>
    %69 = vector.extract_strided_slice %64 {offsets = [0, 0], sizes = [24, 16], strides = [1, 1]} : vector<24x32xf32> to vector<24x16xf32>
    %70 = vector.extract_strided_slice %65 {offsets = [0, 0], sizes = [24, 16], strides = [1, 1]} : vector<24x32xf32> to vector<24x16xf32>
    %71 = arith.truncf %68 : vector<24x16xf32> to vector<24x16xbf16>
    %72 = arith.truncf %69 : vector<24x16xf32> to vector<24x16xbf16>
    %cst_29 = arith.constant dense<0.000000e+00> : vector<24x24xf32>
    %73 = tpu.matmul %71, %72, %cst_29 {dimension_numbers = #tpu.dot_dimension_numbers<[1], [1], [0], [0], [0, 0, 1, 0], [], []>} : vector<24x16xbf16>, vector<24x16xbf16>, vector<24x24xf32> -> vector<24x24xf32>
    %74 = arith.addf %73, %53 : vector<24x24xf32>
    %cst_30 = arith.constant dense<0xFF800000> : vector<24xf32>
    %75 = vector.multi_reduction <maximumf>, %74, %cst_30 [1] : vector<24x24xf32> to vector<24xf32>
    %76 = vector.shape_cast %75 : vector<24xf32> to vector<24x1xf32>
    %77 = vector.broadcast %76 : vector<24x1xf32> to vector<24x24xf32>
    %78 = arith.subf %74, %77 : vector<24x24xf32>
    %79 = math.exp %78 : vector<24x24xf32>
    %cst_31 = arith.constant dense<0.000000e+00> : vector<24xf32>
    %80 = vector.multi_reduction <add>, %79, %cst_31 [1] : vector<24x24xf32> to vector<24xf32>
    %81 = vector.shape_cast %80 : vector<24xf32> to vector<24x1xf32>
    %82 = tpu.reciprocal %81 {approx = true} : vector<24x1xf32> -> vector<24x1xf32>
    %83 = vector.broadcast %82 : vector<24x1xf32> to vector<24x24xf32>
    %84 = arith.mulf %79, %83 : vector<24x24xf32>
    %85 = arith.truncf %84 : vector<24x24xf32> to vector<24x24xbf16>
    %86 = arith.truncf %70 : vector<24x16xf32> to vector<24x16xbf16>
    %cst_32 = arith.constant dense<0.000000e+00> : vector<24x16xf32>
    %87 = tpu.matmul %85, %86, %cst_32 {dimension_numbers = #tpu.dot_dimension_numbers<[1], [0], [0], [1], [0, 0, 1, 1], [], []>} : vector<24x24xbf16>, vector<24x16xbf16>, vector<24x16xf32> -> vector<24x16xf32>
    %88 = vector.extract_strided_slice %56 {offsets = [0, 0], sizes = [16, 32], strides = [1, 1]} : vector<32x32xf32> to vector<16x32xf32>
    %89 = arith.truncf %87 : vector<24x16xf32> to vector<24x16xbf16>
    %90 = arith.truncf %88 : vector<16x32xf32> to vector<16x32xbf16>
    %cst_33 = arith.constant dense<0.000000e+00> : vector<24x32xf32>
    %91 = tpu.matmul %89, %90, %cst_33 {dimension_numbers = #tpu.dot_dimension_numbers<[1], [0], [0], [1], [0, 0, 1, 1], [], []>} : vector<24x16xbf16>, vector<16x32xbf16>, vector<24x32xf32> -> vector<24x32xf32>
    %92 = vector.extract_strided_slice %63 {offsets = [0, 16], sizes = [24, 16], strides = [1, 1]} : vector<24x32xf32> to vector<24x16xf32>
    %cst_34 = arith.constant 2.500000e-01 : f32
    %93 = vector.broadcast %cst_34 : f32 to vector<24x16xf32>
    %94 = arith.mulf %92, %93 : vector<24x16xf32>
    %95 = vector.extract_strided_slice %64 {offsets = [0, 16], sizes = [24, 16], strides = [1, 1]} : vector<24x32xf32> to vector<24x16xf32>
    %96 = vector.extract_strided_slice %65 {offsets = [0, 16], sizes = [24, 16], strides = [1, 1]} : vector<24x32xf32> to vector<24x16xf32>
    %97 = arith.truncf %94 : vector<24x16xf32> to vector<24x16xbf16>
    %98 = arith.truncf %95 : vector<24x16xf32> to vector<24x16xbf16>
    %cst_35 = arith.constant dense<0.000000e+00> : vector<24x24xf32>
    %99 = tpu.matmul %97, %98, %cst_35 {dimension_numbers = #tpu.dot_dimension_numbers<[1], [1], [0], [0], [0, 0, 1, 0], [], []>} : vector<24x16xbf16>, vector<24x16xbf16>, vector<24x24xf32> -> vector<24x24xf32>
    %100 = arith.addf %99, %53 : vector<24x24xf32>
    %cst_36 = arith.constant dense<0xFF800000> : vector<24xf32>
    %101 = vector.multi_reduction <maximumf>, %100, %cst_36 [1] : vector<24x24xf32> to vector<24xf32>
    %102 = vector.shape_cast %101 : vector<24xf32> to vector<24x1xf32>
    %103 = vector.broadcast %102 : vector<24x1xf32> to vector<24x24xf32>
    %104 = arith.subf %100, %103 : vector<24x24xf32>
    %105 = math.exp %104 : vector<24x24xf32>
    %cst_37 = arith.constant dense<0.000000e+00> : vector<24xf32>
    %106 = vector.multi_reduction <add>, %105, %cst_37 [1] : vector<24x24xf32> to vector<24xf32>
    %107 = vector.shape_cast %106 : vector<24xf32> to vector<24x1xf32>
    %108 = tpu.reciprocal %107 {approx = true} : vector<24x1xf32> -> vector<24x1xf32>
    %109 = vector.broadcast %108 : vector<24x1xf32> to vector<24x24xf32>
    %110 = arith.mulf %105, %109 : vector<24x24xf32>
    %111 = arith.truncf %110 : vector<24x24xf32> to vector<24x24xbf16>
    %112 = arith.truncf %96 : vector<24x16xf32> to vector<24x16xbf16>
    %cst_38 = arith.constant dense<0.000000e+00> : vector<24x16xf32>
    %113 = tpu.matmul %111, %112, %cst_38 {dimension_numbers = #tpu.dot_dimension_numbers<[1], [0], [0], [1], [0, 0, 1, 1], [], []>} : vector<24x24xbf16>, vector<24x16xbf16>, vector<24x16xf32> -> vector<24x16xf32>
    %114 = vector.extract_strided_slice %56 {offsets = [16, 0], sizes = [16, 32], strides = [1, 1]} : vector<32x32xf32> to vector<16x32xf32>
    %115 = arith.truncf %113 : vector<24x16xf32> to vector<24x16xbf16>
    %116 = arith.truncf %114 : vector<16x32xf32> to vector<16x32xbf16>
    %cst_39 = arith.constant dense<0.000000e+00> : vector<24x32xf32>
    %117 = tpu.matmul %115, %116, %cst_39 {dimension_numbers = #tpu.dot_dimension_numbers<[1], [0], [0], [1], [0, 0, 1, 1], [], []>} : vector<24x16xbf16>, vector<16x32xbf16>, vector<24x32xf32> -> vector<24x32xf32>
    %118 = arith.addf %91, %117 : vector<24x32xf32>
    %119 = vector.broadcast %57 : vector<1x32xf32> to vector<24x32xf32>
    %120 = arith.addf %118, %119 : vector<24x32xf32>
    %121 = arith.addf %35, %120 : vector<24x32xf32>
    %c0_40 = arith.constant 0 : index
    %c0_41 = arith.constant 0 : index
    %122 = vector.load %arg31[%c0_40, %c0_41] : memref<1x32xf32, #tpu.memory_space<vmem>>, vector<1x32xf32>
    %c0_42 = arith.constant 0 : index
    %c0_43 = arith.constant 0 : index
    %123 = vector.load %arg30[%c0_42, %c0_43] : memref<1x32xf32, #tpu.memory_space<vmem>>, vector<1x32xf32>
    %cst_44 = arith.constant dense<0.000000e+00> : vector<24xf32>
    %124 = vector.multi_reduction <add>, %121, %cst_44 [1] : vector<24x32xf32> to vector<24xf32>
    %125 = vector.shape_cast %124 : vector<24xf32> to vector<24x1xf32>
    %cst_45 = arith.constant 3.200000e+01 : f32
    %126 = vector.broadcast %cst_45 : f32 to vector<24x1xf32>
    %127 = arith.divf %125, %126 : vector<24x1xf32>
    %128 = vector.broadcast %127 : vector<24x1xf32> to vector<24x32xf32>
    %129 = arith.subf %121, %128 : vector<24x32xf32>
    %130 = arith.mulf %129, %129 : vector<24x32xf32>
    %cst_46 = arith.constant dense<0.000000e+00> : vector<24xf32>
    %131 = vector.multi_reduction <add>, %130, %cst_46 [1] : vector<24x32xf32> to vector<24xf32>
    %132 = vector.shape_cast %131 : vector<24xf32> to vector<24x1xf32>
    %cst_47 = arith.constant 3.200000e+01 : f32
    %133 = vector.broadcast %cst_47 : f32 to vector<24x1xf32>
    %134 = arith.divf %132, %133 : vector<24x1xf32>
    %135 = vector.broadcast %127 : vector<24x1xf32> to vector<24x32xf32>
    %136 = arith.subf %121, %135 : vector<24x32xf32>
    %cst_48 = arith.constant 9.99999974E-6 : f32
    %137 = vector.broadcast %cst_48 : f32 to vector<24x1xf32>
    %138 = arith.addf %134, %137 : vector<24x1xf32>
    %139 = math.rsqrt %138 : vector<24x1xf32>
    %140 = vector.broadcast %139 : vector<24x1xf32> to vector<24x32xf32>
    %141 = arith.mulf %136, %140 : vector<24x32xf32>
    %142 = vector.broadcast %122 : vector<1x32xf32> to vector<24x32xf32>
    %143 = arith.mulf %141, %142 : vector<24x32xf32>
    %144 = vector.broadcast %123 : vector<1x32xf32> to vector<24x32xf32>
    %145 = arith.addf %143, %144 : vector<24x32xf32>
    %c0_49 = arith.constant 0 : index
    %c0_50 = arith.constant 0 : index
    %146 = vector.load %arg27[%c0_49, %c0_50] : memref<32x64xf32, #tpu.memory_space<vmem>>, vector<32x64xf32>
    %c0_51 = arith.constant 0 : index
    %c0_52 = arith.constant 0 : index
    %147 = vector.load %arg26[%c0_51, %c0_52] : memref<1x64xf32, #tpu.memory_space<vmem>>, vector<1x64xf32>
    %148 = arith.truncf %145 : vector<24x32xf32> to vector<24x32xbf16>
    %149 = arith.truncf %146 : vector<32x64xf32> to vector<32x64xbf16>
    %cst_53 = arith.constant dense<0.000000e+00> : vector<24x64xf32>
    %150 = tpu.matmul %148, %149, %cst_53 {dimension_numbers = #tpu.dot_dimension_numbers<[1], [0], [0], [1], [0, 0, 1, 1], [], []>} : vector<24x32xbf16>, vector<32x64xbf16>, vector<24x64xf32> -> vector<24x64xf32>
    %151 = vector.broadcast %147 : vector<1x64xf32> to vector<24x64xf32>
    %152 = arith.addf %150, %151 : vector<24x64xf32>
    %cst_54 = arith.constant 0.707106769 : f32
    %153 = vector.broadcast %cst_54 : f32 to vector<24x64xf32>
    %154 = arith.mulf %152, %153 : vector<24x64xf32>
    %155 = math.absf %154 : vector<24x64xf32>
    %cst_55 = arith.constant 0.327591091 : f32
    %156 = vector.broadcast %cst_55 : f32 to vector<24x64xf32>
    %157 = arith.mulf %156, %155 : vector<24x64xf32>
    %cst_56 = arith.constant 1.000000e+00 : f32
    %158 = vector.broadcast %cst_56 : f32 to vector<24x64xf32>
    %159 = arith.addf %158, %157 : vector<24x64xf32>
    %cst_57 = arith.constant 1.000000e+00 : f32
    %160 = vector.broadcast %cst_57 : f32 to vector<24x64xf32>
    %161 = arith.divf %160, %159 : vector<24x64xf32>
    %cst_58 = arith.constant 1.06140542 : f32
    %162 = vector.broadcast %cst_58 : f32 to vector<24x64xf32>
    %163 = arith.mulf %161, %162 : vector<24x64xf32>
    %cst_59 = arith.constant -1.45315206 : f32
    %164 = vector.broadcast %cst_59 : f32 to vector<24x64xf32>
    %165 = arith.addf %164, %163 : vector<24x64xf32>
    %166 = arith.mulf %161, %165 : vector<24x64xf32>
    %cst_60 = arith.constant 1.42141378 : f32
    %167 = vector.broadcast %cst_60 : f32 to vector<24x64xf32>
    %168 = arith.addf %167, %166 : vector<24x64xf32>
    %169 = arith.mulf %161, %168 : vector<24x64xf32>
    %cst_61 = arith.constant -0.284496725 : f32
    %170 = vector.broadcast %cst_61 : f32 to vector<24x64xf32>
    %171 = arith.addf %170, %169 : vector<24x64xf32>
    %172 = arith.mulf %161, %171 : vector<24x64xf32>
    %cst_62 = arith.constant 0.254829586 : f32
    %173 = vector.broadcast %cst_62 : f32 to vector<24x64xf32>
    %174 = arith.addf %173, %172 : vector<24x64xf32>
    %175 = arith.mulf %161, %174 : vector<24x64xf32>
    %cst_63 = arith.constant 0.000000e+00 : f32
    %176 = vector.broadcast %cst_63 : f32 to vector<24x64xf32>
    %177 = arith.subf %176, %155 : vector<24x64xf32>
    %178 = arith.mulf %177, %155 : vector<24x64xf32>
    %179 = math.exp %178 : vector<24x64xf32>
    %180 = arith.mulf %175, %179 : vector<24x64xf32>
    %cst_64 = arith.constant 1.000000e+00 : f32
    %181 = vector.broadcast %cst_64 : f32 to vector<24x64xf32>
    %182 = arith.subf %181, %180 : vector<24x64xf32>
    %cst_65 = arith.constant 0.000000e+00 : f32
    %183 = vector.broadcast %cst_65 : f32 to vector<24x64xf32>
    %184 = arith.cmpf oge, %154, %183 : vector<24x64xf32>
    %cst_66 = arith.constant 0.000000e+00 : f32
    %185 = vector.broadcast %cst_66 : f32 to vector<24x64xf32>
    %186 = arith.subf %185, %182 : vector<24x64xf32>
    %187 = arith.select %184, %182, %186 : vector<24x64xi1>, vector<24x64xf32>
    %cst_67 = arith.constant 5.000000e-01 : f32
    %188 = vector.broadcast %cst_67 : f32 to vector<24x64xf32>
    %189 = arith.mulf %188, %152 : vector<24x64xf32>
    %cst_68 = arith.constant 1.000000e+00 : f32
    %190 = vector.broadcast %cst_68 : f32 to vector<24x64xf32>
    %191 = arith.addf %190, %187 : vector<24x64xf32>
    %192 = arith.mulf %189, %191 : vector<24x64xf32>
    %c0_69 = arith.constant 0 : index
    %c0_70 = arith.constant 0 : index
    %193 = vector.load %arg29[%c0_69, %c0_70] : memref<64x32xf32, #tpu.memory_space<vmem>>, vector<64x32xf32>
    %c0_71 = arith.constant 0 : index
    %c0_72 = arith.constant 0 : index
    %194 = vector.load %arg28[%c0_71, %c0_72] : memref<1x32xf32, #tpu.memory_space<vmem>>, vector<1x32xf32>
    %195 = arith.truncf %192 : vector<24x64xf32> to vector<24x64xbf16>
    %196 = arith.truncf %193 : vector<64x32xf32> to vector<64x32xbf16>
    %cst_73 = arith.constant dense<0.000000e+00> : vector<24x32xf32>
    %197 = tpu.matmul %195, %196, %cst_73 {dimension_numbers = #tpu.dot_dimension_numbers<[1], [0], [0], [1], [0, 0, 1, 1], [], []>} : vector<24x64xbf16>, vector<64x32xbf16>, vector<24x32xf32> -> vector<24x32xf32>
    %198 = vector.broadcast %194 : vector<1x32xf32> to vector<24x32xf32>
    %199 = arith.addf %197, %198 : vector<24x32xf32>
    %200 = arith.addf %145, %199 : vector<24x32xf32>
    %c0_74 = arith.constant 0 : index
    %c0_75 = arith.constant 0 : index
    %201 = vector.load %arg33[%c0_74, %c0_75] : memref<1x32xf32, #tpu.memory_space<vmem>>, vector<1x32xf32>
    %c0_76 = arith.constant 0 : index
    %c0_77 = arith.constant 0 : index
    %202 = vector.load %arg32[%c0_76, %c0_77] : memref<1x32xf32, #tpu.memory_space<vmem>>, vector<1x32xf32>
    %cst_78 = arith.constant dense<0.000000e+00> : vector<24xf32>
    %203 = vector.multi_reduction <add>, %200, %cst_78 [1] : vector<24x32xf32> to vector<24xf32>
    %204 = vector.shape_cast %203 : vector<24xf32> to vector<24x1xf32>
    %cst_79 = arith.constant 3.200000e+01 : f32
    %205 = vector.broadcast %cst_79 : f32 to vector<24x1xf32>
    %206 = arith.divf %204, %205 : vector<24x1xf32>
    %207 = vector.broadcast %206 : vector<24x1xf32> to vector<24x32xf32>
    %208 = arith.subf %200, %207 : vector<24x32xf32>
    %209 = arith.mulf %208, %208 : vector<24x32xf32>
    %cst_80 = arith.constant dense<0.000000e+00> : vector<24xf32>
    %210 = vector.multi_reduction <add>, %209, %cst_80 [1] : vector<24x32xf32> to vector<24xf32>
    %211 = vector.shape_cast %210 : vector<24xf32> to vector<24x1xf32>
    %cst_81 = arith.constant 3.200000e+01 : f32
    %212 = vector.broadcast %cst_81 : f32 to vector<24x1xf32>
    %213 = arith.divf %211, %212 : vector<24x1xf32>
    %214 = vector.broadcast %206 : vector<24x1xf32> to vector<24x32xf32>
    %215 = arith.subf %200, %214 : vector<24x32xf32>
    %cst_82 = arith.constant 9.99999974E-6 : f32
    %216 = vector.broadcast %cst_82 : f32 to vector<24x1xf32>
    %217 = arith.addf %213, %216 : vector<24x1xf32>
    %218 = math.rsqrt %217 : vector<24x1xf32>
    %219 = vector.broadcast %218 : vector<24x1xf32> to vector<24x32xf32>
    %220 = arith.mulf %215, %219 : vector<24x32xf32>
    %221 = vector.broadcast %201 : vector<1x32xf32> to vector<24x32xf32>
    %222 = arith.mulf %220, %221 : vector<24x32xf32>
    %223 = vector.broadcast %202 : vector<1x32xf32> to vector<24x32xf32>
    %224 = arith.addf %222, %223 : vector<24x32xf32>
    %225 = tpu.iota {dimensions = array<i32: 0>} : vector<2x24xi32>
    %226 = tpu.iota {dimensions = array<i32: 1>} : vector<2x24xi32>
    %c12_i32_83 = arith.constant 12 : i32
    %227 = vector.broadcast %c12_i32_83 : i32 to vector<2x24xi32>
    %228 = arith.muli %225, %227 : vector<2x24xi32>
    %229 = arith.cmpi eq, %226, %228 : vector<2x24xi32>
    %230 = arith.extui %229 : vector<2x24xi1> to vector<2x24xi32>
    %231 = arith.sitofp %230 : vector<2x24xi32> to vector<2x24xf32>
    %cst_84 = arith.constant dense<0.000000e+00> : vector<2x32xf32>
    %232 = tpu.matmul %231, %224, %cst_84 {dimension_numbers = #tpu.dot_dimension_numbers<[1], [0], [0], [1], [0, 0, 1, 1], [], []>} : vector<2x24xf32>, vector<24x32xf32>, vector<2x32xf32> -> vector<2x32xf32>
    %c0_85 = arith.constant 0 : index
    %c0_86 = arith.constant 0 : index
    %233 = vector.load %arg3[%c0_85, %c0_86] : memref<32x96xf32, #tpu.memory_space<vmem>>, vector<32x96xf32>
    %c0_87 = arith.constant 0 : index
    %c0_88 = arith.constant 0 : index
    %234 = vector.load %arg1[%c0_87, %c0_88] : memref<1x96xf32, #tpu.memory_space<vmem>>, vector<1x96xf32>
    %c0_89 = arith.constant 0 : index
    %c0_90 = arith.constant 0 : index
    %235 = vector.load %arg2[%c0_89, %c0_90] : memref<32x32xf32, #tpu.memory_space<vmem>>, vector<32x32xf32>
    %c0_91 = arith.constant 0 : index
    %c0_92 = arith.constant 0 : index
    %236 = vector.load %arg0[%c0_91, %c0_92] : memref<1x32xf32, #tpu.memory_space<vmem>>, vector<1x32xf32>
    %237 = arith.truncf %232 : vector<2x32xf32> to vector<2x32xbf16>
    %238 = arith.truncf %233 : vector<32x96xf32> to vector<32x96xbf16>
    %cst_93 = arith.constant dense<0.000000e+00> : vector<2x96xf32>
    %239 = tpu.matmul %237, %238, %cst_93 {dimension_numbers = #tpu.dot_dimension_numbers<[1], [0], [0], [1], [0, 0, 1, 1], [], []>} : vector<2x32xbf16>, vector<32x96xbf16>, vector<2x96xf32> -> vector<2x96xf32>
    %240 = vector.broadcast %234 : vector<1x96xf32> to vector<2x96xf32>
    %241 = arith.addf %239, %240 : vector<2x96xf32>
    %242 = vector.extract_strided_slice %241 {offsets = [0, 0], sizes = [2, 32], strides = [1, 1]} : vector<2x96xf32> to vector<2x32xf32>
    %243 = vector.extract_strided_slice %241 {offsets = [0, 32], sizes = [2, 32], strides = [1, 1]} : vector<2x96xf32> to vector<2x32xf32>
    %244 = vector.extract_strided_slice %241 {offsets = [0, 64], sizes = [2, 32], strides = [1, 1]} : vector<2x96xf32> to vector<2x32xf32>
    %cst_94 = arith.constant 0.176776692 : f32
    %245 = vector.broadcast %cst_94 : f32 to vector<2x32xf32>
    %246 = arith.mulf %242, %245 : vector<2x32xf32>
    %247 = arith.truncf %246 : vector<2x32xf32> to vector<2x32xbf16>
    %248 = arith.truncf %243 : vector<2x32xf32> to vector<2x32xbf16>
    %cst_95 = arith.constant dense<0.000000e+00> : vector<2x2xf32>
    %249 = tpu.matmul %247, %248, %cst_95 {dimension_numbers = #tpu.dot_dimension_numbers<[1], [1], [0], [0], [0, 0, 1, 0], [], []>} : vector<2x32xbf16>, vector<2x32xbf16>, vector<2x2xf32> -> vector<2x2xf32>
    %cst_96 = arith.constant dense<0xFF800000> : vector<2xf32>
    %250 = vector.multi_reduction <maximumf>, %249, %cst_96 [1] : vector<2x2xf32> to vector<2xf32>
    %251 = vector.shape_cast %250 : vector<2xf32> to vector<2x1xf32>
    %252 = vector.broadcast %251 : vector<2x1xf32> to vector<2x2xf32>
    %253 = arith.subf %249, %252 : vector<2x2xf32>
    %254 = math.exp %253 : vector<2x2xf32>
    %cst_97 = arith.constant dense<0.000000e+00> : vector<2xf32>
    %255 = vector.multi_reduction <add>, %254, %cst_97 [1] : vector<2x2xf32> to vector<2xf32>
    %256 = vector.shape_cast %255 : vector<2xf32> to vector<2x1xf32>
    %257 = tpu.reciprocal %256 {approx = true} : vector<2x1xf32> -> vector<2x1xf32>
    %258 = vector.broadcast %257 : vector<2x1xf32> to vector<2x2xf32>
    %259 = arith.mulf %254, %258 : vector<2x2xf32>
    %260 = arith.truncf %259 : vector<2x2xf32> to vector<2x2xbf16>
    %261 = arith.truncf %244 : vector<2x32xf32> to vector<2x32xbf16>
    %cst_98 = arith.constant dense<0.000000e+00> : vector<2x32xf32>
    %262 = tpu.matmul %260, %261, %cst_98 {dimension_numbers = #tpu.dot_dimension_numbers<[1], [0], [0], [1], [0, 0, 1, 1], [], []>} : vector<2x2xbf16>, vector<2x32xbf16>, vector<2x32xf32> -> vector<2x32xf32>
    %263 = arith.truncf %262 : vector<2x32xf32> to vector<2x32xbf16>
    %264 = arith.truncf %235 : vector<32x32xf32> to vector<32x32xbf16>
    %cst_99 = arith.constant dense<0.000000e+00> : vector<2x32xf32>
    %265 = tpu.matmul %263, %264, %cst_99 {dimension_numbers = #tpu.dot_dimension_numbers<[1], [0], [0], [1], [0, 0, 1, 1], [], []>} : vector<2x32xbf16>, vector<32x32xbf16>, vector<2x32xf32> -> vector<2x32xf32>
    %266 = vector.broadcast %236 : vector<1x32xf32> to vector<2x32xf32>
    %267 = arith.addf %265, %266 : vector<2x32xf32>
    %c0_100 = arith.constant 0 : index
    %c0_101 = arith.constant 0 : index
    %268 = vector.load %arg35[%c0_100, %c0_101] : memref<1x32xf32, #tpu.memory_space<vmem>>, vector<1x32xf32>
    %269 = vector.broadcast %268 : vector<1x32xf32> to vector<2x32xf32>
    %270 = arith.mulf %267, %269 : vector<2x32xf32>
    %cst_102 = arith.constant dense<0.000000e+00> : vector<2xf32>
    %271 = vector.multi_reduction <add>, %270, %cst_102 [1] : vector<2x32xf32> to vector<2xf32>
    %272 = vector.shape_cast %271 : vector<2xf32> to vector<2x1xf32>
    %c0_103 = arith.constant 0 : index
    %c0_104 = arith.constant 0 : index
    %273 = vector.load %arg34[%c0_103, %c0_104] : memref<1x1xf32, #tpu.memory_space<vmem>>, vector<1x1xf32>
    %274 = vector.broadcast %273 : vector<1x1xf32> to vector<2x1xf32>
    %275 = arith.addf %272, %274 : vector<2x1xf32>
    %276 = arith.negf %275 : vector<2x1xf32>
    %277 = math.exp %276 : vector<2x1xf32>
    %cst_105 = arith.constant 1.000000e+00 : f32
    %278 = vector.broadcast %cst_105 : f32 to vector<2x1xf32>
    %279 = arith.addf %278, %277 : vector<2x1xf32>
    %280 = arith.divf %278, %279 : vector<2x1xf32>
    %cst_106 = arith.constant dense<0.000000e+00> : vector<24x1xf32>
    %281 = tpu.matmul %48, %280, %cst_106 {dimension_numbers = #tpu.dot_dimension_numbers<[1], [0], [0], [1], [0, 0, 1, 1], [], []>} : vector<24x2xf32>, vector<2x1xf32>, vector<24x1xf32> -> vector<24x1xf32>
    %282 = vector.broadcast %281 : vector<24x1xf32> to vector<24x32xf32>
    %283 = arith.mulf %224, %282 : vector<24x32xf32>
    %c0_107 = arith.constant 0 : index
    %c0_108 = arith.constant 0 : index
    %284 = vector.load %arg45[%c0_107, %c0_108] : memref<9x1xi32, #tpu.memory_space<vmem>>, vector<9x1xi32>
    %c0_109 = arith.constant 0 : index
    %c0_110 = arith.constant 0 : index
    %285 = vector.load %arg41[%c0_109, %c0_110] : memref<9x32xf32, #tpu.memory_space<vmem>>, vector<9x32xf32>
    %286 = tpu.iota {dimensions = array<i32: 1>} : vector<9x128xi32>
    %287 = vector.broadcast %284 : vector<9x1xi32> to vector<9x128xi32>
    %288 = arith.cmpi eq, %286, %287 : vector<9x128xi32>
    %289 = arith.extui %288 : vector<9x128xi1> to vector<9x128xi32>
    %290 = arith.sitofp %289 : vector<9x128xi32> to vector<9x128xf32>
    %291 = arith.truncf %290 : vector<9x128xf32> to vector<9x128xbf16>
    %292 = arith.truncf %0 : vector<128x32xf32> to vector<128x32xbf16>
    %cst_111 = arith.constant dense<0.000000e+00> : vector<9x32xf32>
    %293 = tpu.matmul %291, %292, %cst_111 {dimension_numbers = #tpu.dot_dimension_numbers<[1], [0], [0], [1], [0, 0, 1, 1], [], []>} : vector<9x128xbf16>, vector<128x32xbf16>, vector<9x32xf32> -> vector<9x32xf32>
    %294 = arith.addf %293, %285 : vector<9x32xf32>
    %c0_112 = arith.constant 0 : index
    %c0_113 = arith.constant 0 : index
    %295 = vector.load %arg38[%c0_112, %c0_113] : memref<1x32xf32, #tpu.memory_space<vmem>>, vector<1x32xf32>
    %c0_114 = arith.constant 0 : index
    %c0_115 = arith.constant 0 : index
    %296 = vector.load %arg37[%c0_114, %c0_115] : memref<1x32xf32, #tpu.memory_space<vmem>>, vector<1x32xf32>
    %cst_116 = arith.constant dense<0.000000e+00> : vector<9xf32>
    %297 = vector.multi_reduction <add>, %294, %cst_116 [1] : vector<9x32xf32> to vector<9xf32>
    %298 = vector.shape_cast %297 : vector<9xf32> to vector<9x1xf32>
    %cst_117 = arith.constant 3.200000e+01 : f32
    %299 = vector.broadcast %cst_117 : f32 to vector<9x1xf32>
    %300 = arith.divf %298, %299 : vector<9x1xf32>
    %301 = vector.broadcast %300 : vector<9x1xf32> to vector<9x32xf32>
    %302 = arith.subf %294, %301 : vector<9x32xf32>
    %303 = arith.mulf %302, %302 : vector<9x32xf32>
    %cst_118 = arith.constant dense<0.000000e+00> : vector<9xf32>
    %304 = vector.multi_reduction <add>, %303, %cst_118 [1] : vector<9x32xf32> to vector<9xf32>
    %305 = vector.shape_cast %304 : vector<9xf32> to vector<9x1xf32>
    %cst_119 = arith.constant 3.200000e+01 : f32
    %306 = vector.broadcast %cst_119 : f32 to vector<9x1xf32>
    %307 = arith.divf %305, %306 : vector<9x1xf32>
    %308 = vector.broadcast %300 : vector<9x1xf32> to vector<9x32xf32>
    %309 = arith.subf %294, %308 : vector<9x32xf32>
    %cst_120 = arith.constant 9.99999974E-6 : f32
    %310 = vector.broadcast %cst_120 : f32 to vector<9x1xf32>
    %311 = arith.addf %307, %310 : vector<9x1xf32>
    %312 = math.rsqrt %311 : vector<9x1xf32>
    %313 = vector.broadcast %312 : vector<9x1xf32> to vector<9x32xf32>
    %314 = arith.mulf %309, %313 : vector<9x32xf32>
    %315 = vector.broadcast %295 : vector<1x32xf32> to vector<9x32xf32>
    %316 = arith.mulf %314, %315 : vector<9x32xf32>
    %317 = vector.broadcast %296 : vector<1x32xf32> to vector<9x32xf32>
    %318 = arith.addf %316, %317 : vector<9x32xf32>
    %319 = tpu.iota {dimensions = array<i32: 0>} : vector<9x9xi32>
    %320 = tpu.iota {dimensions = array<i32: 1>} : vector<9x9xi32>
    %321 = arith.cmpi sgt, %320, %319 : vector<9x9xi32>
    %cst_121 = arith.constant -1.000000e+09 : f32
    %cst_122 = arith.constant 0.000000e+00 : f32
    %322 = vector.broadcast %cst_121 : f32 to vector<9x9xf32>
    %323 = vector.broadcast %cst_122 : f32 to vector<9x9xf32>
    %324 = arith.select %321, %322, %323 : vector<9x9xi1>, vector<9x9xf32>
    %c0_123 = arith.constant 0 : index
    %c0_124 = arith.constant 0 : index
    %325 = vector.load %arg21[%c0_123, %c0_124] : memref<32x96xf32, #tpu.memory_space<vmem>>, vector<32x96xf32>
    %c0_125 = arith.constant 0 : index
    %c0_126 = arith.constant 0 : index
    %326 = vector.load %arg19[%c0_125, %c0_126] : memref<1x96xf32, #tpu.memory_space<vmem>>, vector<1x96xf32>
    %c0_127 = arith.constant 0 : index
    %c0_128 = arith.constant 0 : index
    %327 = vector.load %arg20[%c0_127, %c0_128] : memref<32x32xf32, #tpu.memory_space<vmem>>, vector<32x32xf32>
    %c0_129 = arith.constant 0 : index
    %c0_130 = arith.constant 0 : index
    %328 = vector.load %arg18[%c0_129, %c0_130] : memref<1x32xf32, #tpu.memory_space<vmem>>, vector<1x32xf32>
    %329 = arith.truncf %318 : vector<9x32xf32> to vector<9x32xbf16>
    %330 = arith.truncf %325 : vector<32x96xf32> to vector<32x96xbf16>
    %cst_131 = arith.constant dense<0.000000e+00> : vector<9x96xf32>
    %331 = tpu.matmul %329, %330, %cst_131 {dimension_numbers = #tpu.dot_dimension_numbers<[1], [0], [0], [1], [0, 0, 1, 1], [], []>} : vector<9x32xbf16>, vector<32x96xbf16>, vector<9x96xf32> -> vector<9x96xf32>
    %332 = vector.broadcast %326 : vector<1x96xf32> to vector<9x96xf32>
    %333 = arith.addf %331, %332 : vector<9x96xf32>
    %334 = vector.extract_strided_slice %333 {offsets = [0, 0], sizes = [9, 32], strides = [1, 1]} : vector<9x96xf32> to vector<9x32xf32>
    %335 = vector.extract_strided_slice %333 {offsets = [0, 32], sizes = [9, 32], strides = [1, 1]} : vector<9x96xf32> to vector<9x32xf32>
    %336 = vector.extract_strided_slice %333 {offsets = [0, 64], sizes = [9, 32], strides = [1, 1]} : vector<9x96xf32> to vector<9x32xf32>
    %337 = vector.extract_strided_slice %334 {offsets = [0, 0], sizes = [9, 16], strides = [1, 1]} : vector<9x32xf32> to vector<9x16xf32>
    %cst_132 = arith.constant 2.500000e-01 : f32
    %338 = vector.broadcast %cst_132 : f32 to vector<9x16xf32>
    %339 = arith.mulf %337, %338 : vector<9x16xf32>
    %340 = vector.extract_strided_slice %335 {offsets = [0, 0], sizes = [9, 16], strides = [1, 1]} : vector<9x32xf32> to vector<9x16xf32>
    %341 = vector.extract_strided_slice %336 {offsets = [0, 0], sizes = [9, 16], strides = [1, 1]} : vector<9x32xf32> to vector<9x16xf32>
    %342 = arith.truncf %339 : vector<9x16xf32> to vector<9x16xbf16>
    %343 = arith.truncf %340 : vector<9x16xf32> to vector<9x16xbf16>
    %cst_133 = arith.constant dense<0.000000e+00> : vector<9x9xf32>
    %344 = tpu.matmul %342, %343, %cst_133 {dimension_numbers = #tpu.dot_dimension_numbers<[1], [1], [0], [0], [0, 0, 1, 0], [], []>} : vector<9x16xbf16>, vector<9x16xbf16>, vector<9x9xf32> -> vector<9x9xf32>
    %345 = arith.addf %344, %324 : vector<9x9xf32>
    %cst_134 = arith.constant dense<0xFF800000> : vector<9xf32>
    %346 = vector.multi_reduction <maximumf>, %345, %cst_134 [1] : vector<9x9xf32> to vector<9xf32>
    %347 = vector.shape_cast %346 : vector<9xf32> to vector<9x1xf32>
    %348 = vector.broadcast %347 : vector<9x1xf32> to vector<9x9xf32>
    %349 = arith.subf %345, %348 : vector<9x9xf32>
    %350 = math.exp %349 : vector<9x9xf32>
    %cst_135 = arith.constant dense<0.000000e+00> : vector<9xf32>
    %351 = vector.multi_reduction <add>, %350, %cst_135 [1] : vector<9x9xf32> to vector<9xf32>
    %352 = vector.shape_cast %351 : vector<9xf32> to vector<9x1xf32>
    %353 = tpu.reciprocal %352 {approx = true} : vector<9x1xf32> -> vector<9x1xf32>
    %354 = vector.broadcast %353 : vector<9x1xf32> to vector<9x9xf32>
    %355 = arith.mulf %350, %354 : vector<9x9xf32>
    %356 = arith.truncf %355 : vector<9x9xf32> to vector<9x9xbf16>
    %357 = arith.truncf %341 : vector<9x16xf32> to vector<9x16xbf16>
    %cst_136 = arith.constant dense<0.000000e+00> : vector<9x16xf32>
    %358 = tpu.matmul %356, %357, %cst_136 {dimension_numbers = #tpu.dot_dimension_numbers<[1], [0], [0], [1], [0, 0, 1, 1], [], []>} : vector<9x9xbf16>, vector<9x16xbf16>, vector<9x16xf32> -> vector<9x16xf32>
    %359 = vector.extract_strided_slice %327 {offsets = [0, 0], sizes = [16, 32], strides = [1, 1]} : vector<32x32xf32> to vector<16x32xf32>
    %360 = arith.truncf %358 : vector<9x16xf32> to vector<9x16xbf16>
    %361 = arith.truncf %359 : vector<16x32xf32> to vector<16x32xbf16>
    %cst_137 = arith.constant dense<0.000000e+00> : vector<9x32xf32>
    %362 = tpu.matmul %360, %361, %cst_137 {dimension_numbers = #tpu.dot_dimension_numbers<[1], [0], [0], [1], [0, 0, 1, 1], [], []>} : vector<9x16xbf16>, vector<16x32xbf16>, vector<9x32xf32> -> vector<9x32xf32>
    %363 = vector.extract_strided_slice %334 {offsets = [0, 16], sizes = [9, 16], strides = [1, 1]} : vector<9x32xf32> to vector<9x16xf32>
    %cst_138 = arith.constant 2.500000e-01 : f32
    %364 = vector.broadcast %cst_138 : f32 to vector<9x16xf32>
    %365 = arith.mulf %363, %364 : vector<9x16xf32>
    %366 = vector.extract_strided_slice %335 {offsets = [0, 16], sizes = [9, 16], strides = [1, 1]} : vector<9x32xf32> to vector<9x16xf32>
    %367 = vector.extract_strided_slice %336 {offsets = [0, 16], sizes = [9, 16], strides = [1, 1]} : vector<9x32xf32> to vector<9x16xf32>
    %368 = arith.truncf %365 : vector<9x16xf32> to vector<9x16xbf16>
    %369 = arith.truncf %366 : vector<9x16xf32> to vector<9x16xbf16>
    %cst_139 = arith.constant dense<0.000000e+00> : vector<9x9xf32>
    %370 = tpu.matmul %368, %369, %cst_139 {dimension_numbers = #tpu.dot_dimension_numbers<[1], [1], [0], [0], [0, 0, 1, 0], [], []>} : vector<9x16xbf16>, vector<9x16xbf16>, vector<9x9xf32> -> vector<9x9xf32>
    %371 = arith.addf %370, %324 : vector<9x9xf32>
    %cst_140 = arith.constant dense<0xFF800000> : vector<9xf32>
    %372 = vector.multi_reduction <maximumf>, %371, %cst_140 [1] : vector<9x9xf32> to vector<9xf32>
    %373 = vector.shape_cast %372 : vector<9xf32> to vector<9x1xf32>
    %374 = vector.broadcast %373 : vector<9x1xf32> to vector<9x9xf32>
    %375 = arith.subf %371, %374 : vector<9x9xf32>
    %376 = math.exp %375 : vector<9x9xf32>
    %cst_141 = arith.constant dense<0.000000e+00> : vector<9xf32>
    %377 = vector.multi_reduction <add>, %376, %cst_141 [1] : vector<9x9xf32> to vector<9xf32>
    %378 = vector.shape_cast %377 : vector<9xf32> to vector<9x1xf32>
    %379 = tpu.reciprocal %378 {approx = true} : vector<9x1xf32> -> vector<9x1xf32>
    %380 = vector.broadcast %379 : vector<9x1xf32> to vector<9x9xf32>
    %381 = arith.mulf %376, %380 : vector<9x9xf32>
    %382 = arith.truncf %381 : vector<9x9xf32> to vector<9x9xbf16>
    %383 = arith.truncf %367 : vector<9x16xf32> to vector<9x16xbf16>
    %cst_142 = arith.constant dense<0.000000e+00> : vector<9x16xf32>
    %384 = tpu.matmul %382, %383, %cst_142 {dimension_numbers = #tpu.dot_dimension_numbers<[1], [0], [0], [1], [0, 0, 1, 1], [], []>} : vector<9x9xbf16>, vector<9x16xbf16>, vector<9x16xf32> -> vector<9x16xf32>
    %385 = vector.extract_strided_slice %327 {offsets = [16, 0], sizes = [16, 32], strides = [1, 1]} : vector<32x32xf32> to vector<16x32xf32>
    %386 = arith.truncf %384 : vector<9x16xf32> to vector<9x16xbf16>
    %387 = arith.truncf %385 : vector<16x32xf32> to vector<16x32xbf16>
    %cst_143 = arith.constant dense<0.000000e+00> : vector<9x32xf32>
    %388 = tpu.matmul %386, %387, %cst_143 {dimension_numbers = #tpu.dot_dimension_numbers<[1], [0], [0], [1], [0, 0, 1, 1], [], []>} : vector<9x16xbf16>, vector<16x32xbf16>, vector<9x32xf32> -> vector<9x32xf32>
    %389 = arith.addf %362, %388 : vector<9x32xf32>
    %390 = vector.broadcast %328 : vector<1x32xf32> to vector<9x32xf32>
    %391 = arith.addf %389, %390 : vector<9x32xf32>
    %392 = arith.addf %318, %391 : vector<9x32xf32>
    %c0_144 = arith.constant 0 : index
    %c0_145 = arith.constant 0 : index
    %393 = vector.load %arg13[%c0_144, %c0_145] : memref<1x32xf32, #tpu.memory_space<vmem>>, vector<1x32xf32>
    %c0_146 = arith.constant 0 : index
    %c0_147 = arith.constant 0 : index
    %394 = vector.load %arg12[%c0_146, %c0_147] : memref<1x32xf32, #tpu.memory_space<vmem>>, vector<1x32xf32>
    %cst_148 = arith.constant dense<0.000000e+00> : vector<9xf32>
    %395 = vector.multi_reduction <add>, %392, %cst_148 [1] : vector<9x32xf32> to vector<9xf32>
    %396 = vector.shape_cast %395 : vector<9xf32> to vector<9x1xf32>
    %cst_149 = arith.constant 3.200000e+01 : f32
    %397 = vector.broadcast %cst_149 : f32 to vector<9x1xf32>
    %398 = arith.divf %396, %397 : vector<9x1xf32>
    %399 = vector.broadcast %398 : vector<9x1xf32> to vector<9x32xf32>
    %400 = arith.subf %392, %399 : vector<9x32xf32>
    %401 = arith.mulf %400, %400 : vector<9x32xf32>
    %cst_150 = arith.constant dense<0.000000e+00> : vector<9xf32>
    %402 = vector.multi_reduction <add>, %401, %cst_150 [1] : vector<9x32xf32> to vector<9xf32>
    %403 = vector.shape_cast %402 : vector<9xf32> to vector<9x1xf32>
    %cst_151 = arith.constant 3.200000e+01 : f32
    %404 = vector.broadcast %cst_151 : f32 to vector<9x1xf32>
    %405 = arith.divf %403, %404 : vector<9x1xf32>
    %406 = vector.broadcast %398 : vector<9x1xf32> to vector<9x32xf32>
    %407 = arith.subf %392, %406 : vector<9x32xf32>
    %cst_152 = arith.constant 9.99999974E-6 : f32
    %408 = vector.broadcast %cst_152 : f32 to vector<9x1xf32>
    %409 = arith.addf %405, %408 : vector<9x1xf32>
    %410 = math.rsqrt %409 : vector<9x1xf32>
    %411 = vector.broadcast %410 : vector<9x1xf32> to vector<9x32xf32>
    %412 = arith.mulf %407, %411 : vector<9x32xf32>
    %413 = vector.broadcast %393 : vector<1x32xf32> to vector<9x32xf32>
    %414 = arith.mulf %412, %413 : vector<9x32xf32>
    %415 = vector.broadcast %394 : vector<1x32xf32> to vector<9x32xf32>
    %416 = arith.addf %414, %415 : vector<9x32xf32>
    %c0_153 = arith.constant 0 : index
    %c0_154 = arith.constant 0 : index
    %417 = vector.load %arg7[%c0_153, %c0_154] : memref<32x96xf32, #tpu.memory_space<vmem>>, vector<32x96xf32>
    %c0_155 = arith.constant 0 : index
    %c0_156 = arith.constant 0 : index
    %418 = vector.load %arg5[%c0_155, %c0_156] : memref<1x96xf32, #tpu.memory_space<vmem>>, vector<1x96xf32>
    %c0_157 = arith.constant 0 : index
    %c0_158 = arith.constant 0 : index
    %419 = vector.load %arg6[%c0_157, %c0_158] : memref<32x32xf32, #tpu.memory_space<vmem>>, vector<32x32xf32>
    %c0_159 = arith.constant 0 : index
    %c0_160 = arith.constant 0 : index
    %420 = vector.load %arg4[%c0_159, %c0_160] : memref<1x32xf32, #tpu.memory_space<vmem>>, vector<1x32xf32>
    %421 = vector.extract_strided_slice %417 {offsets = [0, 0], sizes = [32, 32], strides = [1, 1]} : vector<32x96xf32> to vector<32x32xf32>
    %422 = vector.extract_strided_slice %418 {offsets = [0, 0], sizes = [1, 32], strides = [1, 1]} : vector<1x96xf32> to vector<1x32xf32>
    %423 = arith.truncf %416 : vector<9x32xf32> to vector<9x32xbf16>
    %424 = arith.truncf %421 : vector<32x32xf32> to vector<32x32xbf16>
    %cst_161 = arith.constant dense<0.000000e+00> : vector<9x32xf32>
    %425 = tpu.matmul %423, %424, %cst_161 {dimension_numbers = #tpu.dot_dimension_numbers<[1], [0], [0], [1], [0, 0, 1, 1], [], []>} : vector<9x32xbf16>, vector<32x32xbf16>, vector<9x32xf32> -> vector<9x32xf32>
    %426 = vector.broadcast %422 : vector<1x32xf32> to vector<9x32xf32>
    %427 = arith.addf %425, %426 : vector<9x32xf32>
    %428 = vector.extract_strided_slice %417 {offsets = [0, 32], sizes = [32, 64], strides = [1, 1]} : vector<32x96xf32> to vector<32x64xf32>
    %429 = vector.extract_strided_slice %418 {offsets = [0, 32], sizes = [1, 64], strides = [1, 1]} : vector<1x96xf32> to vector<1x64xf32>
    %430 = arith.truncf %283 : vector<24x32xf32> to vector<24x32xbf16>
    %431 = arith.truncf %428 : vector<32x64xf32> to vector<32x64xbf16>
    %cst_162 = arith.constant dense<0.000000e+00> : vector<24x64xf32>
    %432 = tpu.matmul %430, %431, %cst_162 {dimension_numbers = #tpu.dot_dimension_numbers<[1], [0], [0], [1], [0, 0, 1, 1], [], []>} : vector<24x32xbf16>, vector<32x64xbf16>, vector<24x64xf32> -> vector<24x64xf32>
    %433 = vector.broadcast %429 : vector<1x64xf32> to vector<24x64xf32>
    %434 = arith.addf %432, %433 : vector<24x64xf32>
    %435 = vector.extract_strided_slice %434 {offsets = [0, 0], sizes = [24, 32], strides = [1, 1]} : vector<24x64xf32> to vector<24x32xf32>
    %436 = vector.extract_strided_slice %434 {offsets = [0, 32], sizes = [24, 32], strides = [1, 1]} : vector<24x64xf32> to vector<24x32xf32>
    %437 = vector.extract_strided_slice %427 {offsets = [0, 0], sizes = [9, 16], strides = [1, 1]} : vector<9x32xf32> to vector<9x16xf32>
    %cst_163 = arith.constant 2.500000e-01 : f32
    %438 = vector.broadcast %cst_163 : f32 to vector<9x16xf32>
    %439 = arith.mulf %437, %438 : vector<9x16xf32>
    %440 = vector.extract_strided_slice %435 {offsets = [0, 0], sizes = [24, 16], strides = [1, 1]} : vector<24x32xf32> to vector<24x16xf32>
    %441 = vector.extract_strided_slice %436 {offsets = [0, 0], sizes = [24, 16], strides = [1, 1]} : vector<24x32xf32> to vector<24x16xf32>
    %442 = arith.truncf %439 : vector<9x16xf32> to vector<9x16xbf16>
    %443 = arith.truncf %440 : vector<24x16xf32> to vector<24x16xbf16>
    %cst_164 = arith.constant dense<0.000000e+00> : vector<9x24xf32>
    %444 = tpu.matmul %442, %443, %cst_164 {dimension_numbers = #tpu.dot_dimension_numbers<[1], [1], [0], [0], [0, 0, 1, 0], [], []>} : vector<9x16xbf16>, vector<24x16xbf16>, vector<9x24xf32> -> vector<9x24xf32>
    %cst_165 = arith.constant dense<0xFF800000> : vector<9xf32>
    %445 = vector.multi_reduction <maximumf>, %444, %cst_165 [1] : vector<9x24xf32> to vector<9xf32>
    %446 = vector.shape_cast %445 : vector<9xf32> to vector<9x1xf32>
    %447 = vector.broadcast %446 : vector<9x1xf32> to vector<9x24xf32>
    %448 = arith.subf %444, %447 : vector<9x24xf32>
    %449 = math.exp %448 : vector<9x24xf32>
    %cst_166 = arith.constant dense<0.000000e+00> : vector<9xf32>
    %450 = vector.multi_reduction <add>, %449, %cst_166 [1] : vector<9x24xf32> to vector<9xf32>
    %451 = vector.shape_cast %450 : vector<9xf32> to vector<9x1xf32>
    %452 = tpu.reciprocal %451 {approx = true} : vector<9x1xf32> -> vector<9x1xf32>
    %453 = vector.broadcast %452 : vector<9x1xf32> to vector<9x24xf32>
    %454 = arith.mulf %449, %453 : vector<9x24xf32>
    %455 = arith.truncf %454 : vector<9x24xf32> to vector<9x24xbf16>
    %456 = arith.truncf %441 : vector<24x16xf32> to vector<24x16xbf16>
    %cst_167 = arith.constant dense<0.000000e+00> : vector<9x16xf32>
    %457 = tpu.matmul %455, %456, %cst_167 {dimension_numbers = #tpu.dot_dimension_numbers<[1], [0], [0], [1], [0, 0, 1, 1], [], []>} : vector<9x24xbf16>, vector<24x16xbf16>, vector<9x16xf32> -> vector<9x16xf32>
    %458 = vector.extract_strided_slice %419 {offsets = [0, 0], sizes = [16, 32], strides = [1, 1]} : vector<32x32xf32> to vector<16x32xf32>
    %459 = arith.truncf %457 : vector<9x16xf32> to vector<9x16xbf16>
    %460 = arith.truncf %458 : vector<16x32xf32> to vector<16x32xbf16>
    %cst_168 = arith.constant dense<0.000000e+00> : vector<9x32xf32>
    %461 = tpu.matmul %459, %460, %cst_168 {dimension_numbers = #tpu.dot_dimension_numbers<[1], [0], [0], [1], [0, 0, 1, 1], [], []>} : vector<9x16xbf16>, vector<16x32xbf16>, vector<9x32xf32> -> vector<9x32xf32>
    %462 = vector.extract_strided_slice %427 {offsets = [0, 16], sizes = [9, 16], strides = [1, 1]} : vector<9x32xf32> to vector<9x16xf32>
    %cst_169 = arith.constant 2.500000e-01 : f32
    %463 = vector.broadcast %cst_169 : f32 to vector<9x16xf32>
    %464 = arith.mulf %462, %463 : vector<9x16xf32>
    %465 = vector.extract_strided_slice %435 {offsets = [0, 16], sizes = [24, 16], strides = [1, 1]} : vector<24x32xf32> to vector<24x16xf32>
    %466 = vector.extract_strided_slice %436 {offsets = [0, 16], sizes = [24, 16], strides = [1, 1]} : vector<24x32xf32> to vector<24x16xf32>
    %467 = arith.truncf %464 : vector<9x16xf32> to vector<9x16xbf16>
    %468 = arith.truncf %465 : vector<24x16xf32> to vector<24x16xbf16>
    %cst_170 = arith.constant dense<0.000000e+00> : vector<9x24xf32>
    %469 = tpu.matmul %467, %468, %cst_170 {dimension_numbers = #tpu.dot_dimension_numbers<[1], [1], [0], [0], [0, 0, 1, 0], [], []>} : vector<9x16xbf16>, vector<24x16xbf16>, vector<9x24xf32> -> vector<9x24xf32>
    %cst_171 = arith.constant dense<0xFF800000> : vector<9xf32>
    %470 = vector.multi_reduction <maximumf>, %469, %cst_171 [1] : vector<9x24xf32> to vector<9xf32>
    %471 = vector.shape_cast %470 : vector<9xf32> to vector<9x1xf32>
    %472 = vector.broadcast %471 : vector<9x1xf32> to vector<9x24xf32>
    %473 = arith.subf %469, %472 : vector<9x24xf32>
    %474 = math.exp %473 : vector<9x24xf32>
    %cst_172 = arith.constant dense<0.000000e+00> : vector<9xf32>
    %475 = vector.multi_reduction <add>, %474, %cst_172 [1] : vector<9x24xf32> to vector<9xf32>
    %476 = vector.shape_cast %475 : vector<9xf32> to vector<9x1xf32>
    %477 = tpu.reciprocal %476 {approx = true} : vector<9x1xf32> -> vector<9x1xf32>
    %478 = vector.broadcast %477 : vector<9x1xf32> to vector<9x24xf32>
    %479 = arith.mulf %474, %478 : vector<9x24xf32>
    %480 = arith.truncf %479 : vector<9x24xf32> to vector<9x24xbf16>
    %481 = arith.truncf %466 : vector<24x16xf32> to vector<24x16xbf16>
    %cst_173 = arith.constant dense<0.000000e+00> : vector<9x16xf32>
    %482 = tpu.matmul %480, %481, %cst_173 {dimension_numbers = #tpu.dot_dimension_numbers<[1], [0], [0], [1], [0, 0, 1, 1], [], []>} : vector<9x24xbf16>, vector<24x16xbf16>, vector<9x16xf32> -> vector<9x16xf32>
    %483 = vector.extract_strided_slice %419 {offsets = [16, 0], sizes = [16, 32], strides = [1, 1]} : vector<32x32xf32> to vector<16x32xf32>
    %484 = arith.truncf %482 : vector<9x16xf32> to vector<9x16xbf16>
    %485 = arith.truncf %483 : vector<16x32xf32> to vector<16x32xbf16>
    %cst_174 = arith.constant dense<0.000000e+00> : vector<9x32xf32>
    %486 = tpu.matmul %484, %485, %cst_174 {dimension_numbers = #tpu.dot_dimension_numbers<[1], [0], [0], [1], [0, 0, 1, 1], [], []>} : vector<9x16xbf16>, vector<16x32xbf16>, vector<9x32xf32> -> vector<9x32xf32>
    %487 = arith.addf %461, %486 : vector<9x32xf32>
    %488 = vector.broadcast %420 : vector<1x32xf32> to vector<9x32xf32>
    %489 = arith.addf %487, %488 : vector<9x32xf32>
    %490 = arith.addf %416, %489 : vector<9x32xf32>
    %c0_175 = arith.constant 0 : index
    %c0_176 = arith.constant 0 : index
    %491 = vector.load %arg17[%c0_175, %c0_176] : memref<1x32xf32, #tpu.memory_space<vmem>>, vector<1x32xf32>
    %c0_177 = arith.constant 0 : index
    %c0_178 = arith.constant 0 : index
    %492 = vector.load %arg16[%c0_177, %c0_178] : memref<1x32xf32, #tpu.memory_space<vmem>>, vector<1x32xf32>
    %cst_179 = arith.constant dense<0.000000e+00> : vector<9xf32>
    %493 = vector.multi_reduction <add>, %490, %cst_179 [1] : vector<9x32xf32> to vector<9xf32>
    %494 = vector.shape_cast %493 : vector<9xf32> to vector<9x1xf32>
    %cst_180 = arith.constant 3.200000e+01 : f32
    %495 = vector.broadcast %cst_180 : f32 to vector<9x1xf32>
    %496 = arith.divf %494, %495 : vector<9x1xf32>
    %497 = vector.broadcast %496 : vector<9x1xf32> to vector<9x32xf32>
    %498 = arith.subf %490, %497 : vector<9x32xf32>
    %499 = arith.mulf %498, %498 : vector<9x32xf32>
    %cst_181 = arith.constant dense<0.000000e+00> : vector<9xf32>
    %500 = vector.multi_reduction <add>, %499, %cst_181 [1] : vector<9x32xf32> to vector<9xf32>
    %501 = vector.shape_cast %500 : vector<9xf32> to vector<9x1xf32>
    %cst_182 = arith.constant 3.200000e+01 : f32
    %502 = vector.broadcast %cst_182 : f32 to vector<9x1xf32>
    %503 = arith.divf %501, %502 : vector<9x1xf32>
    %504 = vector.broadcast %496 : vector<9x1xf32> to vector<9x32xf32>
    %505 = arith.subf %490, %504 : vector<9x32xf32>
    %cst_183 = arith.constant 9.99999974E-6 : f32
    %506 = vector.broadcast %cst_183 : f32 to vector<9x1xf32>
    %507 = arith.addf %503, %506 : vector<9x1xf32>
    %508 = math.rsqrt %507 : vector<9x1xf32>
    %509 = vector.broadcast %508 : vector<9x1xf32> to vector<9x32xf32>
    %510 = arith.mulf %505, %509 : vector<9x32xf32>
    %511 = vector.broadcast %491 : vector<1x32xf32> to vector<9x32xf32>
    %512 = arith.mulf %510, %511 : vector<9x32xf32>
    %513 = vector.broadcast %492 : vector<1x32xf32> to vector<9x32xf32>
    %514 = arith.addf %512, %513 : vector<9x32xf32>
    %c0_184 = arith.constant 0 : index
    %c0_185 = arith.constant 0 : index
    %515 = vector.load %arg9[%c0_184, %c0_185] : memref<32x64xf32, #tpu.memory_space<vmem>>, vector<32x64xf32>
    %c0_186 = arith.constant 0 : index
    %c0_187 = arith.constant 0 : index
    %516 = vector.load %arg8[%c0_186, %c0_187] : memref<1x64xf32, #tpu.memory_space<vmem>>, vector<1x64xf32>
    %517 = arith.truncf %514 : vector<9x32xf32> to vector<9x32xbf16>
    %518 = arith.truncf %515 : vector<32x64xf32> to vector<32x64xbf16>
    %cst_188 = arith.constant dense<0.000000e+00> : vector<9x64xf32>
    %519 = tpu.matmul %517, %518, %cst_188 {dimension_numbers = #tpu.dot_dimension_numbers<[1], [0], [0], [1], [0, 0, 1, 1], [], []>} : vector<9x32xbf16>, vector<32x64xbf16>, vector<9x64xf32> -> vector<9x64xf32>
    %520 = vector.broadcast %516 : vector<1x64xf32> to vector<9x64xf32>
    %521 = arith.addf %519, %520 : vector<9x64xf32>
    %cst_189 = arith.constant 0.707106769 : f32
    %522 = vector.broadcast %cst_189 : f32 to vector<9x64xf32>
    %523 = arith.mulf %521, %522 : vector<9x64xf32>
    %524 = math.absf %523 : vector<9x64xf32>
    %cst_190 = arith.constant 0.327591091 : f32
    %525 = vector.broadcast %cst_190 : f32 to vector<9x64xf32>
    %526 = arith.mulf %525, %524 : vector<9x64xf32>
    %cst_191 = arith.constant 1.000000e+00 : f32
    %527 = vector.broadcast %cst_191 : f32 to vector<9x64xf32>
    %528 = arith.addf %527, %526 : vector<9x64xf32>
    %cst_192 = arith.constant 1.000000e+00 : f32
    %529 = vector.broadcast %cst_192 : f32 to vector<9x64xf32>
    %530 = arith.divf %529, %528 : vector<9x64xf32>
    %cst_193 = arith.constant 1.06140542 : f32
    %531 = vector.broadcast %cst_193 : f32 to vector<9x64xf32>
    %532 = arith.mulf %530, %531 : vector<9x64xf32>
    %cst_194 = arith.constant -1.45315206 : f32
    %533 = vector.broadcast %cst_194 : f32 to vector<9x64xf32>
    %534 = arith.addf %533, %532 : vector<9x64xf32>
    %535 = arith.mulf %530, %534 : vector<9x64xf32>
    %cst_195 = arith.constant 1.42141378 : f32
    %536 = vector.broadcast %cst_195 : f32 to vector<9x64xf32>
    %537 = arith.addf %536, %535 : vector<9x64xf32>
    %538 = arith.mulf %530, %537 : vector<9x64xf32>
    %cst_196 = arith.constant -0.284496725 : f32
    %539 = vector.broadcast %cst_196 : f32 to vector<9x64xf32>
    %540 = arith.addf %539, %538 : vector<9x64xf32>
    %541 = arith.mulf %530, %540 : vector<9x64xf32>
    %cst_197 = arith.constant 0.254829586 : f32
    %542 = vector.broadcast %cst_197 : f32 to vector<9x64xf32>
    %543 = arith.addf %542, %541 : vector<9x64xf32>
    %544 = arith.mulf %530, %543 : vector<9x64xf32>
    %cst_198 = arith.constant 0.000000e+00 : f32
    %545 = vector.broadcast %cst_198 : f32 to vector<9x64xf32>
    %546 = arith.subf %545, %524 : vector<9x64xf32>
    %547 = arith.mulf %546, %524 : vector<9x64xf32>
    %548 = math.exp %547 : vector<9x64xf32>
    %549 = arith.mulf %544, %548 : vector<9x64xf32>
    %cst_199 = arith.constant 1.000000e+00 : f32
    %550 = vector.broadcast %cst_199 : f32 to vector<9x64xf32>
    %551 = arith.subf %550, %549 : vector<9x64xf32>
    %cst_200 = arith.constant 0.000000e+00 : f32
    %552 = vector.broadcast %cst_200 : f32 to vector<9x64xf32>
    %553 = arith.cmpf oge, %523, %552 : vector<9x64xf32>
    %cst_201 = arith.constant 0.000000e+00 : f32
    %554 = vector.broadcast %cst_201 : f32 to vector<9x64xf32>
    %555 = arith.subf %554, %551 : vector<9x64xf32>
    %556 = arith.select %553, %551, %555 : vector<9x64xi1>, vector<9x64xf32>
    %cst_202 = arith.constant 5.000000e-01 : f32
    %557 = vector.broadcast %cst_202 : f32 to vector<9x64xf32>
    %558 = arith.mulf %557, %521 : vector<9x64xf32>
    %cst_203 = arith.constant 1.000000e+00 : f32
    %559 = vector.broadcast %cst_203 : f32 to vector<9x64xf32>
    %560 = arith.addf %559, %556 : vector<9x64xf32>
    %561 = arith.mulf %558, %560 : vector<9x64xf32>
    %c0_204 = arith.constant 0 : index
    %c0_205 = arith.constant 0 : index
    %562 = vector.load %arg11[%c0_204, %c0_205] : memref<64x32xf32, #tpu.memory_space<vmem>>, vector<64x32xf32>
    %c0_206 = arith.constant 0 : index
    %c0_207 = arith.constant 0 : index
    %563 = vector.load %arg10[%c0_206, %c0_207] : memref<1x32xf32, #tpu.memory_space<vmem>>, vector<1x32xf32>
    %564 = arith.truncf %561 : vector<9x64xf32> to vector<9x64xbf16>
    %565 = arith.truncf %562 : vector<64x32xf32> to vector<64x32xbf16>
    %cst_208 = arith.constant dense<0.000000e+00> : vector<9x32xf32>
    %566 = tpu.matmul %564, %565, %cst_208 {dimension_numbers = #tpu.dot_dimension_numbers<[1], [0], [0], [1], [0, 0, 1, 1], [], []>} : vector<9x64xbf16>, vector<64x32xbf16>, vector<9x32xf32> -> vector<9x32xf32>
    %567 = vector.broadcast %563 : vector<1x32xf32> to vector<9x32xf32>
    %568 = arith.addf %566, %567 : vector<9x32xf32>
    %569 = arith.addf %514, %568 : vector<9x32xf32>
    %c0_209 = arith.constant 0 : index
    %c0_210 = arith.constant 0 : index
    %570 = vector.load %arg15[%c0_209, %c0_210] : memref<1x32xf32, #tpu.memory_space<vmem>>, vector<1x32xf32>
    %c0_211 = arith.constant 0 : index
    %c0_212 = arith.constant 0 : index
    %571 = vector.load %arg14[%c0_211, %c0_212] : memref<1x32xf32, #tpu.memory_space<vmem>>, vector<1x32xf32>
    %cst_213 = arith.constant dense<0.000000e+00> : vector<9xf32>
    %572 = vector.multi_reduction <add>, %569, %cst_213 [1] : vector<9x32xf32> to vector<9xf32>
    %573 = vector.shape_cast %572 : vector<9xf32> to vector<9x1xf32>
    %cst_214 = arith.constant 3.200000e+01 : f32
    %574 = vector.broadcast %cst_214 : f32 to vector<9x1xf32>
    %575 = arith.divf %573, %574 : vector<9x1xf32>
    %576 = vector.broadcast %575 : vector<9x1xf32> to vector<9x32xf32>
    %577 = arith.subf %569, %576 : vector<9x32xf32>
    %578 = arith.mulf %577, %577 : vector<9x32xf32>
    %cst_215 = arith.constant dense<0.000000e+00> : vector<9xf32>
    %579 = vector.multi_reduction <add>, %578, %cst_215 [1] : vector<9x32xf32> to vector<9xf32>
    %580 = vector.shape_cast %579 : vector<9xf32> to vector<9x1xf32>
    %cst_216 = arith.constant 3.200000e+01 : f32
    %581 = vector.broadcast %cst_216 : f32 to vector<9x1xf32>
    %582 = arith.divf %580, %581 : vector<9x1xf32>
    %583 = vector.broadcast %575 : vector<9x1xf32> to vector<9x32xf32>
    %584 = arith.subf %569, %583 : vector<9x32xf32>
    %cst_217 = arith.constant 9.99999974E-6 : f32
    %585 = vector.broadcast %cst_217 : f32 to vector<9x1xf32>
    %586 = arith.addf %582, %585 : vector<9x1xf32>
    %587 = math.rsqrt %586 : vector<9x1xf32>
    %588 = vector.broadcast %587 : vector<9x1xf32> to vector<9x32xf32>
    %589 = arith.mulf %584, %588 : vector<9x32xf32>
    %590 = vector.broadcast %570 : vector<1x32xf32> to vector<9x32xf32>
    %591 = arith.mulf %589, %590 : vector<9x32xf32>
    %592 = vector.broadcast %571 : vector<1x32xf32> to vector<9x32xf32>
    %593 = arith.addf %591, %592 : vector<9x32xf32>
    %594 = arith.truncf %593 : vector<9x32xf32> to vector<9x32xbf16>
    %595 = arith.truncf %0 : vector<128x32xf32> to vector<128x32xbf16>
    %cst_218 = arith.constant dense<0.000000e+00> : vector<9x128xf32>
    %596 = tpu.matmul %594, %595, %cst_218 {dimension_numbers = #tpu.dot_dimension_numbers<[1], [1], [0], [0], [0, 0, 1, 0], [], []>} : vector<9x32xbf16>, vector<128x32xbf16>, vector<9x128xf32> -> vector<9x128xf32>
    %c0_219 = arith.constant 0 : index
    %c0_220 = arith.constant 0 : index
    %597 = vector.load %arg36[%c0_219, %c0_220] : memref<1x128xf32, #tpu.memory_space<vmem>>, vector<1x128xf32>
    %598 = vector.broadcast %597 : vector<1x128xf32> to vector<9x128xf32>
    %599 = arith.addf %596, %598 : vector<9x128xf32>
    %c0_221 = arith.constant 0 : index
    %c0_222 = arith.constant 0 : index
    %600 = vector.load %arg47[%c0_221, %c0_222] : memref<9x128xf32, #tpu.memory_space<vmem>>, vector<9x128xf32>
    tpu.vector_store %arg47[%c0_221, %c0_222], %599 {strides = array<i32>} : memref<9x128xf32, #tpu.memory_space<vmem>>, vector<9x128xf32>,
    %c0_223 = arith.constant 0 : index
    %c0_224 = arith.constant 0 : index
    %601 = vector.load %arg46[%c0_223, %c0_224] : memref<9x1xi32, #tpu.memory_space<vmem>>, vector<9x1xi32>
    %cst_225 = arith.constant dense<0xFF800000> : vector<9xf32>
    %602 = vector.multi_reduction <maximumf>, %599, %cst_225 [1] : vector<9x128xf32> to vector<9xf32>
    %603 = vector.shape_cast %602 : vector<9xf32> to vector<9x1xf32>
    %604 = vector.broadcast %603 : vector<9x1xf32> to vector<9x128xf32>
    %605 = arith.subf %599, %604 : vector<9x128xf32>
    %606 = math.exp %605 : vector<9x128xf32>
    %cst_226 = arith.constant dense<0.000000e+00> : vector<9xf32>
    %607 = vector.multi_reduction <add>, %606, %cst_226 [1] : vector<9x128xf32> to vector<9xf32>
    %608 = vector.shape_cast %607 : vector<9xf32> to vector<9x1xf32>
    %609 = math.log %608 : vector<9x1xf32>
    %610 = arith.addf %609, %603 : vector<9x1xf32>
    %611 = tpu.iota {dimensions = array<i32: 1>} : vector<9x128xi32>
    %612 = vector.broadcast %601 : vector<9x1xi32> to vector<9x128xi32>
    %613 = arith.cmpi eq, %611, %612 : vector<9x128xi32>
    %cst_227 = arith.constant 0.000000e+00 : f32
    %614 = vector.broadcast %cst_227 : f32 to vector<9x128xf32>
    %615 = arith.select %613, %599, %614 : vector<9x128xi1>, vector<9x128xf32>
    %cst_228 = arith.constant dense<0.000000e+00> : vector<9xf32>
    %616 = vector.multi_reduction <add>, %615, %cst_228 [1] : vector<9x128xf32> to vector<9xf32>
    %617 = vector.shape_cast %616 : vector<9xf32> to vector<9x1xf32>
    %618 = arith.subf %610, %617 : vector<9x1xf32>
    %cst_229 = arith.constant dense<0.000000e+00> : vector<1xf32>
    %619 = vector.multi_reduction <add>, %618, %cst_229 [0] : vector<9x1xf32> to vector<1xf32>
    %620 = vector.shape_cast %619 : vector<1xf32> to vector<1x1xf32>
    %cst_230 = arith.constant 0.111111112 : f32
    %621 = vector.broadcast %cst_230 : f32 to vector<1x1xf32>
    %622 = arith.mulf %620, %621 : vector<1x1xf32>
    %c0_231 = arith.constant 0 : index
    %c0_232 = arith.constant 0 : index
    %623 = vector.load %arg48[%c0_231, %c0_232] : memref<1x1xf32, #tpu.memory_space<vmem>>, vector<1x1xf32>
    tpu.vector_store %arg48[%c0_231, %c0_232], %622 {strides = array<i32>} : memref<1x1xf32, #tpu.memory_space<vmem>>, vector<1x1xf32>,
    return
  }
}

</mosaic_0001>

<bundles_post_ra>
// kernel: tile.19
= control target key start
LH: loop header
LB: loop body
LE: loop exit
PB: predicated region body
PF: predicated region fallthrough
CT: control target
= control target key end

     0   :  { %vm3_vm0 = vcmask 261120   ;;  %s60_s0 = inlined_call_operand.vmem [shape: f32[2,12,32], index: 0, kind: input, shape index: {}]   ;;  %s61_s1 = inlined_call_operand.vmem [shape: f32[24,32], index: 1, kind: output, shape index: {}]  }
   0x1   :  { %v2_v0 = vld [vmem:[%s60_s0] sm:$0xff]   ;;  %v20_v1 = vld [vmem:[%s60_s0 + $0x8] sm:$0xf]   ;;  %v22_v2 = vld [vmem:[%s60_s0 + $0x10] sm:$0xff]  }
   0x2   :  { %4 = vst.msk [vmem:[%s61_s1] sm:$0xff] %vm3_vm0, %v2_v0   ;;  %21 = vst.msk [vmem:[%s61_s1 + $0x8] sm:$0xf] %vm3_vm0, %v20_v1   ;;  %v24_v3 = vld [vmem:[%s60_s0 + $0x18] sm:$0xf]  }
   0x3   :  { %23 = vst.msk [vmem:[%s61_s1 + $0xc] sm:$0xff] %vm3_vm0, %v22_v2   ;;  %25 = vst.msk [vmem:[%s61_s1 + $0x14] sm:$0xf] %vm3_vm0, %v24_v3  }

// kernel: forward.1
= control target key start
LH: loop header
LB: loop body
LE: loop exit
PB: predicated region body
PF: predicated region fallthrough
CT: control target
= control target key end

     0   :  { %s4107_s6 = smov 1   ;;  %s4108_s10 = smov 2   ;;  %s5059_s0 = inlined_call_operand.smem [shape: u32[49], index: -1, kind: input, shape index: {}] }
   0x1   :  { %s4175_s5 = sld [smem:[%s5059_s0]]   ;;  %s4109_s14 = smov 3  }
   0x2   :  { %s4180_s9 = sld [smem:[%s5059_s0 + %s4107_s6]]   ;;  %s4110_s18 = smov 4  }
   0x3   :  { %s4185_s13 = sld [smem:[%s5059_s0 + %s4108_s10]]   ;;  %s4111_s22 = smov 5  }
   0x4   :  { %s4190_s17 = sld [smem:[%s5059_s0 + %s4109_s14]]   ;;  %s4112_s26 = smov 6  }
   0x5   :  { %s4195_s21 = sld [smem:[%s5059_s0 + %s4110_s18]]   ;;  %s4113_s30 = smov 7  }
   0x6   :  { %s4200_s25 = sld [smem:[%s5059_s0 + %s4111_s22]]   ;;  %s4114_s4 = smov 8  }
   0x7   :  { %5069 = sst [smem:[#allocation6_spill]] %s4175_s5  ;;  %s4115_s10 = smov 9  }
   0x8   :  { %5070 = sst [smem:[#allocation7_spill]] %s4180_s9  ;;  %s4116_s15 = smov 10  }
   0x9   :  { %5071 = sst [smem:[#allocation8_spill]] %s4185_s13  ;;  %s4117_s20 = smov 11  }
   0xa   :  { %5072 = sst [smem:[#allocation9_spill]] %s4190_s17  ;;  %s4119_s1 = smov 13  }
   0xb   :  { %5073 = sst [smem:[#allocation10_spill]] %s4195_s21  ;;  %s4120_s7 = smov 14  }
   0xc   :  { %5074 = sst [smem:[#allocation11_spill]] %s4200_s25  ;;  %s4122_s22 = smov 16  }
   0xd   :  { %s4205_s29 = sld [smem:[%s5059_s0 + %s4112_s26]]   ;;  %s4118_s26 = smov 12  }
   0xe   :  { %s4210_s3 = sld [smem:[%s5059_s0 + %s4113_s30]]   ;;  %s4123_s28 = smov 17  }
   0xf   :  { %s4215_s8 = sld [smem:[%s5059_s0 + %s4114_s4]]   ;;  %s4141_s16 = smov 35  }
  0x10   :  { %s4220_s14 = sld [smem:[%s5059_s0 + %s4115_s10]]   ;;  %s4142_s23 = smov 36  }
  0x11   :  { %s4225_s19 = sld [smem:[%s5059_s0 + %s4116_s15]]   ;;  %s4121_s15 = smov 15  }
  0x12   :  { %s4230_s24 = sld [smem:[%s5059_s0 + %s4117_s20]]   ;;  %s4144_s10 = smov 38  }
  0x13   :  { %5075 = sst [smem:[#allocation12_spill]] %s4205_s29 }
  0x14   :  { %5076 = sst [smem:[#allocation13_spill]] %s4210_s3 }
  0x15   :  { %5077 = sst [smem:[#allocation14_spill]] %s4215_s8 }
  0x16   :  { %5078 = sst [smem:[#allocation15_spill]] %s4220_s14 }
  0x17   :  { %5079 = sst [smem:[#allocation16_spill]] %s4225_s19 }
  0x18   :  { %5080 = sst [smem:[#allocation17_spill]] %s4230_s24 }
  0x19   :  { %s4235_s30 = sld [smem:[%s5059_s0 + %s4118_s26]]  }
  0x1a   :  { %s4240_s6 = sld [smem:[%s5059_s0 + %s4119_s1]]   ;;  %s4143_s1 = smov 37  }
  0x1b   :  { %s4245_s12 = sld [smem:[%s5059_s0 + %s4120_s7]]   ;;  %s4124_s7 = smov 18  }
  0x1c   :  { %s4250_s20 = sld [smem:[%s5059_s0 + %s4121_s15]]   ;;  %s4125_s15 = smov 19  }
  0x1d   :  { %s4255_s27 = sld [smem:[%s5059_s0 + %s4122_s22]]   ;;  %s4126_s22 = smov 20  }
  0x1e   :  { %s4260_s4 = sld [smem:[%s5059_s0 + %s4123_s28]]   ;;  %s4127_s28 = smov 21  }
  0x1f   :  { %5081 = sst [smem:[#allocation18_spill]] %s4235_s30 }
  0x20   :  { %5082 = sst [smem:[#allocation19_spill]] %s4240_s6 }
  0x21   :  { %5083 = sst [smem:[#allocation20_spill]] %s4245_s12 }
  0x22   :  { %5084 = sst [smem:[#allocation21_spill]] %s4250_s20 }
  0x23   :  { %5085 = sst [smem:[#allocation22_spill]] %s4255_s27 }
  0x24   :  { %5086 = sst [smem:[#allocation23_spill]] %s4260_s4 }
  0x25   :  { %s4265_s12 = sld [smem:[%s5059_s0 + %s4124_s7]]   ;;  %s4128_s7 = smov 22  }
  0x26   :  { %s4270_s20 = sld [smem:[%s5059_s0 + %s4125_s15]]   ;;  %s4129_s15 = smov 23  }
  0x27   :  { %s4275_s19 = sld [smem:[%s5059_s0 + %s4126_s22]]   ;;  %s4130_s22 = smov 24  }
  0x28   :  { %s4280_s8 = sld [smem:[%s5059_s0 + %s4127_s28]]   ;;  %s4131_s28 = smov 25  }
  0x29   :  { %s4285_s24 = sld [smem:[%s5059_s0 + %s4128_s7]]   ;;  %s4132_s7 = smov 26  }
  0x2a   :  { %s4290_s27 = sld [smem:[%s5059_s0 + %s4129_s15]]   ;;  %s4133_s15 = smov 27  }
  0x2b   :  { %5087 = sst [smem:[#allocation24_spill]] %s4265_s12 }
  0x2c   :  { %5088 = sst [smem:[#allocation25_spill]] %s4270_s20 }
  0x2d   :  { %5089 = sst [smem:[#allocation26_spill]] %s4275_s19 }
  0x2e   :  { %5090 = sst [smem:[#allocation27_spill]] %s4280_s8 }
  0x2f   :  { %s4295_s4 = sld [smem:[%s5059_s0 + %s4130_s22]]   ;;  %s4134_s22 = smov 28  }
  0x30   :  { %s4300_s14 = sld [smem:[%s5059_s0 + %s4131_s28]]   ;;  %s4135_s28 = smov 29  }
  0x31   :  { %s4305_s21 = sld [smem:[%s5059_s0 + %s4132_s7]]   ;;  %s4136_s7 = smov 30  }
  0x32   :  { %s4310_s29 = sld [smem:[%s5059_s0 + %s4133_s15]]   ;;  %s4137_s15 = smov 31  }
  0x33   :  { %s4315_s30 = sld [smem:[%s5059_s0 + %s4134_s22]]   ;;  %s4138_s22 = smov 32  }
  0x34   :  { %s4320_s6 = sld [smem:[%s5059_s0 + %s4135_s28]]   ;;  %s4139_s28 = smov 33  }
  0x35   :  { %s4325_s25 = sld [smem:[%s5059_s0 + %s4136_s7]]   ;;  %s4140_s7 = smov 34  }
  0x36   :  { %s4330_s3 = sld [smem:[%s5059_s0 + %s4137_s15]]   ;;  %s4149_s15 = smov 43  }
  0x37   :  { %s4335_s12 = sld [smem:[%s5059_s0 + %s4138_s22]]   ;;  %s4154_s22 = smov 48  }
  0x38   :  { %s4340_s19 = sld [smem:[%s5059_s0 + %s4139_s28]]  }
  0x39   :  { %5091 = sst [smem:[#allocation28_spill]] %s4315_s30 }
  0x3a   :  { %s3314_s20 = sld [smem:[%s5059_s0 + %s4140_s7]]  }
  0x3b   :  { %s4348_s8 = sld [smem:[%s5059_s0 + %s4141_s16]]   ;;  %s4145_s16 = smov 39  }
  0x3c   :  { %s4353_s5 = sld [smem:[%s5059_s0 + %s4142_s23]]   ;;  %s4146_s23 = smov 40  }
  0x3d   :  { %5092 = sst [smem:[#allocation29_spill]] %s4335_s12 }
  0x3e   :  { %5093 = sst [smem:[#allocation30_spill]] %s4340_s19 }
  0x3f   :  { %s4358_s13 = sld [smem:[%s5059_s0 + %s4143_s1]]   ;;  %s4147_s1 = smov 41  }
  0x40   :  { %s4363_s9 = sld [smem:[%s5059_s0 + %s4144_s10]]   ;;  %v103_v0 = vstv %s3314_s20  ;;  %s4148_s10 = smov 42  }
  0x41   :  { %5094 = sst [smem:[#allocation31_spill]] %s4348_s8  ;;  %104 = vst [vmem:[#allocation2] sm:$0x1] %v103_v0  ;;  %s4150_s20 = smov 44  }
  0x42   :  { %5095 = sst [smem:[#allocation32_spill]] %s4353_s5 }
  0x43   :  { %s4368_s8 = sld [smem:[%s5059_s0 + %s4145_s16]]  }
  0x44   :  { %s4373_s5 = sld [smem:[%s5059_s0 + %s4146_s23]]  }
  0x45   :  { %5096 = sst [smem:[#allocation33_spill]] %s4358_s13  ;;  %s4152_s13 = smov 46  }
  0x46   :  { %5097 = sst [smem:[#allocation34_spill]] %s4363_s9  ;;  %s4153_s9 = smov 47  }
  0x47   :  { %s4378_s7 = sld [smem:[%s5059_s0 + %s4147_s1]]   ;;  %s4151_s1 = smov 45  }
  0x48   :  { %s4383_s16 = sld [smem:[%s5059_s0 + %s4148_s10]]  }
  0x49   :  { %s4388_s23 = sld [smem:[%s5059_s0 + %s4149_s15]]  }
  0x4a   :  { %s3324_s28 = sld [smem:[%s5059_s0 + %s4150_s20]]  }
  0x4b   :  { %s4396_s12 = sld [smem:[%s5059_s0 + %s4151_s1]]  }
  0x4c   :  { %s4401_s19 = sld [smem:[%s5059_s0 + %s4152_s13]]  }
  0x4d   :  { %5098 = sst [smem:[#allocation35_spill]] %s4378_s7 }
  0x4e   :  { %s4406_s17 = sld [smem:[%s5059_s0 + %s4153_s9]]  }
  0x4f   :  { %s4411_s30 = sld [smem:[%s5059_s0 + %s4154_s22]]  }
  0x50   :  { %v217_v1 = vld [vmem:[%s3324_s28] sm:$0xff]  ;;  %v219_v2 = vld [vmem:[%s3324_s28 + $0x10] sm:$0xff]  ;;  %v4155_v3 = vmov 0   ;;  %v202_v5 = vld [vmem:[%s4388_s23 + $0x8] sm:$0xff] }
  0x51   :  { %3955 = vset.pattern.permute.xlu0 %v4155_v3  ;;  %3956 = vset.pattern.permute.xlu1 %v4155_v3  ;;  %v201_v4 = vld [vmem:[%s4388_s23] sm:$0xff]  ;;  %v203_v6 = vld [vmem:[%s4388_s23 + $0x10] sm:$0xff]  ;;  %v204_v8 = vld [vmem:[%s4388_s23 + $0x18] sm:$0xff] }
  0x52   :  { %226 = vperm.xlu0 %3955, %v217_v1   ;;  %232 = vperm.xlu1 %3956, %v219_v2   ;;  %v4416_v7 = vpack.c.bf16 %v202_v5, %v201_v4  ;;  %v218_v9 = vld [vmem:[%s3324_s28 + $0x8] sm:$0xff]  ;;  %v4419_v10 = vpack.c.bf16 %v204_v8, %v203_v6  ;;  %v205_v11 = vld [vmem:[%s4388_s23 + $0x20] sm:$0xff] }
  0x53   :  { %v206_v12 = vld [vmem:[%s4388_s23 + $0x28] sm:$0xff] }
  0x54   :  { %3563 = vmatprep.subr.bf16.mxu0 %v4416_v7  ;;  %v4426_v13 = vpack.c.bf16 %v206_v12, %v205_v11 }
  0x55   :  { %3564 = vmatpush3.bf16.msra.mxu0 %v4416_v7 }
  0x56   :  { %229 = vperm.xlu0 %3955, %v218_v9   ;;  %3565 = vmatprep.subr.bf16.mxu0 %v4419_v10 }
  0x57   :  { %105 = vsyncpa [#allocation4], 0  ;;  %v207_v14 = vld [vmem:[%s4388_s23 + $0x30] sm:$0xff]  ;;  %v208_v15 = vld [vmem:[%s4388_s23 + $0x38] sm:$0xff]  ;;  %v223_v29 = vlaneseq  ;;  %v4156_v34 = vmov 1.0|1.0  }
  0x58   :  { %v4432_v16 = vpack.c.bf16 %v208_v15, %v207_v14  ;;  %v209_v17 = vld [vmem:[%s4388_s23 + $0x40] sm:$0xff]  ;;  %v210_v18 = vld [vmem:[%s4388_s23 + $0x48] sm:$0xff]  ;;  %v211_v20 = vld [vmem:[%s4388_s23 + $0x50] sm:$0xff]  ;;  %vm303_vm5 = vcmask 261120   ;;  %vm383_vm10 = vcmask 15360   ;;  %s4160_s0 = smov 96  }
  0x59   :  { %3566 = vmatpush3.bf16.msra.mxu0 %v4419_v10  ;;  %v4438_v19 = vpack.c.bf16 %v210_v18, %v209_v17  ;;  %v212_v21 = vld [vmem:[%s4388_s23 + $0x58] sm:$0xff]  ;;  %v213_v23 = vld [vmem:[%s4388_s23 + $0x60] sm:$0xff]  ;;  %v214_v24 = vld [vmem:[%s4388_s23 + $0x68] sm:$0xff]  ;;  %v4462_v31 = vand.u32 127, %v223_v29  ;;  %s5107_s7 = sld [smem:[#allocation31_spill]]  ;;  %s5110_s28 = sld [smem:[#allocation33_spill]] }
  0x5a   :  { %3567 = vmatprep.subr.bf16.mxu0 %v4426_v13  ;;  %v4444_v22 = vpack.c.bf16 %v212_v21, %v211_v20  ;;  %v4450_v25 = vpack.c.bf16 %v214_v24, %v213_v23  ;;  %v215_v26 = vld [vmem:[%s4388_s23 + $0x70] sm:$0xff]  ;;  %v216_v27 = vld [vmem:[%s4388_s23 + $0x78] sm:$0xff]  ;;  %v220_v35 = vld [vmem:[%s4383_s16] sm:$0xff]  ;;  %s5109_s23 = sld [smem:[#allocation34_spill]]  ;;  %s5111_s1 = sld [smem:[#allocation25_spill]] }
  0x5b   :  { %v4456_v28 = vpack.c.bf16 %v216_v27, %v215_v26  ;;  %v221_v38 = vld [vmem:[%s4383_s16 + $0x8] sm:$0xff]  ;;  %v222_v41 = vld [vmem:[%s4383_s16 + $0x10] sm:$0xff]  ;;  %v479_v63 = vld [vmem:[%s4300_s14] sm:$0xff]  ;;  %s5108_s16 = sld [smem:[#allocation27_spill]]  ;;  %s5112_s2 = sld [smem:[#allocation26_spill]] }
  0x5c   :  { %v480_v0 = vld [vmem:[%s4300_s14 + $0x8] sm:$0xff]  ;;  %v481_v1 = vld [vmem:[%s4300_s14 + $0x10] sm:$0xff]  ;;  %v482_v3 = vld [vmem:[%s4300_s14 + $0x18] sm:$0xff]  ;;  %s4163_s14 = smov 112   ;;  %s5113_s13 = sld [smem:[#allocation24_spill]] }
  0x5d   :  { %3568 = vmatpush3.bf16.msra.mxu0 %v4426_v13  ;;  %v491_v2 = vpack.c.bf16 %v480_v0, %v479_v63  ;;  %v492_v4 = vpack.c.bf16 %v482_v3, %v481_v1  ;;  %v3336_v20 = vld [vmem:[%s4373_s5] ss:$0 sm:$0xff]  ;;  %vm3884_vm13 = vmpackc.low %vm383_vm10, %vm383_vm10  ;;  %s4161_s5 = smov 64   ;;  %s5114_s10 = sld [smem:[#allocation13_spill]] }
  0x5e   :  { %3569 = vmatprep.subr.bf16.mxu0 %v4432_v16  ;;  %v3337_v27 = vld [vmem:[%s4368_s8] ss:$0 sm:$0xff]  ;;  %s4162_s8 = smov 80   ;;  %s5115_s11 = sld [smem:[#allocation11_spill]] }
  0x5f   :  { %3598 = vmatprep.subr.bf16.mxu1 %v491_v2  ;;  %s5116_s9 = sld [smem:[#allocation19_spill]]  ;;  %s5117_s15 = sld [smem:[#allocation18_spill]] }
  0x60   :  { %3599 = vmatpush3.bf16.msra.mxu1 %v491_v2  ;;  %s5118_s18 = sld [smem:[#allocation12_spill]]  ;;  %s5119_s22 = sld [smem:[#allocation10_spill]] }
  0x61   :  { %3570 = vmatpush3.bf16.msra.mxu0 %v4432_v16  ;;  %3600 = vmatprep.subr.bf16.mxu1 %v492_v4  ;;  %s5120_s20 = sld [smem:[#allocation15_spill]] }
  0x62   :  { %3571 = vmatprep.subr.bf16.mxu0 %v4438_v19  ;;  %s5121_s26 = sld [smem:[#allocation23_spill]] }
  0x64   :  { %3601 = vmatpush3.bf16.msra.mxu1 %v492_v4 }
  0x65   :  { %3572 = vmatpush3.bf16.msra.mxu0 %v4438_v19 }
  0x66   :  { %3573 = vmatprep.subr.bf16.mxu0 %v4444_v22 }
  0x69   :  { %3574 = vmatpush3.bf16.msra.mxu0 %v4444_v22 }
  0x6a   :  { %3575 = vmatprep.subr.bf16.mxu0 %v4450_v25 }
  0x6d   :  { %3576 = vmatpush3.bf16.msra.mxu0 %v4450_v25 }
  0x6e   :  { %3577 = vmatprep.subr.bf16.mxu0 %v4456_v28 }
  0x71   :  { %3578 = vmatpush3.bf16.msra.mxu0 %v4456_v28 }
  0xd1   :  { %v227_v30 = vpop.permute.xlu0 %226  ;;  %v233_v32 = vpop.permute.xlu1 %232 }
  0xd2   :  { %vm236_vm0 = vcmp.eq.s32.totalorder %v4462_v31, %v233_v32  ;;  %vm234_vm2 = vcmp.eq.s32.totalorder %v4462_v31, %v227_v30 }
  0xd3   :  { %vm3334_vm1 = vmpackc.low %vm236_vm0, %vm236_vm0 }
  0xd5   :  { %v230_v33 = vpop.permute.xlu0 %229 }
  0xd6   :  { %vm235_vm3 = vcmp.eq.s32.totalorder %v4462_v31, %v230_v33 }
  0xd7   :  { %vm3332_vm4 = vmpackc.low %vm235_vm3, %vm234_vm2  ;;  %vm566_vm2 = vcmask 130048   ;;  %vm627_vm3 = vcmask 195584  }
  0xd8   :  { %3579 = vmatprep.mubr.msk.bf16.mxu0 %vm3332_vm4, %v4156_v34  ;;  %vm674_vm4 = vcmask 1043456  }
  0xd9   :  { %3580 = vmatmul.mubr.msk.bf16.vlgmr.msra.gmra.mrb[0].mxu0 %vm3334_vm1, %v4156_v34  ;;  %vm4159_vm1 = vmmov 0  }
 0x1ac   :  { %v3581_v36 = vpop.f32.mrb[0].mxu0 }
 0x1ad   :  { %v287_v37 = vpop.f32.mrb[1].mxu0  ;;  %v296_v45 = vadd.f32 %v3581_v36, %v222_v41  ;;  %v4497_v41 = vshrl.u32 %v223_v29, 7  ;;  %v4158_v29 = vmov 0.0  }
 0x1ae   :  { %v288_v39 = vadd.f32 %v287_v37, %v220_v35  ;;  %v3582_v40 = vpop.f32.mrb[2].mxu0  ;;  %3589 = vmatprep.mubr.msk.f32.mxu0 %vm4159_vm1, %v4158_v29 }
 0x1af   :  { %v290_v42 = vpop.f32.mrb[3].mxu0  ;;  %v310_v47 = vsel %vm303_vm5, %v296_v45, 0.0 }
 0x1b0   :  { %v291_v43 = vadd.f32 %v290_v42, %v221_v38  ;;  %v304_v44 = vsel %vm303_vm5, %v288_v39, 0.0  ;;  %v366_v42 = vmul.u32 12, %v4462_v31 }
 0x1b1   :  { %305 = vadd.xlane.f32.xlu1 %v304_v44  ;;  %v4502_v44 = vadd.s32 8, %v4497_v41 }
 0x1b2   :  { %v307_v46 = vsel %vm303_vm5, %v291_v43, 0.0  ;;  %vm367_vm6 = vcmp.ge.s32.totalorder %v4497_v41, %v366_v42 }
 0x1b3   :  { %308 = vadd.xlane.f32.xlu0 %v307_v46  ;;  %vm368_vm7 = vcmp.ge.s32.totalorder %v4502_v44, %v366_v42 }
 0x1b7   :  { %311 = vadd.xlane.f32.xlu0 %v310_v47 }
 0x23e   :  { %v306_v48 = vpop.xlane.xlu1 %305 }
 0x23f   :  { %v314_v49 = vmul.f32 0.03125, %v306_v48 }
 0x240   :  { %v309_v50 = vpop.xlane.xlu0 %308 }
 0x241   :  { %v317_v51 = vsub.f32 %v288_v39, %v314_v49  ;;  %v315_v52 = vmul.f32 0.03125, %v309_v50  ;;  %v365_v49 = vadd.s32 16, %v4497_v41 }
 0x243   :  { %v318_v53 = vsub.f32 %v291_v43, %v315_v52  ;;  %v320_v54 = vmul.f32 %v317_v51, %v317_v51  ;;  %v4157_v43 = vmov 0.0|0.0   ;;  %vm369_vm14 = vcmp.ge.s32.totalorder %v365_v49, %v366_v42 }
 0x244   :  { %v312_v55 = vpop.xlane.xlu0 %311  ;;  %3882 = vmatprep.subr.bf16.mxu0 %v4157_v43 }
 0x245   :  { %v316_v56 = vmul.f32 0.03125, %v312_v55  ;;  %v323_v57 = vsel %vm303_vm5, %v320_v54, 0.0  ;;  %v321_v58 = vmul.f32 %v318_v53, %v318_v53 }
 0x246   :  { %324 = vadd.xlane.f32.xlu1 %v323_v57 }
 0x247   :  { %v319_v59 = vsub.f32 %v296_v45, %v316_v56  ;;  %v326_v60 = vsel %vm303_vm5, %v321_v58, 0.0  ;;  %v370_v45 = vadd.s32 12, %v366_v42 }
 0x248   :  { %327 = vadd.xlane.f32.xlu0 %v326_v60 }
 0x249   :  { %v322_v61 = vmul.f32 %v319_v59, %v319_v59  ;;  %vm371_vm8 = vcmp.lt.s32.totalorder %v4497_v41, %v370_v45  ;;  %vm372_vm9 = vcmp.lt.s32.totalorder %v4502_v44, %v370_v45  ;;  %vm373_vm15 = vcmp.lt.s32.totalorder %v365_v49, %v370_v45 }
 0x24a   :  { %vm374_vm11 = vmand %vm367_vm6, %vm371_vm8 }
 0x24b   :  { %v329_v62 = vsel %vm303_vm5, %v322_v61, 0.0  ;;  %vm375_vm12 = vmand %vm368_vm7, %vm372_vm9  ;;  %v4509_v46 = vsel %vm374_vm11, 1.0, %v4158_v29  ;;  %vm1249_vm9 = vcmask 523264  }
 0x24c   :  { %330 = vadd.xlane.f32.xlu1 %v329_v62  ;;  %v4512_v47 = vsel %vm375_vm12, 1.0, %v4158_v29  ;;  %vm376_vm0 = vmand %vm369_vm14, %vm373_vm15  ;;  %vm1557_vm12 = vcmask 9216  }
 0x24d   :  { %v3883_v48 = vpack.c.bf16 %v4512_v47, %v4509_v46  ;;  %v4521_v50 = vsel %vm376_vm0, 1.0, %v4158_v29 }
 0x24f   :  { %3885 = vmatpush3.bf16.xpose.msk.msra.mxu0 %vm3884_vm13, %v3883_v48  ;;  %vm1575_vm13 = vcmask 1040384  }
 0x250   :  { %3587 = vmatprep.subr.mxu0 %v4158_v29 }
 0x257   :  { %3588 = vmatpush3.xpose.msk.msra.mxu0 %vm383_vm10, %v4521_v50 }
 0x25a   :  { %3590 = vmatmul.mubr.msk.f32.vlgmr.msra.gmra.mrb[4].mxu0 %vm383_vm10, %v4509_v46 }
 0x25b   :  { %3592 = vmatprep.mubr.msk.f32.mxu0 %vm4159_vm1, %v4158_v29 }
 0x25e   :  { %3593 = vmatmul.mubr.msk.f32.gmra.mrb[6].mxu0 %vm383_vm10, %v4512_v47 }
 0x25f   :  { %3595 = vmatprep.mubr.msk.f32.mxu0 %vm4159_vm1, %v4158_v29 }
 0x262   :  { %3596 = vmatmul.mubr.msk.f32.gmra.mrb[8].mxu0 %vm383_vm10, %v4521_v50 }
 0x2d3   :  { %v325_v5 = vpop.xlane.xlu1 %324 }
 0x2d4   :  { %v332_v6 = vmul.f32 0.03125, %v325_v5 }
 0x2d5   :  { %v328_v8 = vpop.xlane.xlu0 %327 }
 0x2d6   :  { %v335_v9 = vadd.f32 1e-05, %v332_v6  ;;  %v333_v11 = vmul.f32 0.03125, %v328_v8 }
 0x2d8   :  { %3957 = vrsqrt.f32 %v335_v9  ;;  %v336_v12 = vadd.f32 1e-05, %v333_v11 }
 0x2d9   :  { %v331_v14 = vpop.xlane.xlu1 %330 }
 0x2da   :  { %3959 = vrsqrt.f32 %v336_v12  ;;  %v334_v15 = vmul.f32 0.03125, %v331_v14 }
 0x2dc   :  { %v337_v17 = vadd.f32 1e-05, %v334_v15 }
 0x2de   :  { %3961 = vrsqrt.f32 %v337_v17 }
 0x2e2   :  { %v3958_v18 = vpop.eup %3957 }
 0x2e3   :  { %v341_v21 = vmul.f32 %v3958_v18, %v317_v51  ;;  %v3350_v51 = vld [vmem:[%s4290_s27] ss:$0 sm:$0xff]  ;;  %s4164_s27 = smov 48  }
 0x2e4   :  { %v3960_v23 = vpop.eup %3959 }
 0x2e5   :  { %v342_v24 = vmul.f32 %v3960_v23, %v318_v53  ;;  %v350_v26 = vmul.f32 %v3336_v20, %v341_v21 }
 0x2e7   :  { %v351_v30 = vmul.f32 %v3336_v20, %v342_v24  ;;  %v4484_v35 = vadd.f32 %v3337_v27, %v350_v26 }
 0x2e8   :  { %v3962_v32 = vpop.eup %3961 }
 0x2e9   :  { %v343_v33 = vmul.f32 %v3962_v32, %v319_v59  ;;  %v4486_v36 = vadd.f32 %v3337_v27, %v351_v30 }
 0x2eb   :  { %v352_v37 = vmul.f32 %v3336_v20, %v343_v33  ;;  %v489_v38 = vpack.c.bf16 %v4486_v36, %v4484_v35 }
 0x2ed   :  { %v4490_v39 = vadd.f32 %v3337_v27, %v352_v37  ;;  %3602 = vmatprep.mubr.msk.bf16.mxu1 %vm303_vm5, %v489_v38 }
 0x2ef   :  { %v490_v40 = vpack.c.bf16 %v4490_v39, %v4490_v39 }
 0x2f1   :  { %3603 = vmatmul.mubr.msk.bf16.vlgmr.msra.gmra.mrb[0].mxu1 %vm303_vm5, %v490_v40 }
 0x32d   :  { %v459_v6 = vpop.f32.mrb[4].mxu0 }
 0x32e   :  { %v3591_v8 = vpop.f32.mrb[5].mxu0  ;;  %v3347_v15 = vadd.f32 -1.0, %v459_v6 }
 0x330   :  { %v4555_v20 = vmul.f32 1e+09, %v3347_v15 }
 0x331   :  { %v464_v9 = vpop.f32.mrb[6].mxu0 }
 0x332   :  { %v3594_v11 = vpop.f32.mrb[7].mxu0  ;;  %v3348_v17 = vadd.f32 -1.0, %v464_v9 }
 0x334   :  { %v4557_v21 = vmul.f32 1e+09, %v3348_v17 }
 0x335   :  { %v469_v12 = vpop.f32.mrb[8].mxu0 }
 0x336   :  { %v3597_v14 = vpop.f32.mrb[9].mxu0  ;;  %v3349_v18 = vadd.f32 -1.0, %v469_v12 }
 0x338   :  { %v4559_v26 = vmul.f32 1e+09, %v3349_v18 }
 0x3c4   :  { %v3604_v52 = vpop.f32.mrb[0].mxu1 }
 0x3c5   :  { %v548_v53 = vadd.f32 %v3604_v52, %v3350_v51  ;;  %v539_v54 = vpop.f32.mrb[1].mxu1 }
 0x3c6   :  { %v540_v55 = vadd.f32 %v3350_v51, %v539_v54  ;;  %v3605_v56 = vpop.f32.mrb[2].mxu1 }
 0x3c7   :  { %v4532_v57 = vpack.c.bf16 %v548_v53, %v548_v53  ;;  %v542_v58 = vpop.f32.mrb[3].mxu1  ;;  %v555_v4 = vmul.f32 0.25, %v548_v53 }
 0x3c8   :  { %v543_v59 = vadd.f32 %v3350_v51, %v542_v58  ;;  %v553_v60 = vmul.f32 0.25, %v540_v55 }
 0x3c9   :  { %564 = vrot.lane.b32.xlu1 %v4532_v57, %s4160_s0  ;;  %v557_v5 = vpack.c.bf16 %v555_v4, %v555_v4 }
 0x3ca   :  { %v554_v61 = vmul.f32 0.25, %v543_v59  ;;  %v4540_v62 = vpack.c.bf16 %v543_v59, %v540_v55 }
 0x3cc   :  { %v4544_v63 = vpack.c.bf16 %v554_v61, %v553_v60  ;;  %562 = vrot.lane.b32.xlu0 %v4540_v62, %s4160_s0 }
 0x3ce   :  { %3610 = vmatprep.mubr.msk.bf16.mxu1 %vm566_vm2, %v4544_v63 }
 0x43b   :  { %v565_v2 = vpop.permute.xlu1 %564 }
 0x43c   :  { %v577_v3 = vsel %vm566_vm2, %v565_v2, 0 }
 0x43e   :  { %v563_v0 = vpop.permute.xlu0 %562 }
 0x43f   :  { %3889 = vmatprep.subr.msk.bf16.mxu1 %vm566_vm2, %v563_v0  ;;  %v574_v1 = vsel %vm566_vm2, %v563_v0, 0 }
 0x440   :  { %3607 = vmatpush3.bf16.xpose.msra.mxu1 %v574_v1 }
 0x441   :  { %3890 = vmatprep.subr.msk.bf16.mxu1 %vm566_vm2, %v565_v2 }
 0x448   :  { %3609 = vmatpush3.bf16.xpose.msra.mxu1 %v577_v3 }
 0x44f   :  { %3611 = vmatmul.mubr.msk.bf16.vlgmr.msra.gmra.mrb[4].mxu1 %vm566_vm2, %v557_v5 }
 0x522   :  { %v3612_v23 = vpop.f32.mrb[4].mxu1 }
 0x523   :  { %v613_v24 = vpop.f32.mrb[5].mxu1  ;;  %v622_v38 = vadd.f32 %v3612_v23, %v4559_v26 }
 0x524   :  { %v614_v27 = vadd.f32 %v613_v24, %v4555_v20  ;;  %v3613_v30 = vpop.f32.mrb[6].mxu1 }
 0x525   :  { %v616_v32 = vpop.f32.mrb[7].mxu1  ;;  %v634_v42 = vsel %vm627_vm3, %v622_v38, -inf }
 0x526   :  { %v617_v33 = vadd.f32 %v616_v32, %v4557_v21  ;;  %v628_v37 = vsel %vm627_vm3, %v614_v27, -inf }
 0x527   :  { %629 = vmax.xlane.f32.xlu1 %v628_v37  ;;  %v484_v37 = vld [vmem:[%s4295_s4] sm:$0xff] }
 0x528   :  { %v631_v40 = vsel %vm627_vm3, %v617_v33, -inf }
 0x529   :  { %632 = vmax.xlane.f32.xlu0 %v631_v40 }
 0x52d   :  { %635 = vmax.xlane.f32.xlu0 %v634_v42 }
 0x5b4   :  { %v630_v45 = vpop.xlane.xlu1 %629 }
 0x5b5   :  { %v637_v51 = vsub.f32 %v614_v27, %v630_v45 }
 0x5b6   :  { %v633_v48 = vpop.xlane.xlu0 %632 }
 0x5b7   :  { %v638_v49 = vsub.f32 %v617_v33, %v633_v48  ;;  %v640_v55 = vmul.f32 1.442695, %v637_v51 }
 0x5b9   :  { %v642_v52 = vmul.f32 1.442695, %v638_v49 }
 0x5ba   :  { %v636_v53 = vpop.xlane.xlu0 %635 }
 0x5bb   :  { %3963 = vpow2.f32 %v642_v52  ;;  %v639_v54 = vsub.f32 %v622_v38, %v636_v53  ;;  %v485_v38 = vld [vmem:[%s4295_s4 + $0x8] sm:$0xff] }
 0x5bc   :  { %v728_v40 = vpack.c.bf16 %v485_v38, %v484_v37 }
 0x5bd   :  { %v644_v56 = vmul.f32 1.442695, %v639_v54 }
 0x5bf   :  { %3965 = vpow2.f32 %v644_v56 }
 0x5c0   :  { %3967 = vpow2.f32 %v640_v55 }
 0x5c5   :  { %v3964_v58 = vpop.eup %3963 }
 0x5c6   :  { %v649_v59 = vsel %vm627_vm3, %v3964_v58, 0.0 }
 0x5c7   :  { %650 = vadd.xlane.f32.xlu0 %v649_v59 }
 0x5c9   :  { %v3966_v60 = vpop.eup %3965 }
 0x5ca   :  { %v652_v61 = vsel %vm627_vm3, %v3966_v60, 0.0  ;;  %v3968_v0 = vpop.eup %3967 }
 0x5cb   :  { %653 = vadd.xlane.f32.xlu1 %v652_v61  ;;  %v646_v1 = vsel %vm627_vm3, %v3968_v0, 0.0 }
 0x5cf   :  { %647 = vadd.xlane.f32.xlu1 %v646_v1 }
 0x5dd   :  { %663 = vrot.lane.b32.xlu0 %v4540_v62, %s4161_s5 }
 0x5e0   :  { %665 = vrot.lane.b32.xlu1 %v4532_v57, %s4161_s5 }
 0x5e1   :  { %737 = vrot.lane.b32.xlu0 %v4532_v57, %s4162_s8 }
 0x5e4   :  { %735 = vrot.lane.b32.xlu1 %v4540_v62, %s4162_s8 }
 0x5e5   :  { %733 = vrot.lane.b32.xlu0 %v557_v5, %s4163_s14 }
 0x5e8   :  { %731 = vrot.lane.b32.xlu1 %v4544_v63, %s4163_s14 }
 0x654   :  { %v651_v2 = vpop.xlane.xlu0 %650 }
 0x658   :  { %v664_v3 = vpop.permute.xlu0 %663  ;;  %v654_v4 = vpop.xlane.xlu1 %653 }
 0x659   :  { %3614 = vmatprep.subr.bf16.mxu0 %v664_v3  ;;  %3969 = vrcp.f32 %v654_v4 }
 0x65a   :  { %3615 = vmatpush3.bf16.msra.mxu0 %v664_v3  ;;  %3971 = vrcp.f32 %v651_v2 }
 0x65c   :  { %v648_v6 = vpop.xlane.xlu1 %647  ;;  %v738_v30 = vpop.permute.xlu0 %737 }
 0x65d   :  { %3973 = vrcp.f32 %v648_v6  ;;  %v749_v32 = vsel %vm566_vm2, %v738_v30, 0 }
 0x660   :  { %v666_v8 = vpop.permute.xlu1 %665  ;;  %v734_v33 = vpop.permute.xlu0 %733 }
 0x661   :  { %v676_v9 = vsel %vm674_vm4, %v666_v8, 0  ;;  %3891 = vmatprep.subr.msk.bf16.mxu0 %vm674_vm4, %v666_v8 }
 0x662   :  { %3617 = vmatpush3.bf16.msra.mxu0 %v676_v9 }
 0x663   :  { %v3970_v5 = vpop.eup %3969 }
 0x664   :  { %v736_v11 = vpop.permute.xlu1 %735  ;;  %v3972_v12 = vpop.eup %3971  ;;  %v660_v14 = vmul.f32 %v3970_v5, %v3966_v60 }
 0x665   :  { %3892 = vmatprep.subr.msk.bf16.mxu0 %vm566_vm2, %v736_v11  ;;  %v659_v17 = vmul.f32 %v3972_v12, %v3964_v58  ;;  %v746_v24 = vsel %vm566_vm2, %v736_v11, 0 }
 0x666   :  { %v662_v23 = vpack.c.bf16 %v660_v14, %v660_v14 }
 0x667   :  { %v3974_v63 = vpop.eup %3973 }
 0x668   :  { %v658_v15 = vmul.f32 %v3974_v63, %v3968_v0  ;;  %v732_v27 = vpop.permute.xlu1 %731 }
 0x66a   :  { %v661_v18 = vpack.c.bf16 %v659_v17, %v658_v15 }
 0x66c   :  { %3618 = vmatprep.mubr.msk.bf16.mxu0 %vm627_vm3, %v661_v18 }
 0x66d   :  { %3619 = vmatmul.mubr.msk.bf16.vlgmr.msra.gmra.mrb[12].mxu0 %vm627_vm3, %v662_v23 }
 0x66e   :  { %3623 = vmatpush3.bf16.xpose.msra.mxu0 %v746_v24  ;;  %3626 = vmatprep.mubr.msk.bf16.mxu0 %vm566_vm2, %v732_v27 }
 0x66f   :  { %3893 = vmatprep.subr.msk.bf16.mxu0 %vm566_vm2, %v738_v30 }
 0x676   :  { %3625 = vmatpush3.bf16.xpose.msra.mxu0 %v749_v32 }
 0x677   :  { %3644 = vmatprep.subr.bf16.mxu0 %v728_v40 }
 0x67d   :  { %3627 = vmatmul.mubr.msk.bf16.vlgmr.msra.gmra.mrb[16].mxu0 %vm566_vm2, %v734_v33 }
 0x67e   :  { %3645 = vmatpush3.bf16.msra.mxu0 %v728_v40 }
 0x740   :  { %v3620_v42 = vpop.f32.mrb[12].mxu0 }
 0x741   :  { %v712_v45 = vpop.f32.mrb[13].mxu0  ;;  %v727_v52 = vpack.c.bf16 %v3620_v42, %v3620_v42 }
 0x742   :  { %v3621_v48 = vpop.f32.mrb[14].mxu0 }
 0x743   :  { %v715_v49 = vpop.f32.mrb[15].mxu0 }
 0x744   :  { %v726_v51 = vpack.c.bf16 %v715_v49, %v712_v45 }
 0x746   :  { %3646 = vmatprep.mubr.msk.bf16.mxu0 %vm566_vm2, %v726_v51 }
 0x747   :  { %3647 = vmatmul.mubr.msk.bf16.vlgmr.msra.gmra.mrb[20].mxu0 %vm566_vm2, %v727_v52  ;;  %v486_v52 = vld [vmem:[%s4295_s4 + $0x10] sm:$0xff] }
 0x750   :  { %v3628_v53 = vpop.f32.mrb[16].mxu0 }
 0x751   :  { %v785_v54 = vpop.f32.mrb[17].mxu0  ;;  %v794_v61 = vadd.f32 %v3628_v53, %v4559_v26  ;;  %v487_v53 = vld [vmem:[%s4295_s4 + $0x18] sm:$0xff]  ;;  %s5106_s4 = sld [smem:[#allocation35_spill]] }
 0x752   :  { %v786_v55 = vadd.f32 %v785_v54, %v4555_v20  ;;  %v3629_v56 = vpop.f32.mrb[18].mxu0  ;;  %v898_v54 = vpack.c.bf16 %v487_v53, %v486_v52 }
 0x753   :  { %v788_v58 = vpop.f32.mrb[19].mxu0  ;;  %v805_v1 = vsel %vm627_vm3, %v794_v61, -inf }
 0x754   :  { %v789_v59 = vadd.f32 %v788_v58, %v4557_v21  ;;  %v799_v60 = vsel %vm627_vm3, %v786_v55, -inf }
 0x755   :  { %800 = vmax.xlane.f32.xlu1 %v799_v60 }
 0x756   :  { %v802_v0 = vsel %vm627_vm3, %v789_v59, -inf }
 0x757   :  { %803 = vmax.xlane.f32.xlu0 %v802_v0 }
 0x75b   :  { %806 = vmax.xlane.f32.xlu0 %v805_v1  ;;  %v3365_v1 = vld [vmem:[%s4285_s24] ss:$0 sm:$0xff]  ;;  %s5103_s24 = sld [smem:[#allocation7_spill]] }
 0x7e2   :  { %v801_v2 = vpop.xlane.xlu1 %800 }
 0x7e3   :  { %v808_v6 = vsub.f32 %v786_v55, %v801_v2 }
 0x7e4   :  { %v804_v3 = vpop.xlane.xlu0 %803 }
 0x7e5   :  { %v809_v4 = vsub.f32 %v789_v59, %v804_v3  ;;  %v811_v21 = vmul.f32 1.442695, %v808_v6 }
 0x7e7   :  { %v813_v20 = vmul.f32 1.442695, %v809_v4 }
 0x7e8   :  { %v807_v8 = vpop.xlane.xlu0 %806 }
 0x7e9   :  { %3975 = vpow2.f32 %v813_v20  ;;  %v810_v9 = vsub.f32 %v794_v61, %v807_v8 }
 0x7eb   :  { %v815_v5 = vmul.f32 1.442695, %v810_v9 }
 0x7ed   :  { %3977 = vpow2.f32 %v815_v5 }
 0x7ee   :  { %3979 = vpow2.f32 %v811_v21 }
 0x7f3   :  { %v3976_v11 = vpop.eup %3975 }
 0x7f4   :  { %v820_v26 = vsel %vm627_vm3, %v3976_v11, 0.0 }
 0x7f5   :  { %821 = vadd.xlane.f32.xlu0 %v820_v26 }
 0x7f7   :  { %v3978_v12 = vpop.eup %3977 }
 0x7f8   :  { %v823_v63 = vsel %vm627_vm3, %v3978_v12, 0.0  ;;  %v3980_v14 = vpop.eup %3979 }
 0x7f9   :  { %824 = vadd.xlane.f32.xlu1 %v823_v63  ;;  %v817_v15 = vsel %vm627_vm3, %v3980_v14, 0.0 }
 0x7fd   :  { %818 = vadd.xlane.f32.xlu1 %v817_v15 }
 0x80b   :  { %834 = vrot.lane.b32.xlu0 %v4540_v62, %s4164_s27 }
 0x80e   :  { %836 = vrot.lane.b32.xlu1 %v4532_v57, %s4164_s27 }
 0x81a   :  { %v3648_v17 = vpop.f32.mrb[20].mxu0 }
 0x81b   :  { %v993_v18 = vpop.f32.mrb[21].mxu0 }
 0x81c   :  { %v3649_v23 = vpop.f32.mrb[22].mxu0 }
 0x81d   :  { %v996_v24 = vpop.f32.mrb[23].mxu0 }
 0x882   :  { %v822_v27 = vpop.xlane.xlu0 %821 }
 0x886   :  { %v835_v30 = vpop.permute.xlu0 %834  ;;  %v825_v32 = vpop.xlane.xlu1 %824 }
 0x887   :  { %3630 = vmatprep.subr.bf16.mxu1 %v835_v30  ;;  %3981 = vrcp.f32 %v825_v32 }
 0x888   :  { %3631 = vmatpush3.bf16.msra.mxu1 %v835_v30  ;;  %3983 = vrcp.f32 %v822_v27 }
 0x88a   :  { %v819_v33 = vpop.xlane.xlu1 %818 }
 0x88b   :  { %3985 = vrcp.f32 %v819_v33 }
 0x88e   :  { %v837_v37 = vpop.permute.xlu1 %836 }
 0x88f   :  { %v846_v62 = vsel %vm674_vm4, %v837_v37, 0  ;;  %3894 = vmatprep.subr.msk.bf16.mxu1 %vm674_vm4, %v837_v37 }
 0x890   :  { %3633 = vmatpush3.bf16.msra.mxu1 %v846_v62 }
 0x891   :  { %v3982_v57 = vpop.eup %3981  ;;  %3638 = vmatprep.subr.bf16.mxu1 %v898_v54 }
 0x892   :  { %v3984_v38 = vpop.eup %3983  ;;  %v831_v42 = vmul.f32 %v3982_v57, %v3978_v12 }
 0x893   :  { %v830_v48 = vmul.f32 %v3984_v38, %v3976_v11 }
 0x894   :  { %v833_v51 = vpack.c.bf16 %v831_v42, %v831_v42  ;;  %v1079_v42 = vld [vmem:[%s4310_s29 + $0x8] sm:$0xff] }
 0x895   :  { %v3986_v40 = vpop.eup %3985 }
 0x896   :  { %v829_v45 = vmul.f32 %v3986_v40, %v3980_v14  ;;  %v1078_v40 = vld [vmem:[%s4310_s29] sm:$0xff] }
 0x898   :  { %v832_v49 = vpack.c.bf16 %v830_v48, %v829_v45  ;;  %v1085_v45 = vpack.c.bf16 %v1079_v42, %v1078_v40  ;;  %v1080_v48 = vld [vmem:[%s4310_s29 + $0x10] sm:$0xff] }
 0x89a   :  { %3634 = vmatprep.mubr.msk.bf16.mxu1 %vm627_vm3, %v832_v49  ;;  %v1081_v49 = vld [vmem:[%s4310_s29 + $0x18] sm:$0xff]  ;;  %s5101_s29 = sld [smem:[#allocation30_spill]] }
 0x89b   :  { %3635 = vmatmul.mubr.msk.bf16.vlgmr.msra.gmra.mrb[8].mxu1 %vm627_vm3, %v833_v51  ;;  %v1086_v51 = vpack.c.bf16 %v1081_v49, %v1080_v48 }
 0x89c   :  { %3639 = vmatpush3.bf16.msra.mxu1 %v898_v54 }
 0x89d   :  { %3650 = vmatprep.subr.bf16.mxu1 %v1085_v45 }
 0x96e   :  { %v3636_v55 = vpop.f32.mrb[8].mxu1 }
 0x96f   :  { %v882_v56 = vpop.f32.mrb[9].mxu1  ;;  %v897_v61 = vpack.c.bf16 %v3636_v55, %v3636_v55 }
 0x970   :  { %v3637_v58 = vpop.f32.mrb[10].mxu1 }
 0x971   :  { %v885_v59 = vpop.f32.mrb[11].mxu1 }
 0x972   :  { %v896_v60 = vpack.c.bf16 %v885_v59, %v882_v56 }
 0x974   :  { %3640 = vmatprep.mubr.msk.bf16.mxu1 %vm566_vm2, %v896_v60 }
 0x975   :  { %3641 = vmatmul.mubr.msk.bf16.vlgmr.msra.gmra.mrb[12].mxu1 %vm566_vm2, %v897_v61 }
 0x976   :  { %3651 = vmatpush3.bf16.msra.mxu1 %v1085_v45 }
 0x977   :  { %3652 = vmatprep.subr.bf16.mxu1 %v1086_v51 }
 0x97a   :  { %3653 = vmatpush3.bf16.msra.mxu1 %v1086_v51 }
 0x97b   :  { %3886 = vmatprep.subr.bf16.mxu1 %v4157_v43 }
 0xa48   :  { %v3642_v0 = vpop.f32.mrb[12].mxu1 }
 0xa49   :  { %v1002_v2 = vadd.f32 %v3648_v17, %v3642_v0  ;;  %v939_v3 = vpop.f32.mrb[13].mxu1 }
 0xa4a   :  { %v994_v4 = vadd.f32 %v993_v18, %v939_v3  ;;  %v3643_v6 = vpop.f32.mrb[14].mxu1 }
 0xa4b   :  { %v942_v20 = vpop.f32.mrb[15].mxu1  ;;  %v1015_v21 = vadd.f32 %v3365_v1, %v1002_v2  ;;  %v3367_v6 = vld [vmem:[%s4325_s25] ss:$0 sm:$0xff]  ;;  %s5100_s25 = sld [smem:[#allocation9_spill]] }
 0xa4c   :  { %v1013_v8 = vadd.f32 %v3365_v1, %v994_v4  ;;  %v997_v9 = vadd.f32 %v996_v24, %v942_v20 }
 0xa4d   :  { %v1018_v14 = vadd.f32 %v1015_v21, %v4490_v39 }
 0xa4e   :  { %v1014_v5 = vadd.f32 %v3365_v1, %v997_v9  ;;  %v1016_v11 = vadd.f32 %v1013_v8, %v4484_v35  ;;  %v3366_v1 = vld [vmem:[%s4330_s3] ss:$0 sm:$0xff]  ;;  %s5102_s3 = sld [smem:[#allocation29_spill]] }
 0xa4f   :  { %v1027_v15 = vsel %vm303_vm5, %v1018_v14, 0.0 }
 0xa50   :  { %v1021_v26 = vsel %vm303_vm5, %v1016_v11, 0.0  ;;  %v1017_v12 = vadd.f32 %v1014_v5, %v4486_v36 }
 0xa51   :  { %1022 = vadd.xlane.f32.xlu1 %v1021_v26 }
 0xa52   :  { %v1024_v63 = vsel %vm303_vm5, %v1017_v12, 0.0 }
 0xa53   :  { %1025 = vadd.xlane.f32.xlu0 %v1024_v63 }
 0xa57   :  { %1028 = vadd.xlane.f32.xlu0 %v1027_v15  ;;  %v1229_v15 = vld [vmem:[%s4320_s6 + $0x8] sm:$0xff] }
 0xade   :  { %v1023_v17 = vpop.xlane.xlu1 %1022 }
 0xadf   :  { %v1030_v18 = vmul.f32 0.03125, %v1023_v17 }
 0xae0   :  { %v1026_v23 = vpop.xlane.xlu0 %1025 }
 0xae1   :  { %v1033_v24 = vsub.f32 %v1016_v11, %v1030_v18  ;;  %v1031_v35 = vmul.f32 0.03125, %v1026_v23  ;;  %v1230_v18 = vld [vmem:[%s4320_s6 + $0x10] sm:$0xff]  ;;  %v1231_v23 = vld [vmem:[%s4320_s6 + $0x18] sm:$0xff] }
 0xae3   :  { %v1034_v27 = vsub.f32 %v1017_v12, %v1031_v35  ;;  %v1036_v30 = vmul.f32 %v1033_v24, %v1033_v24  ;;  %v1232_v35 = vld [vmem:[%s4320_s6 + $0x20] sm:$0xff] }
 0xae4   :  { %v1029_v36 = vpop.xlane.xlu0 %1028 }
 0xae5   :  { %v1032_v32 = vmul.f32 0.03125, %v1029_v36  ;;  %v1039_v33 = vsel %vm303_vm5, %v1036_v30, 0.0  ;;  %v1037_v39 = vmul.f32 %v1034_v27, %v1034_v27  ;;  %v1234_v36 = vld [vmem:[%s4320_s6 + $0x30] sm:$0xff] }
 0xae6   :  { %1040 = vadd.xlane.f32.xlu1 %v1039_v33 }
 0xae7   :  { %v1035_v37 = vsub.f32 %v1018_v14, %v1032_v32  ;;  %v1042_v62 = vsel %vm303_vm5, %v1037_v39, 0.0  ;;  %v1228_v14 = vld [vmem:[%s4320_s6] sm:$0xff]  ;;  %v1235_v32 = vld [vmem:[%s4320_s6 + $0x38] sm:$0xff] }
 0xae8   :  { %1043 = vadd.xlane.f32.xlu0 %v1042_v62  ;;  %v1239_v17 = vpack.c.bf16 %v1229_v15, %v1228_v14  ;;  %v1242_v33 = vpack.c.bf16 %v1235_v32, %v1234_v36  ;;  %v3368_v39 = vld [vmem:[%s4305_s21] ss:$0 sm:$0xff]  ;;  %s5099_s21 = sld [smem:[#allocation28_spill]] }
 0xae9   :  { %v1038_v57 = vmul.f32 %v1035_v37, %v1035_v37 }
 0xaea   :  { %3658 = vmatprep.subr.bf16.mxu0 %v1239_v17 }
 0xaeb   :  { %v1045_v38 = vsel %vm303_vm5, %v1038_v57, 0.0  ;;  %3659 = vmatpush3.bf16.msra.mxu0 %v1239_v17 }
 0xaec   :  { %1046 = vadd.xlane.f32.xlu1 %v1045_v38 }
 0xb73   :  { %v1041_v52 = vpop.xlane.xlu1 %1040 }
 0xb74   :  { %v1048_v53 = vmul.f32 0.03125, %v1041_v52 }
 0xb75   :  { %v1044_v54 = vpop.xlane.xlu0 %1043 }
 0xb76   :  { %v1051_v55 = vadd.f32 1e-05, %v1048_v53  ;;  %v1049_v56 = vmul.f32 0.03125, %v1044_v54 }
 0xb78   :  { %3987 = vrsqrt.f32 %v1051_v55  ;;  %v1052_v58 = vadd.f32 1e-05, %v1049_v56 }
 0xb79   :  { %v1047_v59 = vpop.xlane.xlu1 %1046 }
 0xb7a   :  { %3989 = vrsqrt.f32 %v1052_v58  ;;  %v1050_v60 = vmul.f32 0.03125, %v1047_v59 }
 0xb7c   :  { %v1053_v61 = vadd.f32 1e-05, %v1050_v60 }
 0xb7e   :  { %3991 = vrsqrt.f32 %v1053_v61 }
 0xb82   :  { %v3988_v0 = vpop.eup %3987 }
 0xb83   :  { %v1057_v2 = vmul.f32 %v3988_v0, %v1033_v24  ;;  %v1240_v24 = vpack.c.bf16 %v1231_v23, %v1230_v18 }
 0xb84   :  { %v3990_v3 = vpop.eup %3989 }
 0xb85   :  { %v1058_v4 = vmul.f32 %v3990_v3, %v1034_v27  ;;  %v1066_v43 = vmul.f32 %v3366_v1, %v1057_v2  ;;  %3660 = vmatprep.subr.bf16.mxu0 %v1240_v24  ;;  %v1233_v27 = vld [vmem:[%s4320_s6 + $0x28] sm:$0xff]  ;;  %s5104_s6 = sld [smem:[#allocation8_spill]] }
 0xb86   :  { %3661 = vmatpush3.bf16.msra.mxu0 %v1240_v24  ;;  %v1241_v30 = vpack.c.bf16 %v1233_v27, %v1232_v35 }
 0xb87   :  { %v1067_v20 = vmul.f32 %v3366_v1, %v1058_v4  ;;  %v4633_v21 = vadd.f32 %v3367_v6, %v1066_v43 }
 0xb88   :  { %v3992_v8 = vpop.eup %3991  ;;  %3662 = vmatprep.subr.bf16.mxu0 %v1241_v30 }
 0xb89   :  { %v1059_v9 = vmul.f32 %v3992_v8, %v1035_v37  ;;  %v4635_v5 = vadd.f32 %v3367_v6, %v1067_v20 }
 0xb8a   :  { %3663 = vmatpush3.bf16.msra.mxu0 %v1241_v30 }
 0xb8b   :  { %v1083_v11 = vpack.c.bf16 %v4635_v5, %v4633_v21  ;;  %v1068_v26 = vmul.f32 %v3366_v1, %v1059_v9  ;;  %3664 = vmatprep.subr.bf16.mxu0 %v1242_v33 }
 0xb8d   :  { %3654 = vmatprep.mubr.msk.bf16.mxu1 %vm303_vm5, %v1083_v11  ;;  %v4640_v12 = vadd.f32 %v3367_v6, %v1068_v26 }
 0xb8e   :  { %3665 = vmatpush3.bf16.msra.mxu0 %v1242_v33 }
 0xb8f   :  { %v1084_v63 = vpack.c.bf16 %v4640_v12, %v4640_v12  ;;  %3679 = vmatprep.subr.bf16.mxu0 %v4158_v29 }
 0xb91   :  { %3655 = vmatmul.mubr.msk.bf16.vlgmr.msra.gmra.mrb[16].mxu1 %vm303_vm5, %v1084_v63 }
 0xb92   :  { %3676 = vmatprep.mubr.msk.f32.mxu1 %vm4159_vm1, %v4158_v29 }
 0xc64   :  { %v3656_v37 = vpop.f32.mrb[16].mxu1 }
 0xc65   :  { %v4657_v62 = vadd.f32 %v3656_v37, %v3368_v39  ;;  %v1133_v57 = vpop.f32.mrb[17].mxu1 }
 0xc66   :  { %v4659_v38 = vadd.f32 %v3368_v39, %v1133_v57  ;;  %v3657_v40 = vpop.f32.mrb[18].mxu1 }
 0xc67   :  { %v4662_v42 = vmul.f32 0.70710677, %v4657_v62  ;;  %v1136_v45 = vpop.f32.mrb[19].mxu1 }
 0xc68   :  { %v4665_v48 = vmul.f32 0.70710677, %v4659_v38  ;;  %v4667_v49 = vadd.f32 %v3368_v39, %v1136_v45 }
 0xc69   :  { %v1152_v51 = vand.u32 2147483647, %v4662_v42  ;;  %vm1212_vm6 = vcmp.ge.f32.partialorder %v4662_v42, 0.0 }
 0xc6a   :  { %v1150_v52 = vand.u32 2147483647, %v4665_v48  ;;  %v4672_v53 = vmul.f32 0.70710677, %v4667_v49  ;;  %vm1210_vm7 = vcmp.ge.f32.partialorder %v4665_v48, 0.0 }
 0xc6b   :  { %v1155_v54 = vmul.f32 0.3275911, %v1152_v51  ;;  %v1194_v0 = vsub.f32 0.0, %v1152_v51 }
 0xc6c   :  { %v1153_v55 = vmul.f32 0.3275911, %v1150_v52  ;;  %v1151_v56 = vand.u32 2147483647, %v4672_v53  ;;  %v1192_v1 = vsub.f32 0.0, %v1150_v52  ;;  %vm1211_vm8 = vcmp.ge.f32.partialorder %v4672_v53, 0.0 }
 0xc6d   :  { %v1158_v58 = vadd.f32 1.0, %v1155_v54  ;;  %v1197_v3 = vmul.f32 %v1194_v0, %v1152_v51 }
 0xc6e   :  { %v1156_v59 = vadd.f32 1.0, %v1153_v55  ;;  %v1154_v60 = vmul.f32 0.3275911, %v1151_v56  ;;  %v1193_v4 = vsub.f32 0.0, %v1151_v56  ;;  %v1195_v20 = vmul.f32 %v1192_v1, %v1150_v52 }
 0xc6f   :  { %3993 = vrcp.f32 %v1158_v58  ;;  %v1202_v26 = vmul.f32 1.442695, %v1197_v3 }
 0xc70   :  { %3995 = vrcp.f32 %v1156_v59  ;;  %v1157_v61 = vadd.f32 1.0, %v1154_v60  ;;  %v1196_v14 = vmul.f32 %v1193_v4, %v1151_v56  ;;  %v1198_v17 = vmul.f32 1.442695, %v1195_v20 }
 0xc72   :  { %3997 = vrcp.f32 %v1157_v61  ;;  %v1200_v30 = vmul.f32 1.442695, %v1196_v14 }
 0xc73   :  { %3999 = vpow2.f32 %v1202_v26 }
 0xc74   :  { %4001 = vpow2.f32 %v1198_v17 }
 0xc75   :  { %4003 = vpow2.f32 %v1200_v30 }
 0xc79   :  { %v3994_v2 = vpop.eup %3993 }
 0xc7a   :  { %v3996_v43 = vpop.eup %3995  ;;  %v1167_v6 = vmul.f32 1.0614054, %v3994_v2 }
 0xc7b   :  { %v1165_v8 = vmul.f32 1.0614054, %v3996_v43 }
 0xc7c   :  { %v1170_v9 = vadd.f32 -1.4531521, %v1167_v6  ;;  %v3998_v11 = vpop.eup %3997 }
 0xc7d   :  { %v1168_v63 = vadd.f32 -1.4531521, %v1165_v8  ;;  %v1166_v18 = vmul.f32 1.0614054, %v3998_v11  ;;  %v4000_v59 = vpop.eup %3999 }
 0xc7e   :  { %v1173_v15 = vmul.f32 %v3994_v2, %v1170_v9  ;;  %v4002_v61 = vpop.eup %4001 }
 0xc7f   :  { %v1171_v23 = vmul.f32 %v3996_v43, %v1168_v63  ;;  %v1169_v35 = vadd.f32 -1.4531521, %v1166_v18  ;;  %v4004_v20 = vpop.eup %4003 }
 0xc80   :  { %v1176_v24 = vadd.f32 1.4214138, %v1173_v15 }
 0xc81   :  { %v1174_v27 = vadd.f32 1.4214138, %v1171_v23  ;;  %v1172_v32 = vmul.f32 %v3998_v11, %v1169_v35  ;;  %v1220_v35 = vmul.f32 0.5, %v4667_v49 }
 0xc82   :  { %v1179_v36 = vmul.f32 %v3994_v2, %v1176_v24  ;;  %v1219_v24 = vmul.f32 0.5, %v4659_v38 }
 0xc83   :  { %v1177_v33 = vmul.f32 %v3996_v43, %v1174_v27  ;;  %v1175_v37 = vadd.f32 1.4214138, %v1172_v32 }
 0xc84   :  { %v1182_v39 = vadd.f32 -0.28449672, %v1179_v36 }
 0xc85   :  { %v1180_v57 = vadd.f32 -0.28449672, %v1177_v33  ;;  %v1178_v45 = vmul.f32 %v3998_v11, %v1175_v37 }
 0xc86   :  { %v1185_v40 = vmul.f32 %v3994_v2, %v1182_v39 }
 0xc87   :  { %v1183_v51 = vmul.f32 %v3996_v43, %v1180_v57  ;;  %v1181_v54 = vadd.f32 -0.28449672, %v1178_v45 }
 0xc88   :  { %v1188_v52 = vadd.f32 0.2548296, %v1185_v40 }
 0xc89   :  { %v1186_v55 = vadd.f32 0.2548296, %v1183_v51  ;;  %v1184_v58 = vmul.f32 %v3998_v11, %v1181_v54 }
 0xc8a   :  { %v1191_v56 = vmul.f32 %v3994_v2, %v1188_v52 }
 0xc8b   :  { %v1189_v60 = vmul.f32 %v3996_v43, %v1186_v55  ;;  %v1187_v1 = vadd.f32 0.2548296, %v1184_v58 }
 0xc8c   :  { %v1206_v0 = vmul.f32 %v4000_v59, %v1191_v56 }
 0xc8d   :  { %v1204_v3 = vmul.f32 %v4002_v61, %v1189_v60  ;;  %v1190_v6 = vmul.f32 %v3998_v11, %v1187_v1  ;;  %v1221_v11 = vmul.f32 0.5, %v4657_v62  ;;  %v3371_v62 = vld [vmem:[%s5099_s21] ss:$0 sm:$0xff]  ;;  %s5127_s21 = sld [smem:[#allocation20_spill]] }
 0xc8e   :  { %v1209_v4 = vsub.f32 1.0, %v1206_v0 }
 0xc8f   :  { %v1207_v8 = vsub.f32 1.0, %v1204_v3  ;;  %v1205_v26 = vmul.f32 %v4004_v20, %v1190_v6 }
 0xc90   :  { %v1215_v9 = vsub.f32 0.0, %v1209_v4 }
 0xc91   :  { %v1213_v63 = vsub.f32 0.0, %v1207_v8  ;;  %v1208_v2 = vsub.f32 1.0, %v1205_v26  ;;  %v1444_v26 = vld [vmem:[%s5100_s25 + $0x8] sm:$0xff] }
 0xc92   :  { %v1218_v14 = vsel %vm1212_vm6, %v1209_v4, %v1215_v9  ;;  %v1443_v9 = vld [vmem:[%s5100_s25] sm:$0xff]  ;;  %vm1862_vm6 = vcmask 253952  }
 0xc93   :  { %v1216_v15 = vsel %vm1210_vm7, %v1207_v8, %v1213_v63  ;;  %v1224_v17 = vadd.f32 1.0, %v1218_v14  ;;  %v1214_v43 = vsub.f32 0.0, %v1208_v2  ;;  %v1454_v63 = vpack.c.bf16 %v1444_v26, %v1443_v9 }
 0xc94   :  { %v1222_v18 = vadd.f32 1.0, %v1216_v15  ;;  %vm1679_vm7 = vcmask 254976  }
 0xc95   :  { %v1217_v23 = vsel %vm1211_vm8, %v1208_v2, %v1214_v43  ;;  %v1227_v27 = vmul.f32 %v1224_v17, %v1221_v11  ;;  %vm1697_vm8 = vcmask 1041408  }
 0xc96   :  { %v1223_v42 = vadd.f32 1.0, %v1217_v23  ;;  %v1225_v30 = vmul.f32 %v1222_v18, %v1219_v24 }
 0xc97   :  { %v1238_v32 = vpack.c.bf16 %v1227_v27, %v1227_v27 }
 0xc98   :  { %v1226_v36 = vmul.f32 %v1223_v42, %v1220_v35  ;;  %v3374_v42 = vld [vmem:[%s5101_s29] ss:$0 sm:$0xff] }
 0xc9a   :  { %v1237_v48 = vpack.c.bf16 %v1226_v36, %v1225_v30 }
 0xc9c   :  { %3666 = vmatprep.mubr.msk.bf16.mxu0 %vm1249_vm9, %v1237_v48 }
 0xc9d   :  { %3667 = vmatmul.mubr.msk.bf16.vlgmr.msra.gmra.mrb[24].mxu0 %vm1249_vm9, %v1238_v32 }
 0xc9e   :  { %3683 = vmatprep.mubr.msk.bf16.mxu0 %vm4159_vm1, %v4158_v29  ;;  %3680 = vmatpush3.bf16.msra.mxu0 %v1454_v63 }
 0xc9f   :  { %3681 = vmatprep.subr.bf16.mxu0 %v4158_v29 }
 0xd70   :  { %v3668_v53 = vpop.f32.mrb[24].mxu0 }
 0xd71   :  { %v1290_v33 = vpop.f32.mrb[25].mxu0  ;;  %v1299_v38 = vadd.f32 %v3668_v53, %v3371_v62 }
 0xd72   :  { %v1291_v39 = vadd.f32 %v3371_v62, %v1290_v33  ;;  %v3669_v49 = vpop.f32.mrb[26].mxu0 }
 0xd73   :  { %v1293_v37 = vpop.f32.mrb[27].mxu0  ;;  %v1306_v52 = vadd.f32 %v1299_v38, %v4640_v12  ;;  %v1366_v38 = vmul.u32 12, %v4497_v41 }
 0xd74   :  { %v1294_v57 = vadd.f32 %v3371_v62, %v1293_v37  ;;  %v1304_v40 = vadd.f32 %v1291_v39, %v4633_v21  ;;  %v3375_v62 = vld [vmem:[%s5102_s3] ss:$0 sm:$0xff] }
 0xd75   :  { %v1315_v55 = vsel %vm303_vm5, %v1306_v52, 0.0  ;;  %vm1367_vm11 = vcmp.eq.s32.totalorder %v4462_v31, %v1366_v38 }
 0xd76   :  { %v1309_v45 = vsel %vm303_vm5, %v1304_v40, 0.0  ;;  %v1305_v51 = vadd.f32 %v1294_v57, %v4635_v5 }
 0xd77   :  { %1310 = vadd.xlane.f32.xlu0 %v1309_v45  ;;  %v3376_v45 = vsel %vm1367_vm11, 1.0, %v4158_v29  ;;  %vm1902_vm11 = vcmp.gt.s32.totalorder %v4462_v31, %v4497_v41 }
 0xd78   :  { %v1312_v54 = vsel %vm303_vm5, %v1305_v51, 0.0 }
 0xd79   :  { %1313 = vadd.xlane.f32.xlu1 %v1312_v54 }
 0xd7b   :  { %1316 = vadd.xlane.f32.xlu0 %v1315_v55 }
 0xe04   :  { %v1311_v56 = vpop.xlane.xlu0 %1310 }
 0xe05   :  { %v1318_v58 = vmul.f32 0.03125, %v1311_v56 }
 0xe06   :  { %v1314_v59 = vpop.xlane.xlu1 %1313 }
 0xe07   :  { %v1321_v60 = vsub.f32 %v1304_v40, %v1318_v58  ;;  %v1319_v21 = vmul.f32 0.03125, %v1314_v59  ;;  %v3378_v59 = vld [vmem:[%s5103_s24] ss:$0 sm:$0xff] }
 0xe08   :  { %v1317_v61 = vpop.xlane.xlu0 %1316 }
 0xe09   :  { %v1322_v0 = vsub.f32 %v1305_v51, %v1319_v21  ;;  %v1320_v1 = vmul.f32 0.03125, %v1317_v61  ;;  %v1324_v5 = vmul.f32 %v1321_v60, %v1321_v60  ;;  %v1445_v51 = vld [vmem:[%s5100_s25 + $0x10] sm:$0xff] }
 0xe0b   :  { %v1323_v3 = vsub.f32 %v1306_v52, %v1320_v1  ;;  %v1327_v12 = vsel %vm303_vm5, %v1324_v5, 0.0  ;;  %v1325_v4 = vmul.f32 %v1322_v0, %v1322_v0  ;;  %v1446_v52 = vld [vmem:[%s5100_s25 + $0x18] sm:$0xff]  ;;  %s5128_s25 = sld [smem:[#allocation32_spill]] }
 0xe0c   :  { %1328 = vadd.xlane.f32.xlu1 %v1327_v12  ;;  %v1455_v54 = vpack.c.bf16 %v1446_v52, %v1445_v51  ;;  %v1800_v12 = vld [vmem:[%s4396_s12 + $0x8] sm:$0x1] }
 0xe0d   :  { %v1330_v6 = vsel %vm303_vm5, %v1325_v4, 0.0  ;;  %v1326_v20 = vmul.f32 %v1323_v3, %v1323_v3 }
 0xe0e   :  { %1331 = vadd.xlane.f32.xlu0 %v1330_v6  ;;  %3682 = vmatpush3.bf16.msra.mxu0 %v1455_v54 }
 0xe0f   :  { %v1333_v8 = vsel %vm303_vm5, %v1326_v20, 0.0  ;;  %3687 = vmatprep.subr.bf16.mxu0 %v4158_v29 }
 0xe10   :  { %1334 = vadd.xlane.f32.xlu1 %v1333_v8 }
 0xe99   :  { %v1329_v14 = vpop.xlane.xlu1 %1328 }
 0xe9a   :  { %v1336_v2 = vmul.f32 0.03125, %v1329_v14 }
 0xe9b   :  { %v1332_v15 = vpop.xlane.xlu0 %1331 }
 0xe9c   :  { %v1339_v17 = vadd.f32 1e-05, %v1336_v2  ;;  %v1337_v43 = vmul.f32 0.03125, %v1332_v15 }
 0xe9d   :  { %v1335_v18 = vpop.xlane.xlu1 %1334 }
 0xe9e   :  { %4005 = vrsqrt.f32 %v1339_v17  ;;  %v1340_v11 = vadd.f32 1e-05, %v1337_v43  ;;  %v1338_v23 = vmul.f32 0.03125, %v1335_v18 }
 0xea0   :  { %4007 = vrsqrt.f32 %v1340_v11  ;;  %v1341_v24 = vadd.f32 1e-05, %v1338_v23  ;;  %v1448_v23 = vld [vmem:[%s5104_s6] sm:$0xff] }
 0xea2   :  { %4009 = vrsqrt.f32 %v1341_v24  ;;  %v1449_v24 = vld [vmem:[%s5104_s6 + $0x8] sm:$0xff] }
 0xea8   :  { %v4006_v35 = vpop.eup %4005 }
 0xea9   :  { %v1345_v27 = vmul.f32 %v4006_v35, %v1321_v60  ;;  %v1450_v35 = vld [vmem:[%s5104_s6 + $0x10] sm:$0xff] }
 0xeaa   :  { %v4008_v30 = vpop.eup %4007 }
 0xeab   :  { %v1346_v36 = vmul.f32 %v4008_v30, %v1322_v0  ;;  %v1354_v48 = vmul.f32 %v3374_v42, %v1345_v27  ;;  %v1451_v27 = vld [vmem:[%s5104_s6 + $0x18] sm:$0xff] }
 0xeac   :  { %v4010_v32 = vpop.eup %4009  ;;  %v1621_v30 = vpack.c.bf16 %v1451_v27, %v1450_v35 }
 0xead   :  { %v1355_v53 = vmul.f32 %v3374_v42, %v1346_v36  ;;  %v1347_v33 = vmul.f32 %v4010_v32, %v1323_v3  ;;  %v4701_v39 = vadd.f32 %v3375_v62, %v1354_v48  ;;  %v1799_v3 = vld [vmem:[%s4396_s12] sm:$0xff]  ;;  %s5105_s12 = sld [smem:[#allocation6_spill]] }
 0xeaf   :  { %v4703_v49 = vadd.f32 %v3375_v62, %v1355_v53  ;;  %v1356_v57 = vmul.f32 %v3374_v42, %v1347_v33  ;;  %v1620_v42 = vpack.c.bf16 %v1449_v24, %v1448_v23 }
 0xeb1   :  { %v3887_v37 = vpack.c.bf16 %v4703_v49, %v4701_v39  ;;  %v4709_v40 = vadd.f32 %v3375_v62, %v1356_v57 }
 0xeb3   :  { %3888 = vmatpush3.bf16.msra.mxu1 %v3887_v37 }
 0xeb4   :  { %3674 = vmatprep.subr.mxu1 %v4158_v29 }
 0xeb7   :  { %3675 = vmatpush3.msra.mxu1 %v4709_v40 }
 0xeb8   :  { %3677 = vmatmul.mubr.msk.f32.vlgmr.msra.gmra.mrb[20].mxu1 %vm627_vm3, %v3376_v45  ;;  %3693 = vmatprep.subr.bf16.mxu1 %v4158_v29 }
 0xeb9   :  { %3695 = vmatprep.mubr.msk.bf16.mxu1 %vm4159_vm1, %v4158_v29 }
 0xf8b   :  { %v1439_v55 = vpop.f32.mrb[20].mxu1 }
 0xf8c   :  { %v1453_v56 = vpack.c.bf16 %v1439_v55, %v1439_v55  ;;  %v3678_v58 = vpop.f32.mrb[21].mxu1 }
 0xf8e   :  { %3684 = vmatmul.mubr.msk.bf16.vlgmr.msra.gmra.mrb[28].mxu0 %vm303_vm5, %v1453_v56 }
 0xf8f   :  { %3689 = vmatprep.mubr.msk.bf16.mxu0 %vm4159_vm1, %v4158_v29 }
0x1061   :  { %v1499_v60 = vpop.f32.mrb[28].mxu0 }
0x1062   :  { %v1500_v21 = vadd.f32 %v3378_v59, %v1499_v60  ;;  %v3685_v61 = vpop.f32.mrb[29].mxu0  ;;  %v3382_v60 = vld [vmem:[%s5105_s12] ss:$0 sm:$0xff] }
0x1063   :  { %v1502_v0 = vpop.f32.mrb[30].mxu0 }
0x1064   :  { %v1507_v1 = vpack.c.bf16 %v1500_v21, %v1500_v21  ;;  %v3686_v5 = vpop.f32.mrb[31].mxu0  ;;  %v1505_v20 = vmul.f32 0.17677669, %v1500_v21  ;;  %v1801_v21 = vld [vmem:[%s5106_s4] sm:$0xff]  ;;  %v1802_v0 = vld [vmem:[%s5106_s4 + $0x8] sm:$0x1] }
0x1066   :  { %1509 = vrot.lane.b32.xlu0 %v1507_v1, %s4160_s0  ;;  %v1506_v8 = vpack.c.bf16 %v1505_v20, %v1505_v20 }
0x106a   :  { %1804 = vperm.xlu0 %3955, %v1799_v3  }
0x106e   :  { %1807 = vperm.xlu0 %3955, %v1800_v12  }
0x10d8   :  { %v1510_v4 = vpop.permute.xlu0 %1509 }
0x10d9   :  { %v1515_v6 = vsel %vm303_vm5, %v1510_v4, 0  ;;  %v3384_v4 = vld [vmem:[%s5107_s7] ss:$0 sm:$0xff] }
0x10da   :  { %3688 = vmatpush3.bf16.xpose.msra.mxu0 %v1515_v6 }
0x10db   :  { %3699 = vmatprep.subr.bf16.mxu0 %v4158_v29 }
0x10e1   :  { %3690 = vmatmul.mubr.msk.bf16.vlgmr.msra.gmra.mrb[32].mxu0 %vm303_vm5, %v1506_v8 }
0x10e2   :  { %3703 = vmatprep.mubr.msk.bf16.mxu0 %vm4159_vm1, %v4158_v29  ;;  %3700 = vmatpush3.bf16.msra.mxu0 %v1620_v42 }
0x10e3   :  { %3701 = vmatprep.subr.bf16.mxu0 %v4158_v29 }
0x10e6   :  { %3702 = vmatpush3.bf16.msra.mxu0 %v1621_v30 }
0x10e7   :  { %3718 = vmatprep.subr.bf16.mxu0 %v4158_v29 }
0x10e9   :  { %v1805_v52 = vpop.permute.xlu0 %1804 }
0x10ea   :  { %vm1809_vm15 = vcmp.eq.s32.totalorder %v4462_v31, %v1805_v52 }
0x10ed   :  { %v1808_v54 = vpop.permute.xlu0 %1807 }
0x10ee   :  { %vm1810_vm14 = vcmp.eq.s32.totalorder %v4462_v31, %v1808_v54 }
0x10ef   :  { %vm3393_vm0 = vmpackc.low %vm1810_vm14, %vm1809_vm15  ;;  %vm2023_vm14 = vcmask 72704   ;;  %vm2027_vm15 = vcmask 65536  }
0x11b4   :  { %v1551_v9 = vpop.f32.mrb[32].mxu0 }
0x11b5   :  { %v3691_v26 = vpop.f32.mrb[33].mxu0  ;;  %v1558_v63 = vsel %vm1557_vm12, %v1551_v9, -inf }
0x11b6   :  { %1559 = vmax.xlane.f32.xlu1 %v1558_v63  ;;  %v1554_v14 = vpop.f32.mrb[34].mxu0 }
0x11b7   :  { %v3692_v2 = vpop.f32.mrb[35].mxu0 }
0x1243   :  { %v1560_v15 = vpop.xlane.xlu1 %1559 }
0x1244   :  { %v1561_v17 = vsub.f32 %v1551_v9, %v1560_v15 }
0x1246   :  { %v1562_v43 = vmul.f32 1.442695, %v1561_v17 }
0x1248   :  { %4011 = vpow2.f32 %v1562_v43  ;;  %v3385_v43 = vld [vmem:[#allocation2] ss:$0 sm:$0xff] }
0x1252   :  { %v4012_v18 = vpop.eup %4011 }
0x1253   :  { %v1564_v11 = vsel %vm1557_vm12, %v4012_v18, 0.0  ;;  %vm1903_vm12 = vcmp.gt.s32.totalorder %v4462_v31, %v4502_v44 }
0x1254   :  { %1565 = vadd.xlane.f32.xlu1 %v1564_v11 }
0x1265   :  { %1570 = vrot.lane.b32.xlu1 %v1507_v1, %s4161_s5 }
0x12e1   :  { %v1566_v36 = vpop.xlane.xlu1 %1565 }
0x12e2   :  { %4013 = vrcp.f32 %v1566_v36 }
0x12e5   :  { %v1571_v48 = vpop.permute.xlu1 %1570 }
0x12e6   :  { %v1577_v32 = vsel %vm1575_vm13, %v1571_v48, 0 }
0x12e7   :  { %3694 = vmatpush3.bf16.msra.mxu1 %v1577_v32 }
0x12e8   :  { %3707 = vmatprep.subr.mxu1 %v4158_v29 }
0x12ec   :  { %v4014_v62 = vpop.eup %4013 }
0x12ed   :  { %v1568_v53 = vmul.f32 %v4014_v62, %v4012_v18  ;;  %v1906_v62 = vld [vmem:[%s5108_s16] sm:$0xff] }
0x12ef   :  { %v1569_v33 = vpack.c.bf16 %v1568_v53, %v1568_v53  ;;  %v1907_v53 = vld [vmem:[%s5108_s16 + $0x8] sm:$0xff] }
0x12f1   :  { %3696 = vmatmul.mubr.msk.bf16.vlgmr.msra.gmra.mrb[24].mxu1 %vm383_vm10, %v1569_v33  ;;  %v1917_v33 = vpack.c.bf16 %v1907_v53, %v1906_v62  ;;  %v1905_v62 = vsel %vm1903_vm12, -1e+09, %v4158_v29 }
0x12f2   :  { %3709 = vmatprep.mubr.msk.f32.mxu1 %vm4159_vm1, %v4158_v29 }
0x13c4   :  { %v1613_v38 = vpop.f32.mrb[24].mxu1 }
0x13c5   :  { %v1619_v37 = vpack.c.bf16 %v1613_v38, %v1613_v38  ;;  %v3697_v57 = vpop.f32.mrb[25].mxu1  ;;  %v1908_v38 = vld [vmem:[%s5108_s16 + $0x10] sm:$0xff] }
0x13c6   :  { %v1616_v45 = vpop.f32.mrb[26].mxu1 }
0x13c7   :  { %v3698_v51 = vpop.f32.mrb[27].mxu1  ;;  %3704 = vmatmul.mubr.msk.bf16.vlgmr.msra.gmra.mrb[36].mxu0 %vm303_vm5, %v1619_v37  ;;  %v1909_v37 = vld [vmem:[%s5108_s16 + $0x18] sm:$0xff] }
0x13c8   :  { %3719 = vmatpush3.bf16.msra.mxu0 %v4416_v7  ;;  %3734 = vmatprep.mubr.msk.bf16.mxu0 %vm4159_vm1, %v4158_v29 }
0x13c9   :  { %3720 = vmatprep.subr.bf16.mxu0 %v4158_v29 }
0x13cc   :  { %3721 = vmatpush3.bf16.msra.mxu0 %v4419_v10 }
0x13cd   :  { %3722 = vmatprep.subr.bf16.mxu0 %v4158_v29 }
0x13d0   :  { %3723 = vmatpush3.bf16.msra.mxu0 %v4426_v13 }
0x13d1   :  { %3724 = vmatprep.subr.bf16.mxu0 %v4158_v29 }
0x13d4   :  { %3725 = vmatpush3.bf16.msra.mxu0 %v4432_v16 }
0x13d5   :  { %3726 = vmatprep.subr.bf16.mxu0 %v4158_v29 }
0x13d8   :  { %3727 = vmatpush3.bf16.msra.mxu0 %v4438_v19 }
0x13d9   :  { %3728 = vmatprep.subr.bf16.mxu0 %v4158_v29 }
0x13dc   :  { %3729 = vmatpush3.bf16.msra.mxu0 %v4444_v22 }
0x13dd   :  { %3730 = vmatprep.subr.bf16.mxu0 %v4158_v29 }
0x13e0   :  { %3731 = vmatpush3.bf16.msra.mxu0 %v4450_v25 }
0x13e1   :  { %3732 = vmatprep.subr.bf16.mxu0 %v4158_v29 }
0x13e4   :  { %3733 = vmatpush3.bf16.msra.mxu0 %v4456_v28 }
0x13e5   :  { %3764 = vmatprep.subr.bf16.mxu0 %v4158_v29 }
0x13e7   :  { %3735 = vmatmul.mubr.msk.bf16.vlgmr.msra.gmra.mrb[40].mxu0 %vm3393_vm0, %v4156_v34  ;;  %vm2558_vm0 = vcmask 188416  }
0x13e8   :  { %3766 = vmatprep.mubr.msk.bf16.mxu0 %vm4159_vm1, %v4158_v29 }
0x149a   :  { %v1665_v55 = vpop.f32.mrb[36].mxu0 }
0x149b   :  { %v3705_v56 = vpop.f32.mrb[37].mxu0  ;;  %v1666_v1 = vadd.f32 %v3382_v60, %v1665_v55 }
0x149c   :  { %v1668_v58 = vpop.f32.mrb[38].mxu0  ;;  %v3395_v56 = vld [vmem:[%s5109_s23] ss:$0 sm:$0xff] }
0x149d   :  { %v3706_v59 = vpop.f32.mrb[39].mxu0  ;;  %v1678_v9 = vmul.f32 %v3384_v4, %v1666_v1 }
0x149f   :  { %v1680_v26 = vsel %vm1679_vm7, %v1678_v9, 0.0 }
0x14ba   :  { %v1850_v61 = vpop.f32.mrb[40].mxu0 }
0x14bb   :  { %v1851_v5 = vadd.f32 %v1850_v61, %v1801_v21  ;;  %v3736_v3 = vpop.f32.mrb[41].mxu0  ;;  %v3396_v21 = vld [vmem:[%s5110_s28] ss:$0 sm:$0xff] }
0x14bc   :  { %v1853_v12 = vpop.f32.mrb[42].mxu0 }
0x14bd   :  { %v1854_v6 = vadd.f32 %v1853_v12, %v1802_v0  ;;  %v3737_v20 = vpop.f32.mrb[43].mxu0  ;;  %v1859_v34 = vsel %vm303_vm5, %v1851_v5, 0.0 }
0x14be   :  { %1860 = vadd.xlane.f32.xlu1 %v1859_v34 }
0x14bf   :  { %v1863_v8 = vsel %vm1862_vm6, %v1854_v6, 0.0 }
0x14c0   :  { %1864 = vadd.xlane.f32.xlu0 %v1863_v8  ;;  %v3397_v8 = vld [vmem:[%s5111_s1] ss:$0 sm:$0xff] }
0x14c4   :  { %1681 = vadd.xlane.f32.xlu0 %v1680_v26 }
0x154b   :  { %v1861_v63 = vpop.xlane.xlu1 %1860 }
0x154c   :  { %v1866_v14 = vmul.f32 0.03125, %v1861_v63 }
0x154d   :  { %v1865_v2 = vpop.xlane.xlu0 %1864 }
0x154e   :  { %v1868_v15 = vsub.f32 %v1851_v5, %v1866_v14  ;;  %v1867_v17 = vmul.f32 0.03125, %v1865_v2 }
0x1550   :  { %v1869_v18 = vsub.f32 %v1854_v6, %v1867_v17  ;;  %v1870_v11 = vmul.f32 %v1868_v15, %v1868_v15 }
0x1551   :  { %v1682_v23 = vpop.xlane.xlu0 %1681 }
0x1552   :  { %v1690_v24 = vadd.f32 %v3385_v43, %v1682_v23  ;;  %v1872_v35 = vsel %vm303_vm5, %v1870_v11, 0.0  ;;  %v1871_v42 = vmul.f32 %v1869_v18, %v1869_v18 }
0x1553   :  { %1873 = vadd.xlane.f32.xlu1 %v1872_v35  ;;  %v4165_v35 = vmov 65535  }
0x1554   :  { %v3386_v27 = vmul.f32 -1.442695, %v1690_v24  ;;  %v1875_v30 = vsel %vm1862_vm6, %v1871_v42, 0.0  ;;  %v2054_v42 = vsel %vm674_vm4, 4294967295, %v4165_v35 }
0x1555   :  { %1876 = vadd.xlane.f32.xlu0 %v1875_v30 }
0x1556   :  { %4015 = vpow2.f32 %v3386_v27 }
0x1560   :  { %v4016_v36 = vpop.eup %4015 }
0x1561   :  { %v1694_v48 = vadd.f32 1.0, %v4016_v36 }
0x1563   :  { %4017 = vrcp.f32 %v1694_v48  ;;  %v1904_v48 = vsel %vm1902_vm11, -1e+09, %v4158_v29 }
0x156d   :  { %v4018_v32 = vpop.eup %4017 }
0x156e   :  { %3708 = vmatpush3.msk.msra.mxu1 %vm1697_vm8, %v4018_v32 }
0x156f   :  { %3710 = vmatmul.mubr.msk.f32.vlgmr.msra.gmra.mrb[22].mxu1 %vm383_vm10, %v4509_v46  ;;  %3738 = vmatprep.subr.bf16.mxu1 %v4158_v29  ;;  %v1918_v46 = vpack.c.bf16 %v1909_v37, %v1908_v38 }
0x1570   :  { %3712 = vmatprep.mubr.msk.f32.mxu1 %vm4159_vm1, %v4158_v29  ;;  %3739 = vmatpush3.bf16.msra.mxu1 %v1917_v33 }
0x1571   :  { %3740 = vmatprep.subr.bf16.mxu1 %v4158_v29 }
0x1573   :  { %3713 = vmatmul.mubr.msk.f32.gmra.mrb[28].mxu1 %vm383_vm10, %v4512_v47 }
0x1574   :  { %3715 = vmatprep.mubr.msk.f32.mxu1 %vm4159_vm1, %v4158_v29  ;;  %3741 = vmatpush3.bf16.msra.mxu1 %v1918_v46 }
0x1575   :  { %3746 = vmatprep.subr.bf16.mxu1 %v4158_v29 }
0x1577   :  { %3716 = vmatmul.mubr.msk.f32.gmra.mrb[30].mxu1 %vm383_vm10, %v4521_v50  ;;  %vm2053_vm10 = vcmask 1044480  }
0x1578   :  { %3742 = vmatprep.mubr.msk.bf16.mxu1 %vm4159_vm1, %v4158_v29  ;;  %v4823_v27 = vsel %vm2053_vm10, %v2054_v42, 0 }
0x15e0   :  { %v1874_v47 = vpop.xlane.xlu1 %1873 }
0x15e1   :  { %v1878_v57 = vmul.f32 0.03125, %v1874_v47 }
0x15e2   :  { %v1877_v45 = vpop.xlane.xlu0 %1876 }
0x15e3   :  { %v1880_v51 = vadd.f32 1e-05, %v1878_v57  ;;  %v1879_v52 = vmul.f32 0.03125, %v1877_v45 }
0x15e5   :  { %4019 = vrsqrt.f32 %v1880_v51  ;;  %v1881_v54 = vadd.f32 1e-05, %v1879_v52 }
0x15e7   :  { %4021 = vrsqrt.f32 %v1881_v54 }
0x15ef   :  { %v4020_v55 = vpop.eup %4019 }
0x15f0   :  { %v1884_v58 = vmul.f32 %v4020_v55, %v1868_v15 }
0x15f1   :  { %v4022_v59 = vpop.eup %4021 }
0x15f2   :  { %v1892_v50 = vmul.f32 %v3395_v56, %v1884_v58  ;;  %v1885_v60 = vmul.f32 %v4022_v59, %v1869_v18 }
0x15f4   :  { %v1893_v61 = vmul.f32 %v3395_v56, %v1885_v60  ;;  %v4797_v0 = vadd.f32 %v3396_v21, %v1892_v50 }
0x15f6   :  { %v4799_v1 = vadd.f32 %v3396_v21, %v1893_v61 }
0x15f8   :  { %v1916_v5 = vpack.c.bf16 %v4799_v1, %v4797_v0 }
0x15fa   :  { %3743 = vmatmul.mubr.msk.bf16.vlgmr.msra.gmra.mrb[32].mxu1 %vm303_vm5, %v1916_v5 }
0x15fb   :  { %3748 = vmatprep.mubr.msk.bf16.mxu1 %vm4159_vm1, %v4158_v29 }
0x1642   :  { %v4806_v3 = vpop.f32.mrb[22].mxu1 }
0x1643   :  { %v3711_v12 = vpop.f32.mrb[23].mxu1 }
0x1646   :  { %v4808_v4 = vpop.f32.mrb[28].mxu1 }
0x1647   :  { %v3714_v6 = vpop.f32.mrb[29].mxu1 }
0x164a   :  { %v4810_v20 = vpop.f32.mrb[30].mxu1 }
0x164b   :  { %v3717_v34 = vpop.f32.mrb[31].mxu1 }
0x16cd   :  { %v1962_v9 = vpop.f32.mrb[32].mxu1 }
0x16ce   :  { %v1963_v26 = vadd.f32 %v3397_v8, %v1962_v9  ;;  %v3744_v63 = vpop.f32.mrb[33].mxu1 }
0x16cf   :  { %v1965_v14 = vpop.f32.mrb[34].mxu1 }
0x16d0   :  { %v1966_v2 = vadd.f32 %v3397_v8, %v1965_v14  ;;  %v3745_v15 = vpop.f32.mrb[35].mxu1  ;;  %v1969_v17 = vmul.f32 0.25, %v1963_v26 }
0x16d2   :  { %v1970_v43 = vmul.f32 0.25, %v1966_v2  ;;  %v4813_v18 = vpack.c.bf16 %v1966_v2, %v1963_v26 }
0x16d4   :  { %1974 = vrot.lane.b32.xlu1 %v4813_v18, %s4160_s0  ;;  %v1971_v11 = vpack.c.bf16 %v1970_v43, %v1969_v17 }
0x16d8   :  { %2048 = vrot.lane.b32.xlu1 %v4813_v18, %s4161_s5  ;;  %s5123_s5 = sld [smem:[#allocation17_spill]] }
0x16dc   :  { %2103 = vrot.lane.b32.xlu1 %v1971_v11, %s4163_s14 }
0x1746   :  { %v1975_v23 = vpop.permute.xlu1 %1974 }
0x1747   :  { %v1980_v24 = vsel %vm566_vm2, %v1975_v23, 0 }
0x1748   :  { %3747 = vmatpush3.bf16.xpose.msra.mxu1 %v1980_v24 }
0x1749   :  { %3752 = vmatprep.subr.bf16.mxu1 %v4158_v29 }
0x174a   :  { %v2049_v30 = vpop.permute.xlu1 %2048 }
0x174b   :  { %v2057_v36 = vand.u32 %v4823_v27, %v2049_v30 }
0x174e   :  { %v2104_v9 = vpop.permute.xlu1 %2103 }
0x174f   :  { %3749 = vmatmul.mubr.msk.bf16.vlgmr.msra.gmra.mrb[36].mxu1 %vm566_vm2, %v1971_v11 }
0x1750   :  { %3753 = vmatpush3.bf16.msra.mxu1 %v2057_v36  ;;  %3754 = vmatprep.mubr.msk.bf16.mxu1 %vm4159_vm1, %v4158_v29 }
0x1751   :  { %3758 = vmatprep.subr.bf16.mxu1 %v4158_v29 }
0x1822   :  { %v2016_v32 = vpop.f32.mrb[36].mxu1 }
0x1823   :  { %v2017_v53 = vadd.f32 %v2016_v32, %v1904_v48  ;;  %v3750_v33 = vpop.f32.mrb[37].mxu1 }
0x1824   :  { %v2019_v38 = vpop.f32.mrb[38].mxu1 }
0x1825   :  { %v2020_v37 = vadd.f32 %v2019_v38, %v1905_v62  ;;  %v3751_v46 = vpop.f32.mrb[39].mxu1  ;;  %v2024_v47 = vsel %vm2023_vm14, %v2017_v53, -inf }
0x1826   :  { %2025 = vmax.xlane.f32.xlu0 %v2024_v47 }
0x1827   :  { %v2028_v41 = vsel %vm2027_vm15, %v2020_v37, -inf }
0x182a   :  { %2029 = vmax.xlane.f32.xlu0 %v2028_v41 }
0x18b3   :  { %v2026_v57 = vpop.xlane.xlu0 %2025 }
0x18b4   :  { %v2031_v44 = vsub.f32 %v2017_v53, %v2026_v57 }
0x18b6   :  { %v2033_v45 = vmul.f32 1.442695, %v2031_v44 }
0x18b7   :  { %v2030_v51 = vpop.xlane.xlu0 %2029 }
0x18b8   :  { %4023 = vpow2.f32 %v2033_v45  ;;  %v2032_v52 = vsub.f32 %v2020_v37, %v2030_v51 }
0x18ba   :  { %v2035_v54 = vmul.f32 1.442695, %v2032_v52  ;;  %v1911_v52 = vld [vmem:[%s5112_s2] sm:$0xff] }
0x18bc   :  { %4025 = vpow2.f32 %v2035_v54  ;;  %v1912_v54 = vld [vmem:[%s5112_s2 + $0x8] sm:$0xff] }
0x18c2   :  { %v4024_v55 = vpop.eup %4023 }
0x18c3   :  { %v2037_v56 = vsel %vm2023_vm14, %v4024_v55, 0.0 }
0x18c4   :  { %2038 = vadd.xlane.f32.xlu0 %v2037_v56  ;;  %v2101_v56 = vpack.c.bf16 %v1912_v54, %v1911_v52 }
0x18c6   :  { %v4026_v58 = vpop.eup %4025 }
0x18c7   :  { %v2040_v59 = vsel %vm2027_vm15, %v4026_v58, 0.0 }
0x18c8   :  { %2041 = vadd.xlane.f32.xlu0 %v2040_v59 }
0x18de   :  { %2105 = vrot.lane.b32.xlu0 %v4813_v18, %s4162_s8 }
0x1951   :  { %v2039_v50 = vpop.xlane.xlu0 %2038 }
0x1952   :  { %4027 = vrcp.f32 %v2039_v50 }
0x1955   :  { %v2042_v60 = vpop.xlane.xlu0 %2041 }
0x1956   :  { %4029 = vrcp.f32 %v2042_v60 }
0x1959   :  { %v2106_v6 = vpop.permute.xlu0 %2105 }
0x195a   :  { %v2111_v8 = vsel %vm566_vm2, %v2106_v6, 0 }
0x195c   :  { %v4028_v21 = vpop.eup %4027 }
0x195d   :  { %v2045_v5 = vmul.f32 %v4028_v21, %v4024_v55 }
0x1960   :  { %v4030_v61 = vpop.eup %4029 }
0x1961   :  { %v2046_v12 = vmul.f32 %v4030_v61, %v4026_v58  ;;  %v1914_v58 = vld [vmem:[%s5112_s2 + $0x18] sm:$0xff] }
0x1963   :  { %v2047_v34 = vpack.c.bf16 %v2046_v12, %v2045_v5 }
0x1965   :  { %3755 = vmatmul.mubr.msk.bf16.vlgmr.msra.gmra.mrb[40].mxu1 %vm2023_vm14, %v2047_v34 }
0x1966   :  { %3759 = vmatpush3.bf16.xpose.msra.mxu1 %v2111_v8  ;;  %3760 = vmatprep.mubr.msk.bf16.mxu1 %vm4159_vm1, %v4158_v29 }
0x1967   :  { %3770 = vmatprep.subr.bf16.mxu1 %v4158_v29 }
0x196d   :  { %3761 = vmatmul.mubr.msk.bf16.vlgmr.msra.gmra.mrb[44].mxu1 %vm566_vm2, %v2104_v9  ;;  %v3405_v9 = vld [vmem:[%s5113_s13] ss:$0 sm:$0xff] }
0x196e   :  { %3772 = vmatprep.mubr.msk.bf16.mxu1 %vm4159_vm1, %v4158_v29 }
0x1a38   :  { %v2093_v26 = vpop.f32.mrb[40].mxu1 }
0x1a39   :  { %v3756_v63 = vpop.f32.mrb[41].mxu1 }
0x1a3a   :  { %v2096_v14 = vpop.f32.mrb[42].mxu1 }
0x1a3b   :  { %v2100_v2 = vpack.c.bf16 %v2096_v14, %v2093_v26  ;;  %v3757_v15 = vpop.f32.mrb[43].mxu1 }
0x1a40   :  { %v2147_v17 = vpop.f32.mrb[44].mxu1 }
0x1a41   :  { %v2148_v43 = vadd.f32 %v2147_v17, %v1904_v48  ;;  %v3762_v11 = vpop.f32.mrb[45].mxu1 }
0x1a42   :  { %v2150_v23 = vpop.f32.mrb[46].mxu1 }
0x1a43   :  { %v2151_v24 = vadd.f32 %v2150_v23, %v1905_v62  ;;  %v3763_v35 = vpop.f32.mrb[47].mxu1  ;;  %v2154_v42 = vsel %vm2023_vm14, %v2148_v43, -inf }
0x1a44   :  { %2155 = vmax.xlane.f32.xlu1 %v2154_v42 }
0x1a45   :  { %v2157_v30 = vsel %vm2027_vm15, %v2151_v24, -inf }
0x1a46   :  { %2158 = vmax.xlane.f32.xlu0 %v2157_v30  ;;  %v2370_v30 = vld [vmem:[%s5114_s10] sm:$0xff] }
0x1ad1   :  { %v2156_v36 = vpop.xlane.xlu1 %2155 }
0x1ad2   :  { %v2160_v32 = vsub.f32 %v2148_v43, %v2156_v36  ;;  %v2371_v36 = vld [vmem:[%s5114_s10 + $0x8] sm:$0xff] }
0x1ad3   :  { %v2159_v53 = vpop.xlane.xlu0 %2158 }
0x1ad4   :  { %v2162_v33 = vmul.f32 1.442695, %v2160_v32  ;;  %v2161_v38 = vsub.f32 %v2151_v24, %v2159_v53  ;;  %v2372_v32 = vld [vmem:[%s5114_s10 + $0x10] sm:$0xff]  ;;  %v2381_v53 = vpack.c.bf16 %v2371_v36, %v2370_v30 }
0x1ad6   :  { %4031 = vpow2.f32 %v2162_v33  ;;  %v2164_v37 = vmul.f32 1.442695, %v2161_v38  ;;  %v2373_v33 = vld [vmem:[%s5114_s10 + $0x18] sm:$0xff] }
0x1ad7   :  { %v2382_v38 = vpack.c.bf16 %v2373_v33, %v2372_v32 }
0x1ad8   :  { %4033 = vpow2.f32 %v2164_v37 }
0x1ae0   :  { %v4032_v46 = vpop.eup %4031 }
0x1ae1   :  { %v2166_v48 = vsel %vm2023_vm14, %v4032_v46, 0.0 }
0x1ae2   :  { %v4034_v47 = vpop.eup %4033  ;;  %2167 = vadd.xlane.f32.xlu1 %v2166_v48 }
0x1ae3   :  { %v2169_v62 = vsel %vm2027_vm15, %v4034_v47, 0.0 }
0x1ae6   :  { %2170 = vadd.xlane.f32.xlu1 %v2169_v62 }
0x1af7   :  { %2177 = vrot.lane.b32.xlu1 %v4813_v18, %s4164_s27  ;;  %s5126_s27 = sld [smem:[#allocation21_spill]] }
0x1afb   :  { %1783 = vperm.xlu1 %3956, %v4806_v3  }
0x1aff   :  { %1793 = vperm.xlu1 %3956, %v4810_v20  }
0x1b03   :  { %2437 = vrot.lane.b32.xlu1 %v2381_v53, %s4160_s0 }
0x1b07   :  { %2439 = vrot.lane.b32.xlu1 %v2382_v38, %s4160_s0 }
0x1b6f   :  { %v2168_v41 = vpop.xlane.xlu1 %2167 }
0x1b70   :  { %4035 = vrcp.f32 %v2168_v41 }
0x1b73   :  { %v2171_v57 = vpop.xlane.xlu1 %2170 }
0x1b74   :  { %4037 = vrcp.f32 %v2171_v57 }
0x1b77   :  { %v2178_v44 = vpop.permute.xlu1 %2177 }
0x1b78   :  { %v2183_v45 = vand.u32 %v2178_v44, %v4823_v27  ;;  %v1913_v27 = vld [vmem:[%s5112_s2 + $0x10] sm:$0xff] }
0x1b79   :  { %v2227_v59 = vpack.c.bf16 %v1914_v58, %v1913_v27 }
0x1b7a   :  { %3765 = vmatpush3.bf16.msra.mxu0 %v2183_v45  ;;  %v4036_v51 = vpop.eup %4035 }
0x1b7b   :  { %3776 = vmatprep.subr.bf16.mxu0 %v4158_v29  ;;  %v2174_v55 = vmul.f32 %v4036_v51, %v4032_v46  ;;  %3771 = vmatpush3.bf16.msra.mxu1 %v2227_v59  ;;  %v1784_v45 = vpop.permute.xlu1 %1783 }
0x1b7c   :  { %3782 = vmatprep.subr.bf16.mxu1 %v4158_v29 }
0x1b7e   :  { %v4038_v18 = vpop.eup %4037 }
0x1b7f   :  { %v2175_v3 = vmul.f32 %v4038_v18, %v4034_v47  ;;  %v1794_v51 = vpop.permute.xlu1 %1793  ;;  %v3408_v18 = vld [vmem:[%s5115_s11] ss:$0 sm:$0xff] }
0x1b80   :  { %2443 = vrot.lane.b32.xlu1 %v3408_v18, %s4160_s0 }
0x1b81   :  { %v2176_v20 = vpack.c.bf16 %v2175_v3, %v2174_v55 }
0x1b83   :  { %3767 = vmatmul.mubr.msk.bf16.vlgmr.msra.gmra.mrb[44].mxu0 %vm2023_vm14, %v2176_v20  ;;  %v2438_v52 = vpop.permute.xlu1 %2437 }
0x1b84   :  { %3777 = vmatpush3.bf16.msra.mxu0 %v2101_v56  ;;  %3778 = vmatprep.mubr.msk.bf16.mxu0 %vm4159_vm1, %v4158_v29 }
0x1b85   :  { %3790 = vmatprep.subr.bf16.mxu0 %v2438_v52 }
0x1b87   :  { %v2440_v54 = vpop.permute.xlu1 %2439 }
0x1b8b   :  { %3779 = vmatmul.mubr.msk.bf16.vlgmr.msra.gmra.mrb[48].mxu0 %vm566_vm2, %v2100_v2 }
0x1b8c   :  { %3791 = vmatpush3.bf16.msra.mxu0 %v2438_v52 }
0x1b8d   :  { %3792 = vmatprep.subr.bf16.mxu0 %v2440_v54 }
0x1b90   :  { %3793 = vmatpush3.bf16.msra.mxu0 %v2440_v54 }
0x1b91   :  { %3806 = vmatprep.subr.bf16.mxu0 %v4158_v29 }
0x1c56   :  { %v2219_v50 = vpop.f32.mrb[44].mxu0 }
0x1c57   :  { %v3768_v60 = vpop.f32.mrb[45].mxu0 }
0x1c58   :  { %v2222_v21 = vpop.f32.mrb[46].mxu0 }
0x1c59   :  { %v2226_v61 = vpack.c.bf16 %v2222_v21, %v2219_v50  ;;  %v3769_v5 = vpop.f32.mrb[47].mxu0  ;;  %v1796_v50 = vmul.f32 %v1784_v45, %v4701_v39 }
0x1c5b   :  { %3773 = vmatmul.mubr.msk.bf16.vlgmr.msra.gmra.mrb[48].mxu1 %vm566_vm2, %v2226_v61 }
0x1c5c   :  { %3786 = vmatprep.mubr.msk.bf16.mxu1 %vm4159_vm1, %v4158_v29  ;;  %3783 = vmatpush3.bf16.msra.mxu1 %v2381_v53 }
0x1c5d   :  { %3784 = vmatprep.subr.bf16.mxu1 %v4158_v29 }
0x1c5e   :  { %v2309_v12 = vpop.f32.mrb[48].mxu0 }
0x1c5f   :  { %v3780_v6 = vpop.f32.mrb[49].mxu0 }
0x1c60   :  { %v2312_v34 = vpop.f32.mrb[50].mxu0  ;;  %3785 = vmatpush3.bf16.msra.mxu1 %v2382_v38  ;;  %v3406_v6 = vld [vmem:[%s5116_s9] ss:$0 sm:$0xff] }
0x1c61   :  { %v3781_v8 = vpop.f32.mrb[51].mxu0  ;;  %3798 = vmatprep.subr.bf16.mxu1 %v4158_v29 }
0x1d2e   :  { %v2265_v26 = vpop.f32.mrb[48].mxu1 }
0x1d2f   :  { %v2310_v63 = vadd.f32 %v2309_v12, %v2265_v26  ;;  %v3774_v14 = vpop.f32.mrb[49].mxu1 }
0x1d30   :  { %v2268_v2 = vpop.f32.mrb[50].mxu1 }
0x1d31   :  { %v2322_v15 = vadd.f32 %v3405_v9, %v2310_v63  ;;  %v2313_v17 = vadd.f32 %v2312_v34, %v2268_v2  ;;  %v3775_v43 = vpop.f32.mrb[51].mxu1  ;;  %v2444_v2 = vpop.permute.xlu1 %2443 }
0x1d33   :  { %v2323_v11 = vadd.f32 %v3405_v9, %v2313_v17  ;;  %v2324_v23 = vadd.f32 %v2322_v15, %v4797_v0  ;;  %v3407_v9 = vld [vmem:[%s5117_s15] ss:$0 sm:$0xff] }
0x1d35   :  { %v2328_v24 = vsel %vm303_vm5, %v2324_v23, 0.0  ;;  %v2325_v35 = vadd.f32 %v2323_v11, %v4799_v1 }
0x1d36   :  { %2329 = vadd.xlane.f32.xlu0 %v2328_v24 }
0x1d37   :  { %v2331_v42 = vsel %vm1862_vm6, %v2325_v35, 0.0 }
0x1d3a   :  { %2332 = vadd.xlane.f32.xlu0 %v2331_v42 }
0x1dc3   :  { %v2330_v0 = vpop.xlane.xlu0 %2329 }
0x1dc4   :  { %v2334_v1 = vmul.f32 0.03125, %v2330_v0 }
0x1dc6   :  { %v2336_v37 = vsub.f32 %v2324_v23, %v2334_v1 }
0x1dc7   :  { %v2333_v46 = vpop.xlane.xlu0 %2332 }
0x1dc8   :  { %v2335_v48 = vmul.f32 0.03125, %v2333_v46  ;;  %v2338_v47 = vmul.f32 %v2336_v37, %v2336_v37 }
0x1dca   :  { %v2337_v62 = vsub.f32 %v2325_v35, %v2335_v48  ;;  %v2340_v41 = vsel %vm303_vm5, %v2338_v47, 0.0 }
0x1dcb   :  { %2341 = vadd.xlane.f32.xlu0 %v2340_v41 }
0x1dcc   :  { %v2339_v57 = vmul.f32 %v2337_v62, %v2337_v62 }
0x1dce   :  { %v2343_v44 = vsel %vm1862_vm6, %v2339_v57, 0.0 }
0x1dcf   :  { %2344 = vadd.xlane.f32.xlu0 %v2343_v44 }
0x1de5   :  { %1788 = vperm.xlu0 %3955, %v4808_v4   ;;  %v1798_v4 = vmul.f32 %v1794_v51, %v4709_v40 }
0x1de7   :  { %v2434_v5 = vpack.c.bf16 %v1798_v4, %v1798_v4 }
0x1e58   :  { %v2342_v55 = vpop.xlane.xlu0 %2341 }
0x1e59   :  { %v2346_v3 = vmul.f32 0.03125, %v2342_v55 }
0x1e5b   :  { %v2348_v56 = vadd.f32 1e-05, %v2346_v3 }
0x1e5c   :  { %v2345_v20 = vpop.xlane.xlu0 %2344 }
0x1e5d   :  { %4039 = vrsqrt.f32 %v2348_v56  ;;  %v2347_v27 = vmul.f32 0.03125, %v2345_v20 }
0x1e5f   :  { %v2349_v58 = vadd.f32 1e-05, %v2347_v27 }
0x1e61   :  { %4041 = vrsqrt.f32 %v2349_v58 }
0x1e64   :  { %v1789_v59 = vpop.permute.xlu0 %1788 }
0x1e65   :  { %v1797_v60 = vmul.f32 %v1789_v59, %v4703_v49 }
0x1e67   :  { %v4040_v21 = vpop.eup %4039  ;;  %v2433_v61 = vpack.c.bf16 %v1797_v60, %v1796_v50 }
0x1e68   :  { %v2352_v12 = vmul.f32 %v4040_v21, %v2336_v37 }
0x1e69   :  { %3794 = vmatprep.mubr.msk.bf16.mxu0 %vm303_vm5, %v2433_v61 }
0x1e6a   :  { %3795 = vmatmul.mubr.msk.bf16.vlgmr.msra.gmra.mrb[52].mxu0 %vm303_vm5, %v2434_v5  ;;  %v2360_v8 = vmul.f32 %v3406_v6, %v2352_v12 }
0x1e6b   :  { %v4042_v34 = vpop.eup %4041  ;;  %3810 = vmatprep.mubr.msk.bf16.mxu0 %vm4159_vm1, %v4158_v29 }
0x1e6c   :  { %v2353_v40 = vmul.f32 %v4042_v34, %v2337_v62  ;;  %v4900_v39 = vadd.f32 %v3407_v9, %v2360_v8 }
0x1e6e   :  { %v2361_v26 = vmul.f32 %v3406_v6, %v2353_v40 }
0x1e70   :  { %v4902_v49 = vadd.f32 %v3407_v9, %v2361_v26 }
0x1e72   :  { %v2380_v63 = vpack.c.bf16 %v4902_v49, %v4900_v39 }
0x1e74   :  { %3787 = vmatmul.mubr.msk.bf16.vlgmr.msra.gmra.mrb[52].mxu1 %vm303_vm5, %v2380_v63 }
0x1e75   :  { %3802 = vmatprep.mubr.msk.bf16.mxu1 %vm4159_vm1, %v4158_v29 }
0x1f3d   :  { %v3796_v14 = vpop.f32.mrb[52].mxu0 }
0x1f3e   :  { %v2486_v15 = vpop.f32.mrb[53].mxu0  ;;  %v2495_v35 = vadd.f32 %v3796_v14, %v2444_v2  ;;  %v2375_v14 = vld [vmem:[%s5118_s18] sm:$0xff] }
0x1f3f   :  { %v3797_v17 = vpop.f32.mrb[54].mxu0  ;;  %v2487_v11 = vadd.f32 %v2486_v15, %v2444_v2 }
0x1f40   :  { %v2489_v43 = vpop.f32.mrb[55].mxu0  ;;  %v4914_v53 = vpack.c.bf16 %v2495_v35, %v2495_v35 }
0x1f41   :  { %v2490_v23 = vadd.f32 %v2489_v43, %v2444_v2  ;;  %v2376_v2 = vld [vmem:[%s5118_s18 + $0x8] sm:$0xff] }
0x1f42   :  { %v2512_v46 = vsel %vm566_vm2, %v4914_v53, 0  ;;  %v2634_v15 = vpack.c.bf16 %v2376_v2, %v2375_v14 }
0x1f43   :  { %v4909_v24 = vpack.c.bf16 %v2490_v23, %v2487_v11 }
0x1f45   :  { %v2509_v42 = vsel %vm566_vm2, %v4909_v24, 0 }
0x1f46   :  { %3799 = vmatpush3.bf16.xpose.msra.mxu1 %v2509_v42 }
0x1f47   :  { %v2426_v30 = vpop.f32.mrb[52].mxu1  ;;  %3800 = vmatprep.subr.bf16.mxu1 %v4158_v29 }
0x1f48   :  { %v2427_v36 = vadd.f32 %v3408_v18, %v2426_v30  ;;  %v3788_v32 = vpop.f32.mrb[53].mxu1 }
0x1f49   :  { %v2429_v33 = vpop.f32.mrb[54].mxu1 }
0x1f4a   :  { %v2430_v38 = vadd.f32 %v3408_v18, %v2429_v33  ;;  %v3789_v0 = vpop.f32.mrb[55].mxu1  ;;  %v2500_v1 = vmul.f32 0.25, %v2427_v36 }
0x1f4c   :  { %v2501_v37 = vmul.f32 0.25, %v2430_v38 }
0x1f4e   :  { %v2502_v48 = vpack.c.bf16 %v2501_v37, %v2500_v1  ;;  %3801 = vmatpush3.bf16.xpose.msra.mxu1 %v2512_v46 }
0x1f4f   :  { %3822 = vmatprep.subr.bf16.mxu1 %v4158_v29 }
0x1f55   :  { %3803 = vmatmul.mubr.msk.bf16.vlgmr.msra.gmra.mrb[56].mxu1 %vm566_vm2, %v2502_v48 }
0x1f56   :  { %3826 = vmatprep.mubr.msk.bf16.mxu1 %vm4159_vm1, %v4158_v29 }
0x2028   :  { %v2548_v47 = vpop.f32.mrb[56].mxu1 }
0x2029   :  { %v3804_v62 = vpop.f32.mrb[57].mxu1  ;;  %v2555_v41 = vsel %vm627_vm3, %v2548_v47, -inf }
0x202a   :  { %2556 = vmax.xlane.f32.xlu1 %v2555_v41  ;;  %v2551_v57 = vpop.f32.mrb[58].mxu1 }
0x202b   :  { %v3805_v44 = vpop.f32.mrb[59].mxu1  ;;  %v2559_v45 = vsel %vm2558_vm0, %v2551_v57, -inf }
0x202c   :  { %2560 = vmax.xlane.f32.xlu0 %v2559_v45 }
0x203b   :  { %2583 = vrot.lane.b32.xlu1 %v4914_v53, %s4160_s0 }
0x20b7   :  { %v2557_v51 = vpop.xlane.xlu1 %2556 }
0x20b8   :  { %v2562_v52 = vsub.f32 %v2548_v47, %v2557_v51 }
0x20b9   :  { %v2561_v54 = vpop.xlane.xlu0 %2560 }
0x20ba   :  { %v2564_v18 = vmul.f32 1.442695, %v2562_v52  ;;  %v2563_v55 = vsub.f32 %v2551_v57, %v2561_v54 }
0x20bb   :  { %v2584_v4 = vpop.permute.xlu1 %2583 }
0x20bc   :  { %4043 = vpow2.f32 %v2564_v18  ;;  %v2566_v3 = vmul.f32 1.442695, %v2563_v55  ;;  %v2590_v21 = vsel %vm674_vm4, %v2584_v4, 0 }
0x20be   :  { %4045 = vpow2.f32 %v2566_v3 }
0x20c6   :  { %v4044_v56 = vpop.eup %4043 }
0x20c7   :  { %v2568_v20 = vsel %vm627_vm3, %v4044_v56, 0.0 }
0x20c8   :  { %v4046_v27 = vpop.eup %4045  ;;  %2569 = vadd.xlane.f32.xlu0 %v2568_v20 }
0x20c9   :  { %v2571_v58 = vsel %vm2558_vm0, %v4046_v27, 0.0 }
0x20ca   :  { %2572 = vadd.xlane.f32.xlu1 %v2571_v58 }
0x20db   :  { %2638 = vrot.lane.b32.xlu1 %v4909_v24, %s4163_s14 }
0x20de   :  { %2581 = vrot.lane.b32.xlu0 %v4909_v24, %s4160_s0  ;;  %s5122_s0 = sld [smem:[#allocation22_spill]] }
0x20df   :  { %2636 = vrot.lane.b32.xlu1 %v2502_v48, %s4163_s14 }
0x20e2   :  { %2640 = vrot.lane.b32.xlu0 %v4914_v53, %s4163_s14  ;;  %s5125_s14 = sld [smem:[#allocation16_spill]] }
0x2155   :  { %v2570_v59 = vpop.xlane.xlu0 %2569 }
0x2156   :  { %4047 = vrcp.f32 %v2570_v59  ;;  %v2377_v59 = vld [vmem:[%s5118_s18 + $0x10] sm:$0xff] }
0x2157   :  { %v2573_v50 = vpop.xlane.xlu1 %2572 }
0x2158   :  { %4049 = vrcp.f32 %v2573_v50  ;;  %v2378_v50 = vld [vmem:[%s5118_s18 + $0x18] sm:$0xff] }
0x2159   :  { %v2582_v60 = vpop.permute.xlu0 %2581 }
0x215a   :  { %3807 = vmatpush3.bf16.msra.mxu0 %v2582_v60  ;;  %v2768_v60 = vpack.c.bf16 %v2378_v50, %v2377_v59  ;;  %v3023_v59 = vld [vmem:[%s5123_s5] sm:$0xff]  ;;  %v3024_v50 = vld [vmem:[%s5123_s5 + $0x8] sm:$0xff] }
0x215b   :  { %3808 = vmatprep.subr.bf16.mxu0 %v4158_v29  ;;  %v2639_v34 = vpop.permute.xlu1 %2638 }
0x215c   :  { %v2646_v40 = vsel %vm566_vm2, %v2639_v34, 0  ;;  %v3418_v34 = vld [vmem:[%s5119_s22] ss:$0 sm:$0xff] }
0x215d   :  { %v2641_v9 = vpop.permute.xlu0 %2640 }
0x215e   :  { %3809 = vmatpush3.bf16.msra.mxu0 %v2590_v21  ;;  %v2649_v26 = vsel %vm566_vm2, %v2641_v9, 0 }
0x215f   :  { %3814 = vmatprep.subr.bf16.mxu0 %v4158_v29  ;;  %v2637_v63 = vpop.permute.xlu1 %2636 }
0x2160   :  { %v4048_v61 = vpop.eup %4047 }
0x2161   :  { %v2576_v12 = vmul.f32 %v4048_v61, %v4044_v56 }
0x2162   :  { %v4050_v5 = vpop.eup %4049 }
0x2163   :  { %v2577_v6 = vmul.f32 %v4050_v5, %v4046_v27 }
0x2165   :  { %v2578_v8 = vpack.c.bf16 %v2577_v6, %v2576_v12 }
0x2167   :  { %3811 = vmatmul.mubr.msk.bf16.vlgmr.msra.gmra.mrb[56].mxu0 %vm627_vm3, %v2578_v8 }
0x2168   :  { %3815 = vmatpush3.bf16.xpose.msra.mxu0 %v2646_v40  ;;  %3818 = vmatprep.mubr.msk.bf16.mxu0 %vm4159_vm1, %v4158_v29 }
0x2169   :  { %3816 = vmatprep.subr.bf16.mxu0 %v4158_v29 }
0x2170   :  { %3817 = vmatpush3.bf16.xpose.msra.mxu0 %v2649_v26 }
0x2171   :  { %3836 = vmatprep.subr.bf16.mxu0 %v4158_v29 }
0x2177   :  { %3819 = vmatmul.mubr.msk.bf16.vlgmr.msra.gmra.mrb[60].mxu0 %vm566_vm2, %v2637_v63 }
0x2178   :  { %3838 = vmatprep.mubr.msk.bf16.mxu0 %vm4159_vm1, %v4158_v29  ;;  %3837 = vmatpush3.bf16.msra.mxu0 %v2634_v15 }
0x2179   :  { %3850 = vmatprep.subr.bf16.mxu0 %v4158_v29 }
0x223a   :  { %v2626_v17 = vpop.f32.mrb[56].mxu0 }
0x223b   :  { %v3812_v43 = vpop.f32.mrb[57].mxu0 }
0x223c   :  { %v2629_v11 = vpop.f32.mrb[58].mxu0 }
0x223d   :  { %v2633_v23 = vpack.c.bf16 %v2629_v11, %v2626_v17  ;;  %v3813_v35 = vpop.f32.mrb[59].mxu0 }
0x223f   :  { %3839 = vmatmul.mubr.msk.bf16.vlgmr.msra.gmra.mrb[64].mxu0 %vm566_vm2, %v2633_v23 }
0x2240   :  { %3858 = vmatprep.mubr.msk.bf16.mxu0 %vm4159_vm1, %v4158_v29 }
0x224a   :  { %v2685_v42 = vpop.f32.mrb[60].mxu0 }
0x224b   :  { %v3820_v30 = vpop.f32.mrb[61].mxu0  ;;  %v2692_v36 = vsel %vm627_vm3, %v2685_v42, -inf }
0x224c   :  { %2693 = vmax.xlane.f32.xlu0 %v2692_v36  ;;  %v2688_v32 = vpop.f32.mrb[62].mxu0 }
0x224d   :  { %v3821_v33 = vpop.f32.mrb[63].mxu0  ;;  %v2695_v38 = vsel %vm2558_vm0, %v2688_v32, -inf }
0x224e   :  { %2696 = vmax.xlane.f32.xlu1 %v2695_v38 }
0x225f   :  { %2715 = vrot.lane.b32.xlu1 %v4909_v24, %s4162_s8 }
0x22d9   :  { %v2694_v0 = vpop.xlane.xlu0 %2693 }
0x22da   :  { %v2698_v1 = vsub.f32 %v2685_v42, %v2694_v0 }
0x22db   :  { %v2697_v37 = vpop.xlane.xlu1 %2696 }
0x22dc   :  { %v2700_v46 = vmul.f32 1.442695, %v2698_v1  ;;  %v2699_v48 = vsub.f32 %v2688_v32, %v2697_v37  ;;  %v2911_v1 = vld [vmem:[%s5120_s20] sm:$0xff]  ;;  %v2912_v37 = vld [vmem:[%s5120_s20 + $0x8] sm:$0xff] }
0x22de   :  { %4051 = vpow2.f32 %v2700_v46  ;;  %v2702_v47 = vmul.f32 1.442695, %v2699_v48  ;;  %v2917_v46 = vpack.c.bf16 %v2912_v37, %v2911_v1  ;;  %v2913_v48 = vld [vmem:[%s5120_s20 + $0x10] sm:$0xff] }
0x22df   :  { %v2716_v62 = vpop.permute.xlu1 %2715 }
0x22e0   :  { %4053 = vpow2.f32 %v2702_v47  ;;  %3823 = vmatpush3.bf16.msra.mxu1 %v2716_v62  ;;  %v2914_v47 = vld [vmem:[%s5120_s20 + $0x18] sm:$0xff] }
0x22e1   :  { %3824 = vmatprep.subr.bf16.mxu1 %v4158_v29  ;;  %v2918_v62 = vpack.c.bf16 %v2914_v47, %v2913_v48 }
0x22e8   :  { %v4052_v41 = vpop.eup %4051 }
0x22e9   :  { %v2704_v57 = vsel %vm627_vm3, %v4052_v41, 0.0 }
0x22ea   :  { %v4054_v44 = vpop.eup %4053  ;;  %2705 = vadd.xlane.f32.xlu0 %v2704_v57 }
0x22eb   :  { %v2707_v45 = vsel %vm2558_vm0, %v4054_v44, 0.0 }
0x22ee   :  { %2708 = vadd.xlane.f32.xlu0 %v2707_v45 }
0x2304   :  { %2717 = vrot.lane.b32.xlu0 %v4914_v53, %s4162_s8  ;;  %s5124_s8 = sld [smem:[#allocation14_spill]] }
0x2312   :  { %v2850_v24 = vpop.f32.mrb[64].mxu0 }
0x2313   :  { %v3840_v51 = vpop.f32.mrb[65].mxu0 }
0x2314   :  { %v2853_v52 = vpop.f32.mrb[66].mxu0 }
0x2315   :  { %v3841_v54 = vpop.f32.mrb[67].mxu0 }
0x2316   :  { %v3419_v54 = vld [vmem:[%s5121_s26] ss:$0 sm:$0xff] }
0x2377   :  { %v2706_v18 = vpop.xlane.xlu0 %2705 }
0x2378   :  { %4055 = vrcp.f32 %v2706_v18 }
0x237b   :  { %v2709_v55 = vpop.xlane.xlu0 %2708 }
0x237c   :  { %4057 = vrcp.f32 %v2709_v55 }
0x237f   :  { %v2718_v3 = vpop.permute.xlu0 %2717 }
0x2380   :  { %v2724_v56 = vsel %vm674_vm4, %v2718_v3, 0  ;;  %vm3261_vm4 = vcmask 0  }
0x2381   :  { %3825 = vmatpush3.bf16.msra.mxu1 %v2724_v56 }
0x2382   :  { %3830 = vmatprep.subr.bf16.mxu1 %v4158_v29  ;;  %v4056_v20 = vpop.eup %4055 }
0x2383   :  { %v2712_v58 = vmul.f32 %v4056_v20, %v4052_v41  ;;  %v3420_v20 = vld [vmem:[%s5122_s0] ss:$0 sm:$0xff] }
0x2386   :  { %v4058_v27 = vpop.eup %4057 }
0x2387   :  { %v2713_v53 = vmul.f32 %v4058_v27, %v4054_v44 }
0x2389   :  { %v2714_v4 = vpack.c.bf16 %v2713_v53, %v2712_v58 }
0x238b   :  { %3827 = vmatmul.mubr.msk.bf16.vlgmr.msra.gmra.mrb[60].mxu1 %vm627_vm3, %v2714_v4 }
0x238c   :  { %3832 = vmatprep.mubr.msk.bf16.mxu1 %vm4159_vm1, %v4158_v29  ;;  %3831 = vmatpush3.bf16.msra.mxu1 %v2768_v60  ;;  %v3033_v60 = vpack.c.bf16 %v3024_v50, %v3023_v59 }
0x238d   :  { %3842 = vmatprep.subr.bf16.mxu1 %v4158_v29 }
0x238e   :  { %3851 = vmatpush3.bf16.msra.mxu0 %v3033_v60 }
0x238f   :  { %3852 = vmatprep.subr.bf16.mxu0 %v4158_v29 }
0x245e   :  { %v2760_v21 = vpop.f32.mrb[60].mxu1 }
0x245f   :  { %v3828_v61 = vpop.f32.mrb[61].mxu1 }
0x2460   :  { %v2763_v5 = vpop.f32.mrb[62].mxu1  ;;  %v3026_v61 = vld [vmem:[%s5123_s5 + $0x18] sm:$0xff] }
0x2461   :  { %v2767_v12 = vpack.c.bf16 %v2763_v5, %v2760_v21  ;;  %v3829_v6 = vpop.f32.mrb[63].mxu1  ;;  %v3025_v21 = vld [vmem:[%s5123_s5 + $0x10] sm:$0xff] }
0x2462   :  { %v3034_v5 = vpack.c.bf16 %v3026_v61, %v3025_v21  ;;  %v3028_v6 = vld [vmem:[%s5123_s5 + $0x28] sm:$0xff] }
0x2463   :  { %3833 = vmatmul.mubr.msk.bf16.vlgmr.msra.gmra.mrb[64].mxu1 %vm566_vm2, %v2767_v12  ;;  %v3027_v12 = vld [vmem:[%s5123_s5 + $0x20] sm:$0xff] }
0x2464   :  { %3846 = vmatprep.mubr.msk.bf16.mxu1 %vm4159_vm1, %v4158_v29  ;;  %3843 = vmatpush3.bf16.msra.mxu1 %v2917_v46 }
0x2465   :  { %3844 = vmatprep.subr.bf16.mxu1 %v4158_v29  ;;  %3853 = vmatpush3.bf16.msra.mxu0 %v3034_v5 }
0x2466   :  { %3854 = vmatprep.subr.bf16.mxu0 %v4158_v29 }
0x2468   :  { %3845 = vmatpush3.bf16.msra.mxu1 %v2918_v62 }
0x2469   :  { %3862 = vmatprep.subr.bf16.mxu1 %v4158_v29 }
0x2536   :  { %v2806_v8 = vpop.f32.mrb[64].mxu1 }
0x2537   :  { %v2851_v40 = vadd.f32 %v2850_v24, %v2806_v8  ;;  %v3834_v9 = vpop.f32.mrb[65].mxu1  ;;  %v3029_v8 = vld [vmem:[%s5123_s5 + $0x30] sm:$0xff] }
0x2538   :  { %v2809_v26 = vpop.f32.mrb[66].mxu1 }
0x2539   :  { %v2863_v63 = vadd.f32 %v3418_v34, %v2851_v40  ;;  %v2854_v14 = vadd.f32 %v2853_v52, %v2809_v26  ;;  %v3835_v2 = vpop.f32.mrb[67].mxu1  ;;  %v3030_v40 = vld [vmem:[%s5123_s5 + $0x38] sm:$0xff]  ;;  %v3421_v26 = vld [vmem:[%s5124_s8] ss:$0 sm:$0xff] }
0x253a   :  { %v3036_v9 = vpack.c.bf16 %v3030_v40, %v3029_v8 }
0x253b   :  { %v2864_v15 = vadd.f32 %v3418_v34, %v2854_v14  ;;  %v2865_v17 = vadd.f32 %v2863_v63, %v4900_v39  ;;  %v3035_v34 = vpack.c.bf16 %v3028_v6, %v3027_v12 }
0x253d   :  { %v2869_v43 = vsel %vm303_vm5, %v2865_v17, 0.0  ;;  %v2866_v11 = vadd.f32 %v2864_v15, %v4902_v49  ;;  %3855 = vmatpush3.bf16.msra.mxu0 %v3035_v34 }
0x253e   :  { %2870 = vadd.xlane.f32.xlu1 %v2869_v43  ;;  %3856 = vmatprep.subr.bf16.mxu0 %v4158_v29 }
0x253f   :  { %v2872_v23 = vsel %vm1862_vm6, %v2866_v11, 0.0 }
0x2540   :  { %2873 = vadd.xlane.f32.xlu0 %v2872_v23 }
0x2541   :  { %3857 = vmatpush3.bf16.msra.mxu0 %v3036_v9 }
0x25cb   :  { %v2871_v35 = vpop.xlane.xlu1 %2870 }
0x25cc   :  { %v2875_v42 = vmul.f32 0.03125, %v2871_v35 }
0x25cd   :  { %v2874_v30 = vpop.xlane.xlu0 %2873 }
0x25ce   :  { %v2877_v36 = vsub.f32 %v2865_v17, %v2875_v42  ;;  %v2876_v32 = vmul.f32 0.03125, %v2874_v30 }
0x25d0   :  { %v2878_v33 = vsub.f32 %v2866_v11, %v2876_v32  ;;  %v2879_v38 = vmul.f32 %v2877_v36, %v2877_v36 }
0x25d2   :  { %v2881_v39 = vsel %vm303_vm5, %v2879_v38, 0.0  ;;  %v2880_v0 = vmul.f32 %v2878_v33, %v2878_v33 }
0x25d3   :  { %2882 = vadd.xlane.f32.xlu1 %v2881_v39 }
0x25d4   :  { %v2884_v49 = vsel %vm1862_vm6, %v2880_v0, 0.0 }
0x25d5   :  { %2885 = vadd.xlane.f32.xlu0 %v2884_v49 }
0x2660   :  { %v2883_v41 = vpop.xlane.xlu1 %2882 }
0x2661   :  { %v2887_v57 = vmul.f32 0.03125, %v2883_v41 }
0x2662   :  { %v2886_v44 = vpop.xlane.xlu0 %2885 }
0x2663   :  { %v2889_v45 = vadd.f32 1e-05, %v2887_v57  ;;  %v2888_v24 = vmul.f32 0.03125, %v2886_v44 }
0x2665   :  { %4059 = vrsqrt.f32 %v2889_v45  ;;  %v2890_v51 = vadd.f32 1e-05, %v2888_v24 }
0x2667   :  { %4061 = vrsqrt.f32 %v2890_v51 }
0x266f   :  { %v4060_v52 = vpop.eup %4059 }
0x2670   :  { %v2893_v18 = vmul.f32 %v4060_v52, %v2877_v36 }
0x2671   :  { %v4062_v55 = vpop.eup %4061 }
0x2672   :  { %v2901_v3 = vmul.f32 %v3419_v54, %v2893_v18  ;;  %v2894_v56 = vmul.f32 %v4062_v55, %v2878_v33 }
0x2674   :  { %v2902_v27 = vmul.f32 %v3419_v54, %v2894_v56  ;;  %v4989_v58 = vadd.f32 %v3420_v20, %v2901_v3 }
0x2676   :  { %v4991_v53 = vadd.f32 %v3420_v20, %v2902_v27 }
0x2678   :  { %v2916_v4 = vpack.c.bf16 %v4991_v53, %v4989_v58 }
0x267a   :  { %3847 = vmatmul.mubr.msk.bf16.vlgmr.msra.gmra.mrb[68].mxu1 %vm303_vm5, %v2916_v4 }
0x267b   :  { %3878 = vmatprep.mubr.msk.bf16.mxu1 %vm4159_vm1, %v4158_v29 }
0x274d   :  { %v2962_v63 = vpop.f32.mrb[68].mxu1 }
0x274e   :  { %v2963_v14 = vadd.f32 %v3421_v26, %v2962_v63  ;;  %v3848_v2 = vpop.f32.mrb[69].mxu1 }
0x274f   :  { %v2965_v15 = vpop.f32.mrb[70].mxu1 }
0x2750   :  { %v2969_v17 = vmul.f32 0.70710677, %v2963_v14  ;;  %v2966_v43 = vadd.f32 %v3421_v26, %v2965_v15  ;;  %v3849_v11 = vpop.f32.mrb[71].mxu1  ;;  %v3017_v26 = vmul.f32 0.5, %v2963_v14 }
0x2752   :  { %v2971_v23 = vand.u32 2147483647, %v2969_v17  ;;  %v2970_v35 = vmul.f32 0.70710677, %v2966_v43  ;;  %vm3011_vm1 = vcmp.ge.f32.partialorder %v2969_v17, 0.0  ;;  %v3018_v63 = vmul.f32 0.5, %v2966_v43 }
0x2754   :  { %v2973_v42 = vmul.f32 0.3275911, %v2971_v23  ;;  %v2972_v30 = vand.u32 2147483647, %v2970_v35  ;;  %v2999_v38 = vsub.f32 0.0, %v2971_v23  ;;  %vm3012_vm2 = vcmp.ge.f32.partialorder %v2970_v35, 0.0 }
0x2756   :  { %v2975_v36 = vadd.f32 1.0, %v2973_v42  ;;  %v2974_v32 = vmul.f32 0.3275911, %v2972_v30  ;;  %v3000_v39 = vsub.f32 0.0, %v2972_v30  ;;  %v3001_v49 = vmul.f32 %v2999_v38, %v2971_v23  ;;  %v3423_v42 = vld [vmem:[%s5125_s14] ss:$0 sm:$0xff] }
0x2758   :  { %4063 = vrcp.f32 %v2975_v36  ;;  %v2976_v33 = vadd.f32 1.0, %v2974_v32  ;;  %v3002_v48 = vmul.f32 %v3000_v39, %v2972_v30  ;;  %v3003_v47 = vmul.f32 1.442695, %v3001_v49 }
0x2759   :  { %v3148_v49 = vsel %vm303_vm5, %v4419_v10, 0 }
0x275a   :  { %4065 = vrcp.f32 %v2976_v33  ;;  %v3005_v45 = vmul.f32 1.442695, %v3002_v48 }
0x275b   :  { %4067 = vpow2.f32 %v3003_v47 }
0x275c   :  { %4069 = vpow2.f32 %v3005_v45 }
0x2762   :  { %v4064_v0 = vpop.eup %4063 }
0x2763   :  { %v2981_v1 = vmul.f32 1.0614054, %v4064_v0 }
0x2764   :  { %v4066_v37 = vpop.eup %4065 }
0x2765   :  { %v2983_v46 = vadd.f32 -1.4531521, %v2981_v1  ;;  %v2982_v62 = vmul.f32 1.0614054, %v4066_v37  ;;  %v4068_v4 = vpop.eup %4067 }
0x2766   :  { %v4070_v21 = vpop.eup %4069 }
0x2767   :  { %v2985_v41 = vmul.f32 %v4064_v0, %v2983_v46  ;;  %v2984_v57 = vadd.f32 -1.4531521, %v2982_v62 }
0x2769   :  { %v2987_v44 = vadd.f32 1.4214138, %v2985_v41  ;;  %v2986_v24 = vmul.f32 %v4066_v37, %v2984_v57  ;;  %v3163_v57 = vsel %vm303_vm5, %v4450_v25, 0 }
0x276b   :  { %v2989_v51 = vmul.f32 %v4064_v0, %v2987_v44  ;;  %v2988_v52 = vadd.f32 1.4214138, %v2986_v24  ;;  %v3166_v44 = vsel %vm303_vm5, %v4456_v28, 0  ;;  %v3426_v28 = vld [vmem:[%s5127_s21] ss:$0 sm:$0xff] }
0x276d   :  { %v2991_v54 = vadd.f32 -0.28449672, %v2989_v51  ;;  %v2990_v18 = vmul.f32 %v4066_v37, %v2988_v52 }
0x276f   :  { %v2993_v55 = vmul.f32 %v4064_v0, %v2991_v54  ;;  %v2992_v3 = vadd.f32 -0.28449672, %v2990_v18 }
0x2771   :  { %v2995_v56 = vadd.f32 0.2548296, %v2993_v55  ;;  %v2994_v20 = vmul.f32 %v4066_v37, %v2992_v3  ;;  %v3425_v55 = vld [vmem:[%s5126_s27] ss:$0 sm:$0xff] }
0x2773   :  { %v2997_v27 = vmul.f32 %v4064_v0, %v2995_v56  ;;  %v2996_v59 = vadd.f32 0.2548296, %v2994_v20  ;;  %v3145_v0 = vsel %vm303_vm5, %v4416_v7, 0  ;;  %v3157_v7 = vsel %vm303_vm5, %v4438_v19, 0 }
0x2774   :  { %3863 = vmatpush3.bf16.xpose.msra.mxu1 %v3145_v0  ;;  %v3160_v19 = vsel %vm303_vm5, %v4444_v22, 0 }
0x2775   :  { %v3007_v50 = vmul.f32 %v4068_v4, %v2997_v27  ;;  %v2998_v60 = vmul.f32 %v4066_v37, %v2996_v59  ;;  %3864 = vmatprep.subr.bf16.mxu1 %v4158_v29 }
0x2777   :  { %v3009_v61 = vsub.f32 1.0, %v3007_v50  ;;  %v3008_v5 = vmul.f32 %v4070_v21, %v2998_v60  ;;  %v3427_v50 = vld [vmem:[%s5128_s25] ss:$0 sm:$0xff] }
0x2779   :  { %v3013_v12 = vsub.f32 0.0, %v3009_v61  ;;  %v3010_v6 = vsub.f32 1.0, %v3008_v5 }
0x277b   :  { %v3015_v34 = vsel %vm3011_vm1, %v3009_v61, %v3013_v12  ;;  %v3014_v8 = vsub.f32 0.0, %v3010_v6 }
0x277c   :  { %v3019_v40 = vadd.f32 1.0, %v3015_v34  ;;  %3865 = vmatpush3.bf16.xpose.msra.mxu1 %v3148_v49 }
0x277d   :  { %v3016_v9 = vsel %vm3012_vm2, %v3010_v6, %v3014_v8  ;;  %3866 = vmatprep.subr.bf16.mxu1 %v4158_v29  ;;  %v3212_v8 = vld [vmem:[%s4401_s19 + $0x8] sm:$0x1] }
0x277e   :  { %v3020_v2 = vadd.f32 1.0, %v3016_v9  ;;  %v3021_v15 = vmul.f32 %v3019_v40, %v3017_v26  ;;  %v3211_v40 = vld [vmem:[%s4401_s19] sm:$0xff] }
0x2780   :  { %v3022_v11 = vmul.f32 %v3020_v2, %v3018_v63 }
0x2782   :  { %v3032_v23 = vpack.c.bf16 %v3022_v11, %v3021_v15 }
0x2784   :  { %3859 = vmatmul.mubr.msk.bf16.vlgmr.msra.gmra.mrb[68].mxu0 %vm1249_vm9, %v3032_v23 }
0x2857   :  { %v3080_v30 = vpop.f32.mrb[68].mxu0 }
0x2858   :  { %v3081_v36 = vadd.f32 %v3423_v42, %v3080_v30  ;;  %v3860_v32 = vpop.f32.mrb[69].mxu0 }
0x2859   :  { %v3083_v33 = vpop.f32.mrb[70].mxu0 }
0x285a   :  { %v3084_v17 = vadd.f32 %v3423_v42, %v3083_v33  ;;  %v3861_v38 = vpop.f32.mrb[71].mxu0  ;;  %v3087_v39 = vadd.f32 %v3081_v36, %v4989_v58  ;;  %v3151_v58 = vsel %vm303_vm5, %v4426_v13, 0 }
0x285b   :  { %3867 = vmatpush3.bf16.xpose.msra.mxu1 %v3151_v58 }
0x285c   :  { %v3088_v35 = vadd.f32 %v3084_v17, %v4991_v53  ;;  %v3091_v14 = vsel %vm303_vm5, %v3087_v39, 0.0  ;;  %3868 = vmatprep.subr.bf16.mxu1 %v4158_v29  ;;  %v3154_v53 = vsel %vm303_vm5, %v4432_v16, 0 }
0x285d   :  { %3092 = vadd.xlane.f32.xlu1 %v3091_v14 }
0x285e   :  { %v3094_v43 = vsel %vm1862_vm6, %v3088_v35, 0.0 }
0x285f   :  { %3095 = vadd.xlane.f32.xlu0 %v3094_v43 }
0x2863   :  { %3869 = vmatpush3.bf16.xpose.msra.mxu1 %v3154_v53 }
0x2864   :  { %3870 = vmatprep.subr.bf16.mxu1 %v4158_v29 }
0x286b   :  { %3871 = vmatpush3.bf16.xpose.msra.mxu1 %v3157_v7 }
0x286c   :  { %3872 = vmatprep.subr.bf16.mxu1 %v4158_v29 }
0x2873   :  { %3873 = vmatpush3.bf16.xpose.msra.mxu1 %v3160_v19 }
0x2874   :  { %3874 = vmatprep.subr.bf16.mxu1 %v4158_v29 }
0x287b   :  { %3875 = vmatpush3.bf16.xpose.msra.mxu1 %v3163_v57 }
0x287c   :  { %3876 = vmatprep.subr.bf16.mxu1 %v4158_v29 }
0x2883   :  { %3877 = vmatpush3.bf16.xpose.msra.mxu1 %v3166_v44 }
0x28ea   :  { %v3093_v10 = vpop.xlane.xlu1 %3092 }
0x28eb   :  { %v3097_v1 = vmul.f32 0.03125, %v3093_v10 }
0x28ec   :  { %v3096_v37 = vpop.xlane.xlu0 %3095 }
0x28ed   :  { %v3099_v46 = vsub.f32 %v3087_v39, %v3097_v1  ;;  %v3098_v13 = vmul.f32 0.03125, %v3096_v37 }
0x28ef   :  { %v3100_v48 = vsub.f32 %v3088_v35, %v3098_v13  ;;  %v3101_v47 = vmul.f32 %v3099_v46, %v3099_v46 }
0x28f1   :  { %v3103_v62 = vsel %vm303_vm5, %v3101_v47, 0.0  ;;  %v3102_v41 = vmul.f32 %v3100_v48, %v3100_v48 }
0x28f2   :  { %3104 = vadd.xlane.f32.xlu1 %v3103_v62 }
0x28f3   :  { %v3106_v16 = vsel %vm1862_vm6, %v3102_v41, 0.0 }
0x28f4   :  { %3107 = vadd.xlane.f32.xlu0 %v3106_v16 }
0x297f   :  { %v3105_v45 = vpop.xlane.xlu1 %3104 }
0x2980   :  { %v3109_v24 = vmul.f32 0.03125, %v3105_v45 }
0x2981   :  { %v3108_v51 = vpop.xlane.xlu0 %3107 }
0x2982   :  { %v3111_v52 = vadd.f32 1e-05, %v3109_v24  ;;  %v3110_v22 = vmul.f32 0.03125, %v3108_v51 }
0x2984   :  { %4071 = vrsqrt.f32 %v3111_v52  ;;  %v3112_v54 = vadd.f32 1e-05, %v3110_v22 }
0x2986   :  { %4073 = vrsqrt.f32 %v3112_v54 }
0x298e   :  { %v4072_v18 = vpop.eup %4071 }
0x298f   :  { %v3115_v25 = vmul.f32 %v4072_v18, %v3099_v46 }
0x2990   :  { %v4074_v3 = vpop.eup %4073 }
0x2991   :  { %v3123_v29 = vmul.f32 %v3425_v55, %v3115_v25  ;;  %v3116_v56 = vmul.f32 %v4074_v3, %v3100_v48 }
0x2993   :  { %v3124_v20 = vmul.f32 %v3425_v55, %v3116_v56  ;;  %v3131_v27 = vadd.f32 %v3426_v28, %v3123_v29 }
0x2995   :  { %v3132_v4 = vadd.f32 %v3426_v28, %v3124_v20 }
0x2997   :  { %v3133_v59 = vpack.c.bf16 %v3132_v4, %v3131_v27 }
0x2999   :  { %3879 = vmatmul.mubr.msk.bf16.vlgmr.msra.gmra.mrb[72].mxu1 %vm303_vm5, %v3133_v59 }
0x2a6c   :  { %v3202_v60 = vpop.f32.mrb[72].mxu1 }
0x2a6d   :  { %v3203_v21 = vadd.f32 %v3427_v50, %v3202_v60  ;;  %v3880_v61 = vpop.f32.mrb[73].mxu1 }
0x2a6e   :  { %v3205_v5 = vpop.f32.mrb[74].mxu1 }
0x2a6f   :  { %3209 = vst [vmem:[%s4406_s17] sm:$0xff] %v3203_v21  ;;  %v3206_v12 = vadd.f32 %v3427_v50, %v3205_v5  ;;  %3213 = vmax.xlane.f32.xlu0 %v3203_v21  ;;  %v3881_v6 = vpop.f32.mrb[75].mxu1 }
0x2a71   :  { %3210 = vst [vmem:[%s4406_s17 + $0x8] sm:$0x1] %v3206_v12  ;;  %v3215_v34 = vsel %vm1575_vm13, %v3206_v12, -inf  ;;  %s4166_s17 = smov [#allocation3]  }
0x2a72   :  { %3216 = vmax.xlane.f32.xlu1 %v3215_v34  ;;  %s3271_s19 = sshll.u32 %s4166_s17, 4  ;;  %s3272_s19 = int_to_ptr.vmem [resolvable:$true] %s3271_s19 }
0x2a73   :  { %s4083_s29 = scalar_lea.vmem %s3272_s19, 16  ;;  %s4087_s3 = scalar_lea.vmem %s3272_s19, 32 }
0x2a74   :  { %p4084_p0 = scmp.ne.s32.totalorder %s3272_s19, %s4083_s29  ;;  %p4088_p1 = scmp.lt.s32.totalorder %s3272_s19, %s3272_s19 }
0x2a75   :  { %p4089_p2 = scmp.lt.s32.totalorder %s4087_s3, %s4083_s29 }
0x2a77   :  { %p4090_p3 = por %p4089_p2, %p4088_p1 }
0x2a79   :  { %p4091_p4 = pnand %p4090_p3, %p4084_p0 }
0x2a83   :  { %3239 = vperm.xlu1 %3956, %v3212_v8  }
0x2a85   :  { %3236 = vperm.xlu0 %3955, %v3211_v40  }
0x2afc   :  { %v3214_v9 = vpop.xlane.xlu0 %3213 }
0x2afd   :  { %v3218_v26 = vsub.f32 %v3203_v21, %v3214_v9 }
0x2aff   :  { %v3220_v63 = vmul.f32 1.442695, %v3218_v26  ;;  %v3217_v2 = vpop.xlane.xlu1 %3216 }
0x2b00   :  { %v3219_v15 = vsub.f32 %v3206_v12, %v3217_v2 }
0x2b01   :  { %4075 = vpow2.f32 %v3220_v63 }
0x2b02   :  { %v3222_v11 = vmul.f32 1.442695, %v3219_v15 }
0x2b03   :  { %v3240_v42 = vpop.permute.xlu1 %3239 }
0x2b04   :  { %4077 = vpow2.f32 %v3222_v11  ;;  %v3237_v23 = vpop.permute.xlu0 %3236  ;;  %vm3242_vm3 = vcmp.eq.s32.totalorder %v4462_v31, %v3240_v42 }
0x2b05   :  { %vm3241_vm5 = vcmp.eq.s32.totalorder %v4462_v31, %v3237_v23  ;;  %v3244_v17 = vsel %vm3242_vm3, %v3206_v12, 0.0 }
0x2b06   :  { %v3243_v32 = vsel %vm3241_vm5, %v3203_v21, 0.0  ;;  %v3247_v38 = vsel %vm1575_vm13, %v3244_v17, 0.0 }
0x2b0b   :  { %v4076_v30 = vpop.eup %4075 }
0x2b0c   :  { %3224 = vadd.xlane.f32.xlu0 %v4076_v30 }
0x2b0e   :  { %v4078_v36 = vpop.eup %4077 }
0x2b0f   :  { %v3226_v33 = vsel %vm1575_vm13, %v4078_v36, 0.0 }
0x2b10   :  { %3245 = vadd.xlane.f32.xlu0 %v3243_v32  ;;  %3227 = vadd.xlane.f32.xlu1 %v3226_v33 }
0x2b14   :  { %3248 = vadd.xlane.f32.xlu1 %v3247_v38 }
0x2b99   :  { %v3225_v39 = vpop.xlane.xlu0 %3224 }
0x2b9a   :  { %4079 = vlog2.f32 %v3225_v39 }
0x2b9d   :  { %v3228_v35 = vpop.xlane.xlu1 %3227  ;;  %v3246_v7 = vpop.xlane.xlu0 %3245 }
0x2b9e   :  { %4081 = vlog2.f32 %v3228_v35 }
0x2ba1   :  { %v3249_v53 = vpop.xlane.xlu1 %3248 }
0x2ba4   :  { %v4080_v14 = vpop.eup %4079 }
0x2ba5   :  { %v3230_v43 = vmul.f32 0.6931472, %v4080_v14 }
0x2ba7   :  { %v3233_v58 = vadd.f32 %v3230_v43, %v3214_v9 }
0x2ba8   :  { %v4082_v0 = vpop.eup %4081 }
0x2ba9   :  { %v3232_v49 = vmul.f32 0.6931472, %v4082_v0  ;;  %v3250_v1 = vsub.f32 %v3233_v58, %v3246_v7 }
0x2bab   :  { %v3234_v31 = vadd.f32 %v3232_v49, %v3217_v2 }
0x2bad   :  { %v3251_v10 = vsub.f32 %v3234_v31, %v3249_v53 }
0x2baf   :  { %v3252_v37 = vsel %vm1575_vm13, %v3251_v10, 0.0 }
0x2bb0   :  { %v3253_v46 = vadd.f32 %v3252_v37, %v3250_v1 }
0x2bb2   :  { %v3254_v13 = vrot.slane %v3253_v46, 4 }
0x2bb4   :  { %v3255_v48 = vadd.f32 %v3254_v13, %v3253_v46 }
0x2bb6   :  { %v3256_v47 = vrot.slane %v3255_v48, 2 }
0x2bb8   :  { %v3257_v62 = vadd.f32 %v3256_v47, %v3255_v48 }
0x2bba   :  { %v3258_v41 = vrot.slane %v3257_v62, 1 }
0x2bbc   :  { %v3259_v16 = vadd.f32 %v3258_v41, %v3257_v62 }
0x2bbe   :  { %v3260_v19 = vmul.f32 0.11111111, %v3259_v16 }
0x2bc0   :  { %3262 = vst.msk [vmem:[#allocation3] sm:$0x1] %vm3261_vm4, %v3260_v19 }
0x2bc1   :  { %4094 = shalt.err (!%p4091_p4)
}
0x2bc2   :  { %s4095_s24 = scalar_lea.hbm %s4411_s30, 16 }
0x2bc3   :  { %p4096_p5 = scmp.ne.s32.totalorder %s4411_s30, %s4095_s24  ;;  %p4099_p6 = scmp.lt.u32.totalorder %s4095_s24, %s4411_s30 }
0x2bc5   :  { %p4101_p7 = pnand %p4099_p6, %p4096_p5 }
0x2bc7   :  { %4104 = shalt.err (!%p4101_p7)
}
0x2bc8   :  { %3274 = dma.vmem_to_hbm [thread:$0]  %s3272_s19, 16, %s4411_s30, [#allocation4]  }
0x2bc9   :  { %4105 = dma.done.wait [#allocation4], 16  }
0x2bca   :  { %4106 = vsyncadd [#allocation4], 4294967280 }
0x2bcb   :  { %3280 = vsyncpa [#allocation4], 1 }

</bundles_post_ra>
